<compile_context>
chip_gen: v7x
topology: tpu7x:2x2x1
jax: 0.10.0
libtpu: 0.0.40
codegen_flags: <defaults>
</compile_context>

<pallas_src>
import math

import jax
import jax.numpy as jnp
from jax import lax
from jax.experimental import pallas as pl
from jax.experimental.pallas import tpu as pltpu

NUM_BLOCKS = 5
_LANE = 128
_DEFAULT_ROW_TILE = 2048   # large tile to amortize per-grid-step overhead


def _round_up(x, m):
    return ((x + m - 1) // m) * m


def _cdiv(a, b):
    return -(-a // b)


def _choose_grid(M, row_tile):
    """Pick (row_tile, num_tiles): lane-aligned, >=2 even-ish tiles for v7x."""
    M_aligned = _round_up(max(M, 1), _LANE)
    if M_aligned <= _LANE:
        return M_aligned, 1
    # Keep at least two tiles (and an even count when cheap) so the "parallel"
    # grid axis gives both v7x TensorCores equal work; neutral on v5e/v6e.
    n = max(2, _cdiv(M_aligned, row_tile))
    if n % 2:
        n += 1
    tM = _round_up(_cdiv(M_aligned, n), _LANE)
    num_tiles = _cdiv(M_aligned, tM)
    return tM, num_tiles


# ---------------------------------------------------------------- pallas kernel
def _decoder_cat_kernel(x_ref, win_ref, bin_ref,
                        w0_ref, b0_ref, w1_ref, b1_ref,
                        wout_ref, bout_ref, out_ref):
    # x_ref: (tM, D) f32.  w0/w1: (5, H, H) bf16.  Other weights/biases f32.
    # out_ref: (1, tM) f32 (lane-dense output slab).
    x = x_ref[...]
    D = x.shape[1]

    # fc_in: contraction depth D (=3) would waste the 128/256-deep MXU, so do
    # it as D broadcast FMAs on the VPU, in f32.
    if D <= 8:
        net = x[:, 0:1] * win_ref[0:1, :]
        for d in range(1, D):
            net = net + x[:, d:d + 1] * win_ref[d:d + 1, :]
        net = net + bin_ref[...]
    else:  # generic fallback for larger input dims
        net = jnp.dot(x, win_ref[...], preferred_element_type=jnp.float32) + bin_ref[...]

    # 5 x ResnetBlockFC with identity shortcut (size_in == size_out).
    # Matmul operands bf16 (MXU-native), accumulation / residual / biases f32.
    # TODO(synk): leaky=True variant (LeakyReLU 0.2) not wired in; module default is ReLU.
    for i in range(NUM_BLOCKS):
        h = jnp.maximum(net, 0.0).astype(jnp.bfloat16)
        h = jnp.dot(h, w0_ref[i], preferred_element_type=jnp.float32) + b0_ref[i]
        h = jnp.maximum(h, 0.0).astype(jnp.bfloat16)
        net = net + jnp.dot(h, w1_ref[i], preferred_element_type=jnp.float32) + b1_ref[i]

    # fc_out (out_dim == 1): produce the lane-dense (1, tM) row directly on the
    # MXU (avoids the sublane->lane relayout of a cross-lane reduce + repack).
    h = jnp.maximum(net, 0.0)
    o = lax.dot_general(wout_ref[...], h,
                        dimension_numbers=(((1,), (1,)), ((), ())),
                        preferred_element_type=jnp.float32)      # (1, tM)
    out_ref[...] = o + bout_ref[...]                              # (1,1) broadcast


# ---------------------------------------------------------------- wrapper
def decoder_cat(x, params, *, row_tile=_DEFAULT_ROW_TILE):
    *batch_dims, D = x.shape
    M = math.prod(batch_dims)

    tM, num_tiles = _choose_grid(M, row_tile)
    M_pad = tM * num_tiles

    x_flat = x.reshape(M, D).astype(jnp.float32)
    if M_pad != M:
        x_flat = jnp.pad(x_flat, ((0, M_pad - M), (0, 0)))

    # bf16 for the ten HxH matmul weights; fc_in/fc_out weights + biases stay f32.
    w_args = (params["win"].astype(jnp.float32), params["bin"].astype(jnp.float32),
              params["w0"].astype(jnp.bfloat16), params["b0"].astype(jnp.float32),
              params["w1"].astype(jnp.bfloat16), params["b1"].astype(jnp.float32),
              params["wout"].astype(jnp.float32), params["bout"].astype(jnp.float32))

    def _call(single_buffer_weights):
        # Constant index maps keep the weights VMEM-resident across grid steps;
        # Buffered(1) drops their (useless) second pipeline buffer.
        extra = {"pipeline_mode": pl.Buffered(1)} if single_buffer_weights else {}
        weight_specs = [
            pl.BlockSpec(w.shape, lambda i, nd=w.ndim: (0,) * nd, **extra)
            for w in w_args
        ]
        in_specs = [pl.BlockSpec((tM, D), lambda i: (i, 0))] + weight_specs

        grid_spec = pltpu.PrefetchScalarGridSpec(
            num_scalar_prefetch=0,
            grid=(num_tiles,),
            in_specs=in_specs,
            out_specs=pl.BlockSpec((1, tM), lambda i: (0, i)),
        )
        return pl.pallas_call(
            _decoder_cat_kernel,
            out_shape=jax.ShapeDtypeStruct((1, M_pad), jnp.float32),
            grid_spec=grid_spec,
            compiler_params=pltpu.CompilerParams(
                dimension_semantics=("parallel",),
                # 48 MiB: fits tM=2048 activations + single-buffered weights,
                # with headroom under v7x's 64 MiB physical VMEM.
                # TODO(synk): on v5e/v6e with H >= 512 this can go toward 96 MiB.
                vmem_limit_bytes=48 * 1024 * 1024,
            ),
        )(x_flat, *w_args)

    try:
        out = _call(True)
    except Exception:
        # Fallback for JAX builds where BlockSpec pipeline_mode is unsupported.
        out = _call(False)

    return out[0, :M].reshape(*batch_dims)


# ---------------------------------------------------------------- params (deterministic)
def init_params(key, dim, hidden, out_dim=1):
    keys = iter(jax.random.split(key, 16))

    def w(shape):
        return jax.random.normal(next(keys), shape, jnp.float32) * 0.1

    return dict(
        win=w((dim, hidden)),                 bin=w((1, hidden)),
        w0=w((NUM_BLOCKS, hidden, hidden)),   b0=w((NUM_BLOCKS, 1, hidden)),
        w1=w((NUM_BLOCKS, hidden, hidden)),   b1=w((NUM_BLOCKS, 1, hidden)),
        wout=w((out_dim, hidden)),            bout=w((1, out_dim)),
    )


# ---------------------------------------------------------------- pure-JAX references
def reference(x, params, *, cast_bf16=False):
    """f32 reference; with cast_bf16=True it mirrors the kernel's bf16 matmul numerics."""
    c = (lambda a: a.astype(jnp.bfloat16)) if cast_bf16 else (lambda a: a)
    net = x @ params["win"] + params["bin"][0]                       # fc_in in f32
    for i in range(NUM_BLOCKS):
        h = jax.nn.relu(net)
        h = jnp.dot(c(h), c(params["w0"][i]),
                    preferred_element_type=jnp.float32) + params["b0"][i, 0]
        h = jax.nn.relu(h)
        net = net + jnp.dot(c(h), c(params["w1"][i]),
                            preferred_element_type=jnp.float32) + params["b1"][i, 0]
    h = jax.nn.relu(net)
    out = jnp.dot(h, params["wout"].T, preferred_element_type=jnp.float32)
    return out[..., 0] + params["bout"][0, 0]


# ---------------------------------------------------------------- main
if __name__ == "__main__":
    B, T, DIM, H, OUT = 2, 8, 3, 32, 1
    key = jax.random.PRNGKey(0)
    kx, kw = jax.random.split(key)
    x = jax.random.normal(kx, (B, T, DIM), jnp.float32)
    params = init_params(kw, DIM, H, OUT)

    out = decoder_cat(x, params)
    jax.block_until_ready(out)
    assert out.shape == (B, T), out.shape

    ref_bf16 = reference(x, params, cast_bf16=True)    # same bf16-matmul numerics as kernel
    ref_f32 = reference(x, params, cast_bf16=False)    # full-precision sanity check
    err_bf16 = float(jnp.max(jnp.abs(out - ref_bf16)))
    err_f32 = float(jnp.max(jnp.abs(out - ref_f32)))
    assert jnp.allclose(out, ref_bf16, atol=1e-3, rtol=1e-3), err_bf16
    assert jnp.allclose(out, ref_f32, atol=2e-2, rtol=2e-2), err_f32
    print("KERNEL_OK")
</pallas_src>

<mosaic_0001>
module attributes {stable_mosaic.version = 11 : i64} {
  func.func @_decoder_cat_kernel(%arg0: i32, %arg1: memref<128x3xf32, #tpu.memory_space<vmem>>, %arg2: memref<3x32xf32, #tpu.memory_space<vmem>>, %arg3: memref<1x32xf32, #tpu.memory_space<vmem>>, %arg4: memref<5x32x32xbf16, #tpu.memory_space<vmem>>, %arg5: memref<5x1x32xf32, #tpu.memory_space<vmem>>, %arg6: memref<5x32x32xbf16, #tpu.memory_space<vmem>>, %arg7: memref<5x1x32xf32, #tpu.memory_space<vmem>>, %arg8: memref<1x32xf32, #tpu.memory_space<vmem>>, %arg9: memref<1x1xf32, #tpu.memory_space<vmem>>, %arg10: memref<1x128xf32, #tpu.memory_space<vmem>>) attributes {dimension_semantics = [#tpu.dimension_semantics<parallel>], iteration_bounds = array<i64: 1>, scalar_prefetch = 0 : i64, scratch_operands = 0 : i64, tpu.core_type = #tpu.core_type<tc>, window_params = [{transform_indices = @transform_0, window_bounds = array<i64: 128, 3>}, {pipeline_mode = #tpu.pipeline_mode<synchronous>, transform_indices = @transform_1, window_bounds = array<i64: 3, 32>}, {pipeline_mode = #tpu.pipeline_mode<synchronous>, transform_indices = @transform_2, window_bounds = array<i64: 1, 32>}, {pipeline_mode = #tpu.pipeline_mode<synchronous>, transform_indices = @transform_3, window_bounds = array<i64: 5, 32, 32>}, {pipeline_mode = #tpu.pipeline_mode<synchronous>, transform_indices = @transform_4, window_bounds = array<i64: 5, 1, 32>}, {pipeline_mode = #tpu.pipeline_mode<synchronous>, transform_indices = @transform_5, window_bounds = array<i64: 5, 32, 32>}, {pipeline_mode = #tpu.pipeline_mode<synchronous>, transform_indices = @transform_6, window_bounds = array<i64: 5, 1, 32>}, {pipeline_mode = #tpu.pipeline_mode<synchronous>, transform_indices = @transform_7, window_bounds = array<i64: 1, 32>}, {pipeline_mode = #tpu.pipeline_mode<synchronous>, transform_indices = @transform_8, window_bounds = array<i64: 1, 1>}, {transform_indices = @transform_9, window_bounds = array<i64: 1, 128>}]} {
    %c0 = arith.constant 0 : index
    %c0_0 = arith.constant 0 : index
    %0 = vector.load %arg1[%c0, %c0_0] : memref<128x3xf32, #tpu.memory_space<vmem>>, vector<128x3xf32>
    %1 = vector.extract_strided_slice %0 {offsets = [0, 0], sizes = [128, 1], strides = [1, 1]} : vector<128x3xf32> to vector<128x1xf32>
    %c0_1 = arith.constant 0 : index
    %c0_2 = arith.constant 0 : index
    %2 = vector.load %arg2[%c0_1, %c0_2] : memref<3x32xf32, #tpu.memory_space<vmem>>, vector<1x32xf32>
    %3 = vector.broadcast %1 : vector<128x1xf32> to vector<128x32xf32>
    %4 = vector.broadcast %2 : vector<1x32xf32> to vector<128x32xf32>
    %5 = arith.mulf %3, %4 : vector<128x32xf32>
    %6 = vector.extract_strided_slice %0 {offsets = [0, 1], sizes = [128, 1], strides = [1, 1]} : vector<128x3xf32> to vector<128x1xf32>
    %c1 = arith.constant 1 : index
    %c0_3 = arith.constant 0 : index
    %7 = vector.load %arg2[%c1, %c0_3] : memref<3x32xf32, #tpu.memory_space<vmem>>, vector<1x32xf32>
    %8 = vector.broadcast %6 : vector<128x1xf32> to vector<128x32xf32>
    %9 = vector.broadcast %7 : vector<1x32xf32> to vector<128x32xf32>
    %10 = arith.mulf %8, %9 : vector<128x32xf32>
    %11 = arith.addf %5, %10 : vector<128x32xf32>
    %12 = vector.extract_strided_slice %0 {offsets = [0, 2], sizes = [128, 1], strides = [1, 1]} : vector<128x3xf32> to vector<128x1xf32>
    %c2 = arith.constant 2 : index
    %c0_4 = arith.constant 0 : index
    %13 = vector.load %arg2[%c2, %c0_4] : memref<3x32xf32, #tpu.memory_space<vmem>>, vector<1x32xf32>
    %14 = vector.broadcast %12 : vector<128x1xf32> to vector<128x32xf32>
    %15 = vector.broadcast %13 : vector<1x32xf32> to vector<128x32xf32>
    %16 = arith.mulf %14, %15 : vector<128x32xf32>
    %17 = arith.addf %11, %16 : vector<128x32xf32>
    %c0_5 = arith.constant 0 : index
    %c0_6 = arith.constant 0 : index
    %18 = vector.load %arg3[%c0_5, %c0_6] : memref<1x32xf32, #tpu.memory_space<vmem>>, vector<1x32xf32>
    %19 = vector.broadcast %18 : vector<1x32xf32> to vector<128x32xf32>
    %20 = arith.addf %17, %19 : vector<128x32xf32>
    %cst = arith.constant 0.000000e+00 : f32
    %21 = vector.broadcast %cst : f32 to vector<128x32xf32>
    %22 = arith.maximumf %20, %21 : vector<128x32xf32>
    %23 = arith.truncf %22 : vector<128x32xf32> to vector<128x32xbf16>
    %c0_7 = arith.constant 0 : index
    %c0_8 = arith.constant 0 : index
    %c0_9 = arith.constant 0 : index
    %24 = vector.load %arg4[%c0_7, %c0_8, %c0_9] : memref<5x32x32xbf16, #tpu.memory_space<vmem>>, vector<1x32x32xbf16>
    %25 = vector.shape_cast %24 : vector<1x32x32xbf16> to vector<32x32xbf16>
    %cst_10 = arith.constant dense<0.000000e+00> : vector<128x32xf32>
    %26 = tpu.matmul %23, %25, %cst_10 {dimension_numbers = #tpu.dot_dimension_numbers<[1], [0], [0], [1], [0, 0, 1, 1], [], []>} : vector<128x32xbf16>, vector<32x32xbf16>, vector<128x32xf32> -> vector<128x32xf32>
    %c0_11 = arith.constant 0 : index
    %c0_12 = arith.constant 0 : index
    %c0_13 = arith.constant 0 : index
    %27 = vector.load %arg5[%c0_11, %c0_12, %c0_13] : memref<5x1x32xf32, #tpu.memory_space<vmem>>, vector<1x1x32xf32>
    %28 = vector.shape_cast %27 : vector<1x1x32xf32> to vector<1x32xf32>
    %29 = vector.broadcast %28 : vector<1x32xf32> to vector<128x32xf32>
    %30 = arith.addf %26, %29 : vector<128x32xf32>
    %cst_14 = arith.constant 0.000000e+00 : f32
    %31 = vector.broadcast %cst_14 : f32 to vector<128x32xf32>
    %32 = arith.maximumf %30, %31 : vector<128x32xf32>
    %33 = arith.truncf %32 : vector<128x32xf32> to vector<128x32xbf16>
    %c0_15 = arith.constant 0 : index
    %c0_16 = arith.constant 0 : index
    %c0_17 = arith.constant 0 : index
    %34 = vector.load %arg6[%c0_15, %c0_16, %c0_17] : memref<5x32x32xbf16, #tpu.memory_space<vmem>>, vector<1x32x32xbf16>
    %35 = vector.shape_cast %34 : vector<1x32x32xbf16> to vector<32x32xbf16>
    %cst_18 = arith.constant dense<0.000000e+00> : vector<128x32xf32>
    %36 = tpu.matmul %33, %35, %cst_18 {dimension_numbers = #tpu.dot_dimension_numbers<[1], [0], [0], [1], [0, 0, 1, 1], [], []>} : vector<128x32xbf16>, vector<32x32xbf16>, vector<128x32xf32> -> vector<128x32xf32>
    %37 = arith.addf %20, %36 : vector<128x32xf32>
    %c0_19 = arith.constant 0 : index
    %c0_20 = arith.constant 0 : index
    %c0_21 = arith.constant 0 : index
    %38 = vector.load %arg7[%c0_19, %c0_20, %c0_21] : memref<5x1x32xf32, #tpu.memory_space<vmem>>, vector<1x1x32xf32>
    %39 = vector.shape_cast %38 : vector<1x1x32xf32> to vector<1x32xf32>
    %40 = vector.broadcast %39 : vector<1x32xf32> to vector<128x32xf32>
    %41 = arith.addf %37, %40 : vector<128x32xf32>
    %cst_22 = arith.constant 0.000000e+00 : f32
    %42 = vector.broadcast %cst_22 : f32 to vector<128x32xf32>
    %43 = arith.maximumf %41, %42 : vector<128x32xf32>
    %44 = arith.truncf %43 : vector<128x32xf32> to vector<128x32xbf16>
    %c1_23 = arith.constant 1 : index
    %c0_24 = arith.constant 0 : index
    %c0_25 = arith.constant 0 : index
    %45 = vector.load %arg4[%c1_23, %c0_24, %c0_25] : memref<5x32x32xbf16, #tpu.memory_space<vmem>>, vector<1x32x32xbf16>
    %46 = vector.shape_cast %45 : vector<1x32x32xbf16> to vector<32x32xbf16>
    %cst_26 = arith.constant dense<0.000000e+00> : vector<128x32xf32>
    %47 = tpu.matmul %44, %46, %cst_26 {dimension_numbers = #tpu.dot_dimension_numbers<[1], [0], [0], [1], [0, 0, 1, 1], [], []>} : vector<128x32xbf16>, vector<32x32xbf16>, vector<128x32xf32> -> vector<128x32xf32>
    %c1_27 = arith.constant 1 : index
    %c0_28 = arith.constant 0 : index
    %c0_29 = arith.constant 0 : index
    %48 = vector.load %arg5[%c1_27, %c0_28, %c0_29] : memref<5x1x32xf32, #tpu.memory_space<vmem>>, vector<1x1x32xf32>
    %49 = vector.shape_cast %48 : vector<1x1x32xf32> to vector<1x32xf32>
    %50 = vector.broadcast %49 : vector<1x32xf32> to vector<128x32xf32>
    %51 = arith.addf %47, %50 : vector<128x32xf32>
    %cst_30 = arith.constant 0.000000e+00 : f32
    %52 = vector.broadcast %cst_30 : f32 to vector<128x32xf32>
    %53 = arith.maximumf %51, %52 : vector<128x32xf32>
    %54 = arith.truncf %53 : vector<128x32xf32> to vector<128x32xbf16>
    %c1_31 = arith.constant 1 : index
    %c0_32 = arith.constant 0 : index
    %c0_33 = arith.constant 0 : index
    %55 = vector.load %arg6[%c1_31, %c0_32, %c0_33] : memref<5x32x32xbf16, #tpu.memory_space<vmem>>, vector<1x32x32xbf16>
    %56 = vector.shape_cast %55 : vector<1x32x32xbf16> to vector<32x32xbf16>
    %cst_34 = arith.constant dense<0.000000e+00> : vector<128x32xf32>
    %57 = tpu.matmul %54, %56, %cst_34 {dimension_numbers = #tpu.dot_dimension_numbers<[1], [0], [0], [1], [0, 0, 1, 1], [], []>} : vector<128x32xbf16>, vector<32x32xbf16>, vector<128x32xf32> -> vector<128x32xf32>
    %58 = arith.addf %41, %57 : vector<128x32xf32>
    %c1_35 = arith.constant 1 : index
    %c0_36 = arith.constant 0 : index
    %c0_37 = arith.constant 0 : index
    %59 = vector.load %arg7[%c1_35, %c0_36, %c0_37] : memref<5x1x32xf32, #tpu.memory_space<vmem>>, vector<1x1x32xf32>
    %60 = vector.shape_cast %59 : vector<1x1x32xf32> to vector<1x32xf32>
    %61 = vector.broadcast %60 : vector<1x32xf32> to vector<128x32xf32>
    %62 = arith.addf %58, %61 : vector<128x32xf32>
    %cst_38 = arith.constant 0.000000e+00 : f32
    %63 = vector.broadcast %cst_38 : f32 to vector<128x32xf32>
    %64 = arith.maximumf %62, %63 : vector<128x32xf32>
    %65 = arith.truncf %64 : vector<128x32xf32> to vector<128x32xbf16>
    %c2_39 = arith.constant 2 : index
    %c0_40 = arith.constant 0 : index
    %c0_41 = arith.constant 0 : index
    %66 = vector.load %arg4[%c2_39, %c0_40, %c0_41] : memref<5x32x32xbf16, #tpu.memory_space<vmem>>, vector<1x32x32xbf16>
    %67 = vector.shape_cast %66 : vector<1x32x32xbf16> to vector<32x32xbf16>
    %cst_42 = arith.constant dense<0.000000e+00> : vector<128x32xf32>
    %68 = tpu.matmul %65, %67, %cst_42 {dimension_numbers = #tpu.dot_dimension_numbers<[1], [0], [0], [1], [0, 0, 1, 1], [], []>} : vector<128x32xbf16>, vector<32x32xbf16>, vector<128x32xf32> -> vector<128x32xf32>
    %c2_43 = arith.constant 2 : index
    %c0_44 = arith.constant 0 : index
    %c0_45 = arith.constant 0 : index
    %69 = vector.load %arg5[%c2_43, %c0_44, %c0_45] : memref<5x1x32xf32, #tpu.memory_space<vmem>>, vector<1x1x32xf32>
    %70 = vector.shape_cast %69 : vector<1x1x32xf32> to vector<1x32xf32>
    %71 = vector.broadcast %70 : vector<1x32xf32> to vector<128x32xf32>
    %72 = arith.addf %68, %71 : vector<128x32xf32>
    %cst_46 = arith.constant 0.000000e+00 : f32
    %73 = vector.broadcast %cst_46 : f32 to vector<128x32xf32>
    %74 = arith.maximumf %72, %73 : vector<128x32xf32>
    %75 = arith.truncf %74 : vector<128x32xf32> to vector<128x32xbf16>
    %c2_47 = arith.constant 2 : index
    %c0_48 = arith.constant 0 : index
    %c0_49 = arith.constant 0 : index
    %76 = vector.load %arg6[%c2_47, %c0_48, %c0_49] : memref<5x32x32xbf16, #tpu.memory_space<vmem>>, vector<1x32x32xbf16>
    %77 = vector.shape_cast %76 : vector<1x32x32xbf16> to vector<32x32xbf16>
    %cst_50 = arith.constant dense<0.000000e+00> : vector<128x32xf32>
    %78 = tpu.matmul %75, %77, %cst_50 {dimension_numbers = #tpu.dot_dimension_numbers<[1], [0], [0], [1], [0, 0, 1, 1], [], []>} : vector<128x32xbf16>, vector<32x32xbf16>, vector<128x32xf32> -> vector<128x32xf32>
    %79 = arith.addf %62, %78 : vector<128x32xf32>
    %c2_51 = arith.constant 2 : index
    %c0_52 = arith.constant 0 : index
    %c0_53 = arith.constant 0 : index
    %80 = vector.load %arg7[%c2_51, %c0_52, %c0_53] : memref<5x1x32xf32, #tpu.memory_space<vmem>>, vector<1x1x32xf32>
    %81 = vector.shape_cast %80 : vector<1x1x32xf32> to vector<1x32xf32>
    %82 = vector.broadcast %81 : vector<1x32xf32> to vector<128x32xf32>
    %83 = arith.addf %79, %82 : vector<128x32xf32>
    %cst_54 = arith.constant 0.000000e+00 : f32
    %84 = vector.broadcast %cst_54 : f32 to vector<128x32xf32>
    %85 = arith.maximumf %83, %84 : vector<128x32xf32>
    %86 = arith.truncf %85 : vector<128x32xf32> to vector<128x32xbf16>
    %c3 = arith.constant 3 : index
    %c0_55 = arith.constant 0 : index
    %c0_56 = arith.constant 0 : index
    %87 = vector.load %arg4[%c3, %c0_55, %c0_56] : memref<5x32x32xbf16, #tpu.memory_space<vmem>>, vector<1x32x32xbf16>
    %88 = vector.shape_cast %87 : vector<1x32x32xbf16> to vector<32x32xbf16>
    %cst_57 = arith.constant dense<0.000000e+00> : vector<128x32xf32>
    %89 = tpu.matmul %86, %88, %cst_57 {dimension_numbers = #tpu.dot_dimension_numbers<[1], [0], [0], [1], [0, 0, 1, 1], [], []>} : vector<128x32xbf16>, vector<32x32xbf16>, vector<128x32xf32> -> vector<128x32xf32>
    %c3_58 = arith.constant 3 : index
    %c0_59 = arith.constant 0 : index
    %c0_60 = arith.constant 0 : index
    %90 = vector.load %arg5[%c3_58, %c0_59, %c0_60] : memref<5x1x32xf32, #tpu.memory_space<vmem>>, vector<1x1x32xf32>
    %91 = vector.shape_cast %90 : vector<1x1x32xf32> to vector<1x32xf32>
    %92 = vector.broadcast %91 : vector<1x32xf32> to vector<128x32xf32>
    %93 = arith.addf %89, %92 : vector<128x32xf32>
    %cst_61 = arith.constant 0.000000e+00 : f32
    %94 = vector.broadcast %cst_61 : f32 to vector<128x32xf32>
    %95 = arith.maximumf %93, %94 : vector<128x32xf32>
    %96 = arith.truncf %95 : vector<128x32xf32> to vector<128x32xbf16>
    %c3_62 = arith.constant 3 : index
    %c0_63 = arith.constant 0 : index
    %c0_64 = arith.constant 0 : index
    %97 = vector.load %arg6[%c3_62, %c0_63, %c0_64] : memref<5x32x32xbf16, #tpu.memory_space<vmem>>, vector<1x32x32xbf16>
    %98 = vector.shape_cast %97 : vector<1x32x32xbf16> to vector<32x32xbf16>
    %cst_65 = arith.constant dense<0.000000e+00> : vector<128x32xf32>
    %99 = tpu.matmul %96, %98, %cst_65 {dimension_numbers = #tpu.dot_dimension_numbers<[1], [0], [0], [1], [0, 0, 1, 1], [], []>} : vector<128x32xbf16>, vector<32x32xbf16>, vector<128x32xf32> -> vector<128x32xf32>
    %100 = arith.addf %83, %99 : vector<128x32xf32>
    %c3_66 = arith.constant 3 : index
    %c0_67 = arith.constant 0 : index
    %c0_68 = arith.constant 0 : index
    %101 = vector.load %arg7[%c3_66, %c0_67, %c0_68] : memref<5x1x32xf32, #tpu.memory_space<vmem>>, vector<1x1x32xf32>
    %102 = vector.shape_cast %101 : vector<1x1x32xf32> to vector<1x32xf32>
    %103 = vector.broadcast %102 : vector<1x32xf32> to vector<128x32xf32>
    %104 = arith.addf %100, %103 : vector<128x32xf32>
    %cst_69 = arith.constant 0.000000e+00 : f32
    %105 = vector.broadcast %cst_69 : f32 to vector<128x32xf32>
    %106 = arith.maximumf %104, %105 : vector<128x32xf32>
    %107 = arith.truncf %106 : vector<128x32xf32> to vector<128x32xbf16>
    %c4 = arith.constant 4 : index
    %c0_70 = arith.constant 0 : index
    %c0_71 = arith.constant 0 : index
    %108 = vector.load %arg4[%c4, %c0_70, %c0_71] : memref<5x32x32xbf16, #tpu.memory_space<vmem>>, vector<1x32x32xbf16>
    %109 = vector.shape_cast %108 : vector<1x32x32xbf16> to vector<32x32xbf16>
    %cst_72 = arith.constant dense<0.000000e+00> : vector<128x32xf32>
    %110 = tpu.matmul %107, %109, %cst_72 {dimension_numbers = #tpu.dot_dimension_numbers<[1], [0], [0], [1], [0, 0, 1, 1], [], []>} : vector<128x32xbf16>, vector<32x32xbf16>, vector<128x32xf32> -> vector<128x32xf32>
    %c4_73 = arith.constant 4 : index
    %c0_74 = arith.constant 0 : index
    %c0_75 = arith.constant 0 : index
    %111 = vector.load %arg5[%c4_73, %c0_74, %c0_75] : memref<5x1x32xf32, #tpu.memory_space<vmem>>, vector<1x1x32xf32>
    %112 = vector.shape_cast %111 : vector<1x1x32xf32> to vector<1x32xf32>
    %113 = vector.broadcast %112 : vector<1x32xf32> to vector<128x32xf32>
    %114 = arith.addf %110, %113 : vector<128x32xf32>
    %cst_76 = arith.constant 0.000000e+00 : f32
    %115 = vector.broadcast %cst_76 : f32 to vector<128x32xf32>
    %116 = arith.maximumf %114, %115 : vector<128x32xf32>
    %117 = arith.truncf %116 : vector<128x32xf32> to vector<128x32xbf16>
    %c4_77 = arith.constant 4 : index
    %c0_78 = arith.constant 0 : index
    %c0_79 = arith.constant 0 : index
    %118 = vector.load %arg6[%c4_77, %c0_78, %c0_79] : memref<5x32x32xbf16, #tpu.memory_space<vmem>>, vector<1x32x32xbf16>
    %119 = vector.shape_cast %118 : vector<1x32x32xbf16> to vector<32x32xbf16>
    %cst_80 = arith.constant dense<0.000000e+00> : vector<128x32xf32>
    %120 = tpu.matmul %117, %119, %cst_80 {dimension_numbers = #tpu.dot_dimension_numbers<[1], [0], [0], [1], [0, 0, 1, 1], [], []>} : vector<128x32xbf16>, vector<32x32xbf16>, vector<128x32xf32> -> vector<128x32xf32>
    %121 = arith.addf %104, %120 : vector<128x32xf32>
    %c4_81 = arith.constant 4 : index
    %c0_82 = arith.constant 0 : index
    %c0_83 = arith.constant 0 : index
    %122 = vector.load %arg7[%c4_81, %c0_82, %c0_83] : memref<5x1x32xf32, #tpu.memory_space<vmem>>, vector<1x1x32xf32>
    %123 = vector.shape_cast %122 : vector<1x1x32xf32> to vector<1x32xf32>
    %124 = vector.broadcast %123 : vector<1x32xf32> to vector<128x32xf32>
    %125 = arith.addf %121, %124 : vector<128x32xf32>
    %cst_84 = arith.constant 0.000000e+00 : f32
    %126 = vector.broadcast %cst_84 : f32 to vector<128x32xf32>
    %127 = arith.maximumf %125, %126 : vector<128x32xf32>
    %c0_85 = arith.constant 0 : index
    %c0_86 = arith.constant 0 : index
    %128 = vector.load %arg8[%c0_85, %c0_86] : memref<1x32xf32, #tpu.memory_space<vmem>>, vector<1x32xf32>
    %cst_87 = arith.constant dense<0.000000e+00> : vector<1x128xf32>
    %129 = tpu.matmul %128, %127, %cst_87 {dimension_numbers = #tpu.dot_dimension_numbers<[1], [1], [0], [0], [0, 0, 1, 0], [], []>} : vector<1x32xf32>, vector<128x32xf32>, vector<1x128xf32> -> vector<1x128xf32>
    %c0_88 = arith.constant 0 : index
    %c0_89 = arith.constant 0 : index
    %130 = vector.load %arg9[%c0_88, %c0_89] : memref<1x1xf32, #tpu.memory_space<vmem>>, vector<1x1xf32>
    %131 = vector.broadcast %130 : vector<1x1xf32> to vector<1x128xf32>
    %132 = arith.addf %129, %131 : vector<1x128xf32>
    %c0_90 = arith.constant 0 : index
    %c0_91 = arith.constant 0 : index
    %133 = vector.load %arg10[%c0_90, %c0_91] : memref<1x128xf32, #tpu.memory_space<vmem>>, vector<1x128xf32>
    tpu.vector_store %arg10[%c0_90, %c0_91], %132 {strides = array<i32>} : memref<1x128xf32, #tpu.memory_space<vmem>>, vector<1x128xf32>,
    return
  }
  func.func @transform_0(%arg0: i32) -> (i32, i32) {
    %c0_i32 = arith.constant 0 : i32
    %c0_i32_0 = arith.constant 0 : i32
    return %arg0, %c0_i32 : i32, i32
  }
  func.func @transform_1(%arg0: i32) -> (i32, i32) {
    %c0_i32 = arith.constant 0 : i32
    %c0_i32_0 = arith.constant 0 : i32
    %c0_i32_1 = arith.constant 0 : i32
    return %c0_i32, %c0_i32_0 : i32, i32
  }
  func.func @transform_2(%arg0: i32) -> (i32, i32) {
    %c0_i32 = arith.constant 0 : i32
    %c0_i32_0 = arith.constant 0 : i32
    %c0_i32_1 = arith.constant 0 : i32
    return %c0_i32, %c0_i32_0 : i32, i32
  }
  func.func @transform_3(%arg0: i32) -> (i32, i32, i32) {
    %c0_i32 = arith.constant 0 : i32
    %c0_i32_0 = arith.constant 0 : i32
    %c0_i32_1 = arith.constant 0 : i32
    %c0_i32_2 = arith.constant 0 : i32
    return %c0_i32, %c0_i32_0, %c0_i32_1 : i32, i32, i32
  }
  func.func @transform_4(%arg0: i32) -> (i32, i32, i32) {
    %c0_i32 = arith.constant 0 : i32
    %c0_i32_0 = arith.constant 0 : i32
    %c0_i32_1 = arith.constant 0 : i32
    %c0_i32_2 = arith.constant 0 : i32
    return %c0_i32, %c0_i32_0, %c0_i32_1 : i32, i32, i32
  }
  func.func @transform_5(%arg0: i32) -> (i32, i32, i32) {
    %c0_i32 = arith.constant 0 : i32
    %c0_i32_0 = arith.constant 0 : i32
    %c0_i32_1 = arith.constant 0 : i32
    %c0_i32_2 = arith.constant 0 : i32
    return %c0_i32, %c0_i32_0, %c0_i32_1 : i32, i32, i32
  }
  func.func @transform_6(%arg0: i32) -> (i32, i32, i32) {
    %c0_i32 = arith.constant 0 : i32
    %c0_i32_0 = arith.constant 0 : i32
    %c0_i32_1 = arith.constant 0 : i32
    %c0_i32_2 = arith.constant 0 : i32
    return %c0_i32, %c0_i32_0, %c0_i32_1 : i32, i32, i32
  }
  func.func @transform_7(%arg0: i32) -> (i32, i32) {
    %c0_i32 = arith.constant 0 : i32
    %c0_i32_0 = arith.constant 0 : i32
    %c0_i32_1 = arith.constant 0 : i32
    return %c0_i32, %c0_i32_0 : i32, i32
  }
  func.func @transform_8(%arg0: i32) -> (i32, i32) {
    %c0_i32 = arith.constant 0 : i32
    %c0_i32_0 = arith.constant 0 : i32
    %c0_i32_1 = arith.constant 0 : i32
    return %c0_i32, %c0_i32_0 : i32, i32
  }
  func.func @transform_9(%arg0: i32) -> (i32, i32) {
    %c0_i32 = arith.constant 0 : i32
    %c0_i32_0 = arith.constant 0 : i32
    return %c0_i32, %arg0 : i32, i32
  }
}

module attributes {stable_mosaic.version = 11 : i64} {
  func.func @_decoder_cat_kernel(%arg0: i32, %arg1: memref<128x3xf32, #tpu.memory_space<vmem>>, %arg2: memref<3x32xf32, #tpu.memory_space<vmem>>, %arg3: memref<1x32xf32, #tpu.memory_space<vmem>>, %arg4: memref<5x32x32xbf16, #tpu.memory_space<vmem>>, %arg5: memref<5x1x32xf32, #tpu.memory_space<vmem>>, %arg6: memref<5x32x32xbf16, #tpu.memory_space<vmem>>, %arg7: memref<5x1x32xf32, #tpu.memory_space<vmem>>, %arg8: memref<1x32xf32, #tpu.memory_space<vmem>>, %arg9: memref<1x1xf32, #tpu.memory_space<vmem>>, %arg10: memref<1x128xf32, #tpu.memory_space<vmem>>) attributes {dimension_semantics = [#tpu.dimension_semantics<parallel>], iteration_bounds = array<i64: 1>, scalar_prefetch = 0 : i64, scratch_operands = 0 : i64, tpu.core_type = #tpu.core_type<tc>, window_params = [{transform_indices = @transform_0, window_bounds = array<i64: 128, 3>}, {pipeline_mode = #tpu.pipeline_mode<synchronous>, transform_indices = @transform_1, window_bounds = array<i64: 3, 32>}, {pipeline_mode = #tpu.pipeline_mode<synchronous>, transform_indices = @transform_2, window_bounds = array<i64: 1, 32>}, {pipeline_mode = #tpu.pipeline_mode<synchronous>, transform_indices = @transform_3, window_bounds = array<i64: 5, 32, 32>}, {pipeline_mode = #tpu.pipeline_mode<synchronous>, transform_indices = @transform_4, window_bounds = array<i64: 5, 1, 32>}, {pipeline_mode = #tpu.pipeline_mode<synchronous>, transform_indices = @transform_5, window_bounds = array<i64: 5, 32, 32>}, {pipeline_mode = #tpu.pipeline_mode<synchronous>, transform_indices = @transform_6, window_bounds = array<i64: 5, 1, 32>}, {pipeline_mode = #tpu.pipeline_mode<synchronous>, transform_indices = @transform_7, window_bounds = array<i64: 1, 32>}, {pipeline_mode = #tpu.pipeline_mode<synchronous>, transform_indices = @transform_8, window_bounds = array<i64: 1, 1>}, {transform_indices = @transform_9, window_bounds = array<i64: 1, 128>}]} {
    %c0 = arith.constant 0 : index
    %c0_0 = arith.constant 0 : index
    %0 = vector.load %arg1[%c0, %c0_0] : memref<128x3xf32, #tpu.memory_space<vmem>>, vector<128x3xf32>
    %1 = vector.extract_strided_slice %0 {offsets = [0, 0], sizes = [128, 1], strides = [1, 1]} : vector<128x3xf32> to vector<128x1xf32>
    %c0_1 = arith.constant 0 : index
    %c0_2 = arith.constant 0 : index
    %2 = vector.load %arg2[%c0_1, %c0_2] : memref<3x32xf32, #tpu.memory_space<vmem>>, vector<1x32xf32>
    %3 = vector.broadcast %1 : vector<128x1xf32> to vector<128x32xf32>
    %4 = vector.broadcast %2 : vector<1x32xf32> to vector<128x32xf32>
    %5 = arith.mulf %3, %4 : vector<128x32xf32>
    %6 = vector.extract_strided_slice %0 {offsets = [0, 1], sizes = [128, 1], strides = [1, 1]} : vector<128x3xf32> to vector<128x1xf32>
    %c1 = arith.constant 1 : index
    %c0_3 = arith.constant 0 : index
    %7 = vector.load %arg2[%c1, %c0_3] : memref<3x32xf32, #tpu.memory_space<vmem>>, vector<1x32xf32>
    %8 = vector.broadcast %6 : vector<128x1xf32> to vector<128x32xf32>
    %9 = vector.broadcast %7 : vector<1x32xf32> to vector<128x32xf32>
    %10 = arith.mulf %8, %9 : vector<128x32xf32>
    %11 = arith.addf %5, %10 : vector<128x32xf32>
    %12 = vector.extract_strided_slice %0 {offsets = [0, 2], sizes = [128, 1], strides = [1, 1]} : vector<128x3xf32> to vector<128x1xf32>
    %c2 = arith.constant 2 : index
    %c0_4 = arith.constant 0 : index
    %13 = vector.load %arg2[%c2, %c0_4] : memref<3x32xf32, #tpu.memory_space<vmem>>, vector<1x32xf32>
    %14 = vector.broadcast %12 : vector<128x1xf32> to vector<128x32xf32>
    %15 = vector.broadcast %13 : vector<1x32xf32> to vector<128x32xf32>
    %16 = arith.mulf %14, %15 : vector<128x32xf32>
    %17 = arith.addf %11, %16 : vector<128x32xf32>
    %c0_5 = arith.constant 0 : index
    %c0_6 = arith.constant 0 : index
    %18 = vector.load %arg3[%c0_5, %c0_6] : memref<1x32xf32, #tpu.memory_space<vmem>>, vector<1x32xf32>
    %19 = vector.broadcast %18 : vector<1x32xf32> to vector<128x32xf32>
    %20 = arith.addf %17, %19 : vector<128x32xf32>
    %cst = arith.constant 0.000000e+00 : f32
    %21 = vector.broadcast %cst : f32 to vector<128x32xf32>
    %22 = arith.maximumf %20, %21 : vector<128x32xf32>
    %23 = arith.truncf %22 : vector<128x32xf32> to vector<128x32xbf16>
    %c0_7 = arith.constant 0 : index
    %c0_8 = arith.constant 0 : index
    %c0_9 = arith.constant 0 : index
    %24 = vector.load %arg4[%c0_7, %c0_8, %c0_9] : memref<5x32x32xbf16, #tpu.memory_space<vmem>>, vector<1x32x32xbf16>
    %25 = vector.shape_cast %24 : vector<1x32x32xbf16> to vector<32x32xbf16>
    %cst_10 = arith.constant dense<0.000000e+00> : vector<128x32xf32>
    %26 = tpu.matmul %23, %25, %cst_10 {dimension_numbers = #tpu.dot_dimension_numbers<[1], [0], [0], [1], [0, 0, 1, 1], [], []>} : vector<128x32xbf16>, vector<32x32xbf16>, vector<128x32xf32> -> vector<128x32xf32>
    %c0_11 = arith.constant 0 : index
    %c0_12 = arith.constant 0 : index
    %c0_13 = arith.constant 0 : index
    %27 = vector.load %arg5[%c0_11, %c0_12, %c0_13] : memref<5x1x32xf32, #tpu.memory_space<vmem>>, vector<1x1x32xf32>
    %28 = vector.shape_cast %27 : vector<1x1x32xf32> to vector<1x32xf32>
    %29 = vector.broadcast %28 : vector<1x32xf32> to vector<128x32xf32>
    %30 = arith.addf %26, %29 : vector<128x32xf32>
    %cst_14 = arith.constant 0.000000e+00 : f32
    %31 = vector.broadcast %cst_14 : f32 to vector<128x32xf32>
    %32 = arith.maximumf %30, %31 : vector<128x32xf32>
    %33 = arith.truncf %32 : vector<128x32xf32> to vector<128x32xbf16>
    %c0_15 = arith.constant 0 : index
    %c0_16 = arith.constant 0 : index
    %c0_17 = arith.constant 0 : index
    %34 = vector.load %arg6[%c0_15, %c0_16, %c0_17] : memref<5x32x32xbf16, #tpu.memory_space<vmem>>, vector<1x32x32xbf16>
    %35 = vector.shape_cast %34 : vector<1x32x32xbf16> to vector<32x32xbf16>
    %cst_18 = arith.constant dense<0.000000e+00> : vector<128x32xf32>
    %36 = tpu.matmul %33, %35, %cst_18 {dimension_numbers = #tpu.dot_dimension_numbers<[1], [0], [0], [1], [0, 0, 1, 1], [], []>} : vector<128x32xbf16>, vector<32x32xbf16>, vector<128x32xf32> -> vector<128x32xf32>
    %37 = arith.addf %20, %36 : vector<128x32xf32>
    %c0_19 = arith.constant 0 : index
    %c0_20 = arith.constant 0 : index
    %c0_21 = arith.constant 0 : index
    %38 = vector.load %arg7[%c0_19, %c0_20, %c0_21] : memref<5x1x32xf32, #tpu.memory_space<vmem>>, vector<1x1x32xf32>
    %39 = vector.shape_cast %38 : vector<1x1x32xf32> to vector<1x32xf32>
    %40 = vector.broadcast %39 : vector<1x32xf32> to vector<128x32xf32>
    %41 = arith.addf %37, %40 : vector<128x32xf32>
    %cst_22 = arith.constant 0.000000e+00 : f32
    %42 = vector.broadcast %cst_22 : f32 to vector<128x32xf32>
    %43 = arith.maximumf %41, %42 : vector<128x32xf32>
    %44 = arith.truncf %43 : vector<128x32xf32> to vector<128x32xbf16>
    %c1_23 = arith.constant 1 : index
    %c0_24 = arith.constant 0 : index
    %c0_25 = arith.constant 0 : index
    %45 = vector.load %arg4[%c1_23, %c0_24, %c0_25] : memref<5x32x32xbf16, #tpu.memory_space<vmem>>, vector<1x32x32xbf16>
    %46 = vector.shape_cast %45 : vector<1x32x32xbf16> to vector<32x32xbf16>
    %cst_26 = arith.constant dense<0.000000e+00> : vector<128x32xf32>
    %47 = tpu.matmul %44, %46, %cst_26 {dimension_numbers = #tpu.dot_dimension_numbers<[1], [0], [0], [1], [0, 0, 1, 1], [], []>} : vector<128x32xbf16>, vector<32x32xbf16>, vector<128x32xf32> -> vector<128x32xf32>
    %c1_27 = arith.constant 1 : index
    %c0_28 = arith.constant 0 : index
    %c0_29 = arith.constant 0 : index
    %48 = vector.load %arg5[%c1_27, %c0_28, %c0_29] : memref<5x1x32xf32, #tpu.memory_space<vmem>>, vector<1x1x32xf32>
    %49 = vector.shape_cast %48 : vector<1x1x32xf32> to vector<1x32xf32>
    %50 = vector.broadcast %49 : vector<1x32xf32> to vector<128x32xf32>
    %51 = arith.addf %47, %50 : vector<128x32xf32>
    %cst_30 = arith.constant 0.000000e+00 : f32
    %52 = vector.broadcast %cst_30 : f32 to vector<128x32xf32>
    %53 = arith.maximumf %51, %52 : vector<128x32xf32>
    %54 = arith.truncf %53 : vector<128x32xf32> to vector<128x32xbf16>
    %c1_31 = arith.constant 1 : index
    %c0_32 = arith.constant 0 : index
    %c0_33 = arith.constant 0 : index
    %55 = vector.load %arg6[%c1_31, %c0_32, %c0_33] : memref<5x32x32xbf16, #tpu.memory_space<vmem>>, vector<1x32x32xbf16>
    %56 = vector.shape_cast %55 : vector<1x32x32xbf16> to vector<32x32xbf16>
    %cst_34 = arith.constant dense<0.000000e+00> : vector<128x32xf32>
    %57 = tpu.matmul %54, %56, %cst_34 {dimension_numbers = #tpu.dot_dimension_numbers<[1], [0], [0], [1], [0, 0, 1, 1], [], []>} : vector<128x32xbf16>, vector<32x32xbf16>, vector<128x32xf32> -> vector<128x32xf32>
    %58 = arith.addf %41, %57 : vector<128x32xf32>
    %c1_35 = arith.constant 1 : index
    %c0_36 = arith.constant 0 : index
    %c0_37 = arith.constant 0 : index
    %59 = vector.load %arg7[%c1_35, %c0_36, %c0_37] : memref<5x1x32xf32, #tpu.memory_space<vmem>>, vector<1x1x32xf32>
    %60 = vector.shape_cast %59 : vector<1x1x32xf32> to vector<1x32xf32>
    %61 = vector.broadcast %60 : vector<1x32xf32> to vector<128x32xf32>
    %62 = arith.addf %58, %61 : vector<128x32xf32>
    %cst_38 = arith.constant 0.000000e+00 : f32
    %63 = vector.broadcast %cst_38 : f32 to vector<128x32xf32>
    %64 = arith.maximumf %62, %63 : vector<128x32xf32>
    %65 = arith.truncf %64 : vector<128x32xf32> to vector<128x32xbf16>
    %c2_39 = arith.constant 2 : index
    %c0_40 = arith.constant 0 : index
    %c0_41 = arith.constant 0 : index
    %66 = vector.load %arg4[%c2_39, %c0_40, %c0_41] : memref<5x32x32xbf16, #tpu.memory_space<vmem>>, vector<1x32x32xbf16>
    %67 = vector.shape_cast %66 : vector<1x32x32xbf16> to vector<32x32xbf16>
    %cst_42 = arith.constant dense<0.000000e+00> : vector<128x32xf32>
    %68 = tpu.matmul %65, %67, %cst_42 {dimension_numbers = #tpu.dot_dimension_numbers<[1], [0], [0], [1], [0, 0, 1, 1], [], []>} : vector<128x32xbf16>, vector<32x32xbf16>, vector<128x32xf32> -> vector<128x32xf32>
    %c2_43 = arith.constant 2 : index
    %c0_44 = arith.constant 0 : index
    %c0_45 = arith.constant 0 : index
    %69 = vector.load %arg5[%c2_43, %c0_44, %c0_45] : memref<5x1x32xf32, #tpu.memory_space<vmem>>, vector<1x1x32xf32>
    %70 = vector.shape_cast %69 : vector<1x1x32xf32> to vector<1x32xf32>
    %71 = vector.broadcast %70 : vector<1x32xf32> to vector<128x32xf32>
    %72 = arith.addf %68, %71 : vector<128x32xf32>
    %cst_46 = arith.constant 0.000000e+00 : f32
    %73 = vector.broadcast %cst_46 : f32 to vector<128x32xf32>
    %74 = arith.maximumf %72, %73 : vector<128x32xf32>
    %75 = arith.truncf %74 : vector<128x32xf32> to vector<128x32xbf16>
    %c2_47 = arith.constant 2 : index
    %c0_48 = arith.constant 0 : index
    %c0_49 = arith.constant 0 : index
    %76 = vector.load %arg6[%c2_47, %c0_48, %c0_49] : memref<5x32x32xbf16, #tpu.memory_space<vmem>>, vector<1x32x32xbf16>
    %77 = vector.shape_cast %76 : vector<1x32x32xbf16> to vector<32x32xbf16>
    %cst_50 = arith.constant dense<0.000000e+00> : vector<128x32xf32>
    %78 = tpu.matmul %75, %77, %cst_50 {dimension_numbers = #tpu.dot_dimension_numbers<[1], [0], [0], [1], [0, 0, 1, 1], [], []>} : vector<128x32xbf16>, vector<32x32xbf16>, vector<128x32xf32> -> vector<128x32xf32>
    %79 = arith.addf %62, %78 : vector<128x32xf32>
    %c2_51 = arith.constant 2 : index
    %c0_52 = arith.constant 0 : index
    %c0_53 = arith.constant 0 : index
    %80 = vector.load %arg7[%c2_51, %c0_52, %c0_53] : memref<5x1x32xf32, #tpu.memory_space<vmem>>, vector<1x1x32xf32>
    %81 = vector.shape_cast %80 : vector<1x1x32xf32> to vector<1x32xf32>
    %82 = vector.broadcast %81 : vector<1x32xf32> to vector<128x32xf32>
    %83 = arith.addf %79, %82 : vector<128x32xf32>
    %cst_54 = arith.constant 0.000000e+00 : f32
    %84 = vector.broadcast %cst_54 : f32 to vector<128x32xf32>
    %85 = arith.maximumf %83, %84 : vector<128x32xf32>
    %86 = arith.truncf %85 : vector<128x32xf32> to vector<128x32xbf16>
    %c3 = arith.constant 3 : index
    %c0_55 = arith.constant 0 : index
    %c0_56 = arith.constant 0 : index
    %87 = vector.load %arg4[%c3, %c0_55, %c0_56] : memref<5x32x32xbf16, #tpu.memory_space<vmem>>, vector<1x32x32xbf16>
    %88 = vector.shape_cast %87 : vector<1x32x32xbf16> to vector<32x32xbf16>
    %cst_57 = arith.constant dense<0.000000e+00> : vector<128x32xf32>
    %89 = tpu.matmul %86, %88, %cst_57 {dimension_numbers = #tpu.dot_dimension_numbers<[1], [0], [0], [1], [0, 0, 1, 1], [], []>} : vector<128x32xbf16>, vector<32x32xbf16>, vector<128x32xf32> -> vector<128x32xf32>
    %c3_58 = arith.constant 3 : index
    %c0_59 = arith.constant 0 : index
    %c0_60 = arith.constant 0 : index
    %90 = vector.load %arg5[%c3_58, %c0_59, %c0_60] : memref<5x1x32xf32, #tpu.memory_space<vmem>>, vector<1x1x32xf32>
    %91 = vector.shape_cast %90 : vector<1x1x32xf32> to vector<1x32xf32>
    %92 = vector.broadcast %91 : vector<1x32xf32> to vector<128x32xf32>
    %93 = arith.addf %89, %92 : vector<128x32xf32>
    %cst_61 = arith.constant 0.000000e+00 : f32
    %94 = vector.broadcast %cst_61 : f32 to vector<128x32xf32>
    %95 = arith.maximumf %93, %94 : vector<128x32xf32>
    %96 = arith.truncf %95 : vector<128x32xf32> to vector<128x32xbf16>
    %c3_62 = arith.constant 3 : index
    %c0_63 = arith.constant 0 : index
    %c0_64 = arith.constant 0 : index
    %97 = vector.load %arg6[%c3_62, %c0_63, %c0_64] : memref<5x32x32xbf16, #tpu.memory_space<vmem>>, vector<1x32x32xbf16>
    %98 = vector.shape_cast %97 : vector<1x32x32xbf16> to vector<32x32xbf16>
    %cst_65 = arith.constant dense<0.000000e+00> : vector<128x32xf32>
    %99 = tpu.matmul %96, %98, %cst_65 {dimension_numbers = #tpu.dot_dimension_numbers<[1], [0], [0], [1], [0, 0, 1, 1], [], []>} : vector<128x32xbf16>, vector<32x32xbf16>, vector<128x32xf32> -> vector<128x32xf32>
    %100 = arith.addf %83, %99 : vector<128x32xf32>
    %c3_66 = arith.constant 3 : index
    %c0_67 = arith.constant 0 : index
    %c0_68 = arith.constant 0 : index
    %101 = vector.load %arg7[%c3_66, %c0_67, %c0_68] : memref<5x1x32xf32, #tpu.memory_space<vmem>>, vector<1x1x32xf32>
    %102 = vector.shape_cast %101 : vector<1x1x32xf32> to vector<1x32xf32>
    %103 = vector.broadcast %102 : vector<1x32xf32> to vector<128x32xf32>
    %104 = arith.addf %100, %103 : vector<128x32xf32>
    %cst_69 = arith.constant 0.000000e+00 : f32
    %105 = vector.broadcast %cst_69 : f32 to vector<128x32xf32>
    %106 = arith.maximumf %104, %105 : vector<128x32xf32>
    %107 = arith.truncf %106 : vector<128x32xf32> to vector<128x32xbf16>
    %c4 = arith.constant 4 : index
    %c0_70 = arith.constant 0 : index
    %c0_71 = arith.constant 0 : index
    %108 = vector.load %arg4[%c4, %c0_70, %c0_71] : memref<5x32x32xbf16, #tpu.memory_space<vmem>>, vector<1x32x32xbf16>
    %109 = vector.shape_cast %108 : vector<1x32x32xbf16> to vector<32x32xbf16>
    %cst_72 = arith.constant dense<0.000000e+00> : vector<128x32xf32>
    %110 = tpu.matmul %107, %109, %cst_72 {dimension_numbers = #tpu.dot_dimension_numbers<[1], [0], [0], [1], [0, 0, 1, 1], [], []>} : vector<128x32xbf16>, vector<32x32xbf16>, vector<128x32xf32> -> vector<128x32xf32>
    %c4_73 = arith.constant 4 : index
    %c0_74 = arith.constant 0 : index
    %c0_75 = arith.constant 0 : index
    %111 = vector.load %arg5[%c4_73, %c0_74, %c0_75] : memref<5x1x32xf32, #tpu.memory_space<vmem>>, vector<1x1x32xf32>
    %112 = vector.shape_cast %111 : vector<1x1x32xf32> to vector<1x32xf32>
    %113 = vector.broadcast %112 : vector<1x32xf32> to vector<128x32xf32>
    %114 = arith.addf %110, %113 : vector<128x32xf32>
    %cst_76 = arith.constant 0.000000e+00 : f32
    %115 = vector.broadcast %cst_76 : f32 to vector<128x32xf32>
    %116 = arith.maximumf %114, %115 : vector<128x32xf32>
    %117 = arith.truncf %116 : vector<128x32xf32> to vector<128x32xbf16>
    %c4_77 = arith.constant 4 : index
    %c0_78 = arith.constant 0 : index
    %c0_79 = arith.constant 0 : index
    %118 = vector.load %arg6[%c4_77, %c0_78, %c0_79] : memref<5x32x32xbf16, #tpu.memory_space<vmem>>, vector<1x32x32xbf16>
    %119 = vector.shape_cast %118 : vector<1x32x32xbf16> to vector<32x32xbf16>
    %cst_80 = arith.constant dense<0.000000e+00> : vector<128x32xf32>
    %120 = tpu.matmul %117, %119, %cst_80 {dimension_numbers = #tpu.dot_dimension_numbers<[1], [0], [0], [1], [0, 0, 1, 1], [], []>} : vector<128x32xbf16>, vector<32x32xbf16>, vector<128x32xf32> -> vector<128x32xf32>
    %121 = arith.addf %104, %120 : vector<128x32xf32>
    %c4_81 = arith.constant 4 : index
    %c0_82 = arith.constant 0 : index
    %c0_83 = arith.constant 0 : index
    %122 = vector.load %arg7[%c4_81, %c0_82, %c0_83] : memref<5x1x32xf32, #tpu.memory_space<vmem>>, vector<1x1x32xf32>
    %123 = vector.shape_cast %122 : vector<1x1x32xf32> to vector<1x32xf32>
    %124 = vector.broadcast %123 : vector<1x32xf32> to vector<128x32xf32>
    %125 = arith.addf %121, %124 : vector<128x32xf32>
    %cst_84 = arith.constant 0.000000e+00 : f32
    %126 = vector.broadcast %cst_84 : f32 to vector<128x32xf32>
    %127 = arith.maximumf %125, %126 : vector<128x32xf32>
    %c0_85 = arith.constant 0 : index
    %c0_86 = arith.constant 0 : index
    %128 = vector.load %arg8[%c0_85, %c0_86] : memref<1x32xf32, #tpu.memory_space<vmem>>, vector<1x32xf32>
    %cst_87 = arith.constant dense<0.000000e+00> : vector<1x128xf32>
    %129 = tpu.matmul %128, %127, %cst_87 {dimension_numbers = #tpu.dot_dimension_numbers<[1], [1], [0], [0], [0, 0, 1, 0], [], []>} : vector<1x32xf32>, vector<128x32xf32>, vector<1x128xf32> -> vector<1x128xf32>
    %c0_88 = arith.constant 0 : index
    %c0_89 = arith.constant 0 : index
    %130 = vector.load %arg9[%c0_88, %c0_89] : memref<1x1xf32, #tpu.memory_space<vmem>>, vector<1x1xf32>
    %131 = vector.broadcast %130 : vector<1x1xf32> to vector<1x128xf32>
    %132 = arith.addf %129, %131 : vector<1x128xf32>
    %c0_90 = arith.constant 0 : index
    %c0_91 = arith.constant 0 : index
    %133 = vector.load %arg10[%c0_90, %c0_91] : memref<1x128xf32, #tpu.memory_space<vmem>>, vector<1x128xf32>
    tpu.vector_store %arg10[%c0_90, %c0_91], %132 {strides = array<i32>} : memref<1x128xf32, #tpu.memory_space<vmem>>, vector<1x128xf32>,
    return
  }
  func.func @transform_0(%arg0: i32) -> (i32, i32) {
    %c0_i32 = arith.constant 0 : i32
    %c0_i32_0 = arith.constant 0 : i32
    return %arg0, %c0_i32 : i32, i32
  }
  func.func @transform_1(%arg0: i32) -> (i32, i32) {
    %c0_i32 = arith.constant 0 : i32
    %c0_i32_0 = arith.constant 0 : i32
    %c0_i32_1 = arith.constant 0 : i32
    return %c0_i32, %c0_i32_0 : i32, i32
  }
  func.func @transform_2(%arg0: i32) -> (i32, i32) {
    %c0_i32 = arith.constant 0 : i32
    %c0_i32_0 = arith.constant 0 : i32
    %c0_i32_1 = arith.constant 0 : i32
    return %c0_i32, %c0_i32_0 : i32, i32
  }
  func.func @transform_3(%arg0: i32) -> (i32, i32, i32) {
    %c0_i32 = arith.constant 0 : i32
    %c0_i32_0 = arith.constant 0 : i32
    %c0_i32_1 = arith.constant 0 : i32
    %c0_i32_2 = arith.constant 0 : i32
    return %c0_i32, %c0_i32_0, %c0_i32_1 : i32, i32, i32
  }
  func.func @transform_4(%arg0: i32) -> (i32, i32, i32) {
    %c0_i32 = arith.constant 0 : i32
    %c0_i32_0 = arith.constant 0 : i32
    %c0_i32_1 = arith.constant 0 : i32
    %c0_i32_2 = arith.constant 0 : i32
    return %c0_i32, %c0_i32_0, %c0_i32_1 : i32, i32, i32
  }
  func.func @transform_5(%arg0: i32) -> (i32, i32, i32) {
    %c0_i32 = arith.constant 0 : i32
    %c0_i32_0 = arith.constant 0 : i32
    %c0_i32_1 = arith.constant 0 : i32
    %c0_i32_2 = arith.constant 0 : i32
    return %c0_i32, %c0_i32_0, %c0_i32_1 : i32, i32, i32
  }
  func.func @transform_6(%arg0: i32) -> (i32, i32, i32) {
    %c0_i32 = arith.constant 0 : i32
    %c0_i32_0 = arith.constant 0 : i32
    %c0_i32_1 = arith.constant 0 : i32
    %c0_i32_2 = arith.constant 0 : i32
    return %c0_i32, %c0_i32_0, %c0_i32_1 : i32, i32, i32
  }
  func.func @transform_7(%arg0: i32) -> (i32, i32) {
    %c0_i32 = arith.constant 0 : i32
    %c0_i32_0 = arith.constant 0 : i32
    %c0_i32_1 = arith.constant 0 : i32
    return %c0_i32, %c0_i32_0 : i32, i32
  }
  func.func @transform_8(%arg0: i32) -> (i32, i32) {
    %c0_i32 = arith.constant 0 : i32
    %c0_i32_0 = arith.constant 0 : i32
    %c0_i32_1 = arith.constant 0 : i32
    return %c0_i32, %c0_i32_0 : i32, i32
  }
  func.func @transform_9(%arg0: i32) -> (i32, i32) {
    %c0_i32 = arith.constant 0 : i32
    %c0_i32_0 = arith.constant 0 : i32
    return %c0_i32, %arg0 : i32, i32
  }
}

</mosaic_0001>

<bundles_post_ra>
// kernel: tpu_custom_call.1
= control target key start
LH: loop header
LB: loop body
LE: loop exit
PB: predicated region body
PF: predicated region fallthrough
CT: control target
= control target key end

     0   :  { %s3891_s0 = inlined_call_operand.vmem [shape: f32[128,3], index: 0, kind: input, shape index: {}]   ;;  %s3892_s1 = inlined_call_operand.vmem [shape: f32[3,32], index: 1, kind: input, shape index: {}]   ;;  %s3893_s2 = inlined_call_operand.vmem [shape: f32[1,32], index: 2, kind: input, shape index: {}]   ;;  %s3894_s3 = inlined_call_operand.vmem [shape: bf16[5,32,32], index: 3, kind: input, shape index: {}]   ;;  %s3895_s4 = inlined_call_operand.vmem [shape: f32[5,1,32], index: 4, kind: input, shape index: {}]   ;;  %s3896_s5 = inlined_call_operand.hbm [shape: bf16[5,32,32], index: 5, kind: input, shape index: {}]   ;;  %s3897_s6 = inlined_call_operand.vmem [shape: f32[5,1,32], index: 6, kind: input, shape index: {}]   ;;  %s3898_s7 = inlined_call_operand.vmem [shape: f32[1,32], index: 7, kind: input, shape index: {}]   ;;  %s3899_s8 = inlined_call_operand.<no memory space> [shape: f32[1,1], index: 8, kind: input, shape index: {}]   ;;  %s3900_s9 = inlined_call_operand.hbm [shape: f32[1,128], index: 9, kind: output, shape index: {}]  }
   0x1   :  { %v14_v0 = vstv %s3899_s8 }
   0x2   :  { %15 = vst [vmem:[#allocation2] sm:$0x1] %v14_v0 }
   0x3   :  { %16 = vsyncpa [#allocation4], 0 }
   0x4   :  { %17 = vsyncpa [#allocation5], 0  ;;  %s3061_s11 = smov [#allocation3]   ;;  %s3013_s15 = scalar_lea.hbm %s3896_s5, 1280 }
   0x5   :  { %s33_s12 = sshll.u32 %s3061_s11, 4  ;;  %p3014_p0 = scmp.ne.s32.totalorder %s3896_s5, %s3013_s15  ;;  %s34_s12 = int_to_ptr.vmem [resolvable:$true] %s33_s12 }
   0x6   :  { %p3017_p1 = scmp.lt.u32.totalorder %s3013_s15, %s3896_s5 }
   0x8   :  { %p3019_p2 = pnand %p3017_p1, %p3014_p0 }
   0xa   :  { %3022 = shalt.err (!%p3019_p2)
}
   0xb   :  { %s3023_s8 = scalar_lea.vmem %s34_s12, 1280  ;;  %p3028_p4 = scmp.lt.s32.totalorder %s34_s12, %s34_s12 }
   0xc   :  { %p3024_p3 = scmp.ne.s32.totalorder %s34_s12, %s3023_s8  ;;  %p3029_p5 = scmp.lt.s32.totalorder %s3023_s8, %s3023_s8 }
   0xe   :  { %p3030_p6 = por %p3029_p5, %p3028_p4 }
  0x10   :  { %p3031_p7 = pnand %p3030_p6, %p3024_p3 }
  0x12   :  { %3034 = shalt.err (!%p3031_p7)
}
  0x13   :  { %s3062_s20 = smov 64   ;;  %s3063_s21 = smov 4  }
  0x14   :  { %39 = dma.hbm_to_vmem [thread:$0]  %s3896_s5, 1280, %s34_s12, [#allocation4], %s3062_s20, %s3062_s20, %s3063_s21  }
  0x15   :  { %3057 = dma.done.wait [#allocation4], 1280  }
  0x16   :  { %3058 = vsyncadd [#allocation4], 4294966016  ;;  %v3064_v1 = vmov 1   ;;  %v3065_v2 = vmov 0   ;;  %v50_v3 = vld [vmem:[%s3891_s0] sm:$0xff]  ;;  %v51_v4 = vld [vmem:[%s3891_s0 + $0x8] sm:$0xff] }
  0x17   :  { %2967 = vset.pattern.permute.xlu1 %v3064_v1  ;;  %2966 = vset.pattern.permute.xlu0 %v3065_v2  ;;  %v52_v5 = vld [vmem:[%s3891_s0 + $0x10] sm:$0xff]  ;;  %v53_v6 = vld [vmem:[%s3891_s0 + $0x18] sm:$0xff]  ;;  %v55_v7 = vld [vmem:[%s3891_s0 + $0x28] sm:$0xff]  ;;  %v3066_v9 = vmov 2   ;;  %vm439_vm0 = vcmask 261120   ;;  %vm3068_vm1 = vmmov 0  }
  0x18   :  { %169 = vperm.xlu1 %2967, %v50_v3   ;;  %69 = vperm.xlu0 %2966, %v50_v3   ;;  %v56_v8 = vld [vmem:[%s3891_s0 + $0x30] sm:$0xff]  ;;  %v54_v10 = vld [vmem:[%s3891_s0 + $0x20] sm:$0xff]  ;;  %v57_v12 = vld [vmem:[%s3891_s0 + $0x38] sm:$0xff]  ;;  %s3070_s5 = smov [#allocation6]  }
  0x19   :  { %v2993_v11 = vld [vmem:[%s3894_s3] sm:$0xff]   ;;  %v2994_v13 = vld [vmem:[%s3894_s3 + $0x8] sm:$0xff]   ;;  %v60_v15 = vld [vmem:[%s3891_s0 + $0x50] sm:$0xff]  ;;  %s2404_s28 = sshll.u32 %s3070_s5, 4  ;;  %s2405_s28 = int_to_ptr.vmem [resolvable:$true] %s2404_s28 }
  0x1a   :  { %2685 = vmatprep.subr.bf16.mxu0 %v2993_v11  ;;  %2952 = vmatprep.subr.bf16.mxu1 %v2993_v11  ;;  %v59_v14 = vld [vmem:[%s3891_s0 + $0x48] sm:$0xff]  ;;  %v62_v16 = vld [vmem:[%s3891_s0 + $0x60] sm:$0xff]  ;;  %v64_v19 = vld [vmem:[%s3891_s0 + $0x70] sm:$0xff]  ;;  %s3035_s29 = scalar_lea.vmem %s2405_s28, 16  ;;  %s3039_s30 = scalar_lea.vmem %s2405_s28, 32 }
  0x1b   :  { %2686 = vmatpush3.bf16.msra.mxu0 %v2993_v11  ;;  %2954 = vmatpush3.bf16.msra.mxu1 %v2993_v11  ;;  %v63_v17 = vld [vmem:[%s3891_s0 + $0x68] sm:$0xff]  ;;  %v58_v18 = vld [vmem:[%s3891_s0 + $0x40] sm:$0xff]  ;;  %v61_v20 = vld [vmem:[%s3891_s0 + $0x58] sm:$0xff]  ;;  %p3036_p8 = scmp.ne.s32.totalorder %s2405_s28, %s3035_s29  ;;  %p3040_p9 = scmp.lt.s32.totalorder %s2405_s28, %s2405_s28 }
  0x1c   :  { %173 = vperm.xlu1 %2967, %v51_v4   ;;  %74 = vperm.xlu0 %2966, %v51_v4   ;;  %v65_v21 = vld [vmem:[%s3891_s0 + $0x78] sm:$0xff]  ;;  %v3220_v30 = vld [vmem:[%s3892_s1 + $0x1] ss:$0 sm:$0xff]  ;;  %v3225_v31 = vld [vmem:[%s3892_s1] ss:$0 sm:$0xff]  ;;  %p3041_p10 = scmp.lt.s32.totalorder %s3039_s30, %s3035_s29 }
  0x1d   :  { %2687 = vmatprep.subr.bf16.mxu0 %v2994_v13  ;;  %2953 = vmatprep.subr.bf16.mxu1 %v2994_v13  ;;  %v3232_v35 = vld [vmem:[%s3892_s1 + $0x2] ss:$0 sm:$0xff]  ;;  %v3245_v50 = vld [vmem:[%s3893_s2] ss:$0 sm:$0xff]  ;;  %vm3824_vm2 = vmpackc.low %vm439_vm0, %vm439_vm0 }
  0x1e   :  { %p3042_p11 = por %p3041_p10, %p3040_p9 }
  0x1f   :  { %2688 = vmatpush3.bf16.msra.mxu0 %v2994_v13  ;;  %2955 = vmatpush3.bf16.msra.mxu1 %v2994_v13 }
  0x20   :  { %2968 = vset.pattern.permute.xlu1 %v3065_v2  ;;  %79 = vperm.xlu0 %2966, %v52_v5   ;;  %p3043_p12 = pnand %p3042_p11, %p3036_p8 }
  0x21   :  { %84 = vperm.xlu1 %2968, %v53_v6  }
  0x24   :  { %2969 = vset.pattern.permute.xlu0 %v3064_v1 }
  0x25   :  { %2970 = vset.pattern.permute.xlu1 %v3064_v1  ;;  %177 = vperm.xlu0 %2969, %v52_v5  }
  0x26   :  { %181 = vperm.xlu1 %2970, %v53_v6  }
  0x29   :  { %189 = vperm.xlu0 %2969, %v55_v7  }
  0x2a   :  { %2971 = vset.pattern.permute.xlu1 %v3066_v9 }
  0x2b   :  { %270 = vperm.xlu1 %2971, %v50_v3  }
  0x2d   :  { %193 = vperm.xlu0 %2969, %v56_v8  }
  0x2f   :  { %278 = vperm.xlu1 %2971, %v52_v5  }
  0x31   :  { %2975 = vset.pattern.permute.xlu0 %v3066_v9 }
  0x32   :  { %274 = vperm.xlu0 %2975, %v51_v4  }
  0x33   :  { %282 = vperm.xlu1 %2971, %v53_v6  }
  0x36   :  { %286 = vperm.xlu0 %2975, %v54_v10  }
  0x37   :  { %2972 = vset.pattern.permute.xlu1 %v3065_v2 }
  0x38   :  { %94 = vperm.xlu1 %2972, %v55_v7  }
  0x3a   :  { %298 = vperm.xlu0 %2975, %v57_v12  }
  0x3c   :  { %2973 = vset.pattern.permute.xlu1 %v3064_v1 }
  0x3d   :  { %185 = vperm.xlu1 %2973, %v54_v10  }
  0x3e   :  { %306 = vperm.xlu0 %2975, %v59_v14  }
  0x41   :  { %2974 = vset.pattern.permute.xlu1 %v3065_v2 }
  0x42   :  { %99 = vperm.xlu1 %2974, %v56_v8   ;;  %2983 = vset.pattern.permute.xlu0 %v3065_v2 }
  0x43   :  { %89 = vperm.xlu0 %2983, %v54_v10  }
  0x46   :  { %104 = vperm.xlu1 %2974, %v57_v12  }
  0x47   :  { %114 = vperm.xlu0 %2983, %v59_v14  }
  0x4a   :  { %2976 = vset.pattern.permute.xlu1 %v3064_v1 }
  0x4b   :  { %197 = vperm.xlu1 %2976, %v57_v12   ;;  %119 = vperm.xlu0 %2983, %v60_v15  }
  0x4f   :  { %2977 = vset.pattern.permute.xlu1 %v3066_v9  ;;  %129 = vperm.xlu0 %2983, %v62_v16  }
  0x50   :  { %290 = vperm.xlu1 %2977, %v55_v7  }
  0x53   :  { %2984 = vset.pattern.permute.xlu0 %v3064_v1 }
  0x54   :  { %294 = vperm.xlu1 %2977, %v56_v8   ;;  %209 = vperm.xlu0 %2984, %v60_v15  }
  0x58   :  { %2978 = vset.pattern.permute.xlu1 %v3065_v2  ;;  %221 = vperm.xlu0 %2984, %v63_v17  }
  0x59   :  { %109 = vperm.xlu1 %2978, %v58_v18  }
  0x5c   :  { %225 = vperm.xlu0 %2984, %v64_v19  }
  0x5d   :  { %2979 = vset.pattern.permute.xlu1 %v3064_v1 }
  0x5e   :  { %201 = vperm.xlu1 %2979, %v58_v18  }
  0x60   :  { %2989 = vset.pattern.permute.xlu0 %v3066_v9 }
  0x61   :  { %318 = vperm.xlu0 %2989, %v62_v16  }
  0x62   :  { %205 = vperm.xlu1 %2979, %v59_v14  }
  0x65   :  { %330 = vperm.xlu0 %2989, %v65_v21  }
  0x66   :  { %2980 = vset.pattern.permute.xlu1 %v3065_v2 }
  0x67   :  { %124 = vperm.xlu1 %2980, %v61_v20  }
  0x69   :  { %2992 = vset.pattern.permute.xlu0 %v3065_v2 }
  0x6b   :  { %2981 = vset.pattern.permute.xlu1 %v3064_v1 }
  0x6c   :  { %213 = vperm.xlu1 %2981, %v61_v20  }
  0x70   :  { %2982 = vset.pattern.permute.xlu1 %v3066_v9 }
  0x71   :  { %302 = vperm.xlu1 %2982, %v58_v18  }
  0x75   :  { %310 = vperm.xlu1 %2982, %v60_v15  }
  0x79   :  { %314 = vperm.xlu1 %2982, %v61_v20  }
  0x7d   :  { %2985 = vset.pattern.permute.xlu1 %v3065_v2 }
  0x7e   :  { %134 = vperm.xlu1 %2985, %v63_v17  }
  0x82   :  { %2986 = vset.pattern.permute.xlu1 %v3064_v1 }
  0x83   :  { %217 = vperm.xlu1 %2986, %v62_v16  }
  0x87   :  { %2987 = vset.pattern.permute.xlu1 %v3065_v2 }
  0x88   :  { %139 = vperm.xlu1 %2987, %v64_v19  }
  0x8c   :  { %144 = vperm.xlu1 %2987, %v65_v21  }
  0x90   :  { %2988 = vset.pattern.permute.xlu1 %v3064_v1 }
  0x91   :  { %229 = vperm.xlu1 %2988, %v65_v21  }
  0x95   :  { %2990 = vset.pattern.permute.xlu1 %v3066_v9 }
  0x96   :  { %322 = vperm.xlu1 %2990, %v63_v17  }
  0x97   :  { %v170_v22 = vpop.permute.xlu1 %169  ;;  %v70_v23 = vpop.permute.xlu0 %69 }
  0x98   :  { %v236_v36 = vmul.f32 %v3220_v30, %v170_v22  ;;  %v151_v37 = vmul.f32 %v3225_v31, %v70_v23 }
  0x9a   :  { %326 = vperm.xlu1 %2990, %v64_v19   ;;  %v252_v42 = vadd.f32 %v236_v36, %v151_v37 }
  0x9b   :  { %v174_v24 = vpop.permute.xlu1 %173  ;;  %v75_v25 = vpop.permute.xlu0 %74 }
  0x9c   :  { %v237_v43 = vmul.f32 %v3220_v30, %v174_v24  ;;  %v152_v44 = vmul.f32 %v3225_v31, %v75_v25 }
  0x9e   :  { %2991 = vset.pattern.permute.xlu1 %v3065_v2  ;;  %v253_v53 = vadd.f32 %v237_v43, %v152_v44 }
  0x9f   :  { %v80_v26 = vpop.permute.xlu0 %79 }
  0xa0   :  { %v85_v27 = vpop.permute.xlu1 %84  ;;  %v153_v33 = vmul.f32 %v3225_v31, %v80_v26 }
  0xa1   :  { %v154_v49 = vmul.f32 %v3225_v31, %v85_v27 }
  0xa4   :  { %v178_v28 = vpop.permute.xlu0 %177 }
  0xa5   :  { %v182_v29 = vpop.permute.xlu1 %181  ;;  %v238_v34 = vmul.f32 %v3220_v30, %v178_v28 }
  0xa6   :  { %v239_v46 = vmul.f32 %v3220_v30, %v182_v29 }
  0xa7   :  { %v254_v41 = vadd.f32 %v238_v34, %v153_v33 }
  0xa8   :  { %v190_v32 = vpop.permute.xlu0 %189  ;;  %v255_v56 = vadd.f32 %v239_v46, %v154_v49 }
  0xa9   :  { %v241_v20 = vmul.f32 %v3220_v30, %v190_v32 }
  0xaa   :  { %v271_v38 = vpop.permute.xlu1 %270 }
  0xab   :  { %v337_v39 = vmul.f32 %v3232_v35, %v271_v38 }
  0xac   :  { %v194_v40 = vpop.permute.xlu0 %193 }
  0xad   :  { %v353_v48 = vadd.f32 %v337_v39, %v252_v42  ;;  %v242_v27 = vmul.f32 %v3220_v30, %v194_v40 }
  0xae   :  { %v279_v45 = vpop.permute.xlu1 %278 }
  0xaf   :  { %v339_v47 = vmul.f32 %v3232_v35, %v279_v45  ;;  %v3250_v58 = vadd.f32 %v3245_v50, %v353_v48 }
  0xb1   :  { %v355_v51 = vadd.f32 %v339_v47, %v254_v41  ;;  %v275_v52 = vpop.permute.xlu0 %274  ;;  %v392_v2 = vmax.f32 %v3250_v58, 0.0 }
  0xb2   :  { %v338_v54 = vmul.f32 %v3232_v35, %v275_v52  ;;  %v283_v55 = vpop.permute.xlu1 %282 }
  0xb3   :  { %v340_v57 = vmul.f32 %v3232_v35, %v283_v55  ;;  %v3253_v60 = vadd.f32 %v3245_v50, %v355_v51 }
  0xb4   :  { %v354_v59 = vadd.f32 %v338_v54, %v253_v53 }
  0xb5   :  { %v356_v61 = vadd.f32 %v340_v57, %v255_v56  ;;  %v287_v62 = vpop.permute.xlu0 %286  ;;  %v394_v4 = vmax.f32 %v3253_v60, 0.0 }
  0xb6   :  { %v3256_v63 = vadd.f32 %v3245_v50, %v354_v59  ;;  %v341_v16 = vmul.f32 %v3232_v35, %v287_v62 }
  0xb7   :  { %v3259_v0 = vadd.f32 %v3245_v50, %v356_v61  ;;  %v95_v1 = vpop.permute.xlu1 %94 }
  0xb8   :  { %v393_v3 = vmax.f32 %v3256_v63, 0.0  ;;  %v156_v21 = vmul.f32 %v3225_v31, %v95_v1 }
  0xb9   :  { %v395_v5 = vmax.f32 %v3259_v0, 0.0  ;;  %v299_v6 = vpop.permute.xlu0 %298 }
  0xba   :  { %v408_v7 = vpack.c.bf16 %v393_v3, %v392_v2  ;;  %v344_v23 = vmul.f32 %v3232_v35, %v299_v6  ;;  %v257_v28 = vadd.f32 %v241_v20, %v156_v21 }
  0xbb   :  { %v409_v8 = vpack.c.bf16 %v395_v5, %v394_v4 }
  0xbc   :  { %v186_v9 = vpop.permute.xlu1 %185  ;;  %2689 = vmatprep.mubr.msk.bf16.mxu0 %vm439_vm0, %v408_v7 }
  0xbd   :  { %2690 = vmatmul.mubr.msk.bf16.vlgmr.msra.gmra.mrb[0].mxu0 %vm439_vm0, %v409_v8  ;;  %v307_v10 = vpop.permute.xlu0 %306  ;;  %v240_v15 = vmul.f32 %v3220_v30, %v186_v9 }
  0xbe   :  { %v346_v62 = vmul.f32 %v3232_v35, %v307_v10 }
  0xc1   :  { %v100_v11 = vpop.permute.xlu1 %99 }
  0xc2   :  { %v90_v12 = vpop.permute.xlu0 %89  ;;  %v157_v29 = vmul.f32 %v3225_v31, %v100_v11 }
  0xc3   :  { %v155_v14 = vmul.f32 %v3225_v31, %v90_v12 }
  0xc4   :  { %v258_v38 = vadd.f32 %v242_v27, %v157_v29 }
  0xc5   :  { %v105_v13 = vpop.permute.xlu1 %104  ;;  %v256_v17 = vadd.f32 %v240_v15, %v155_v14 }
  0xc6   :  { %v158_v22 = vmul.f32 %v3225_v31, %v105_v13  ;;  %v115_v52 = vpop.permute.xlu0 %114 }
  0xc7   :  { %v357_v24 = vadd.f32 %v341_v16, %v256_v17  ;;  %v160_v61 = vmul.f32 %v3225_v31, %v115_v52 }
  0xc9   :  { %v3279_v34 = vadd.f32 %v3245_v50, %v357_v24 }
  0xca   :  { %v198_v18 = vpop.permute.xlu1 %197  ;;  %v120_v54 = vpop.permute.xlu0 %119 }
  0xcb   :  { %v243_v19 = vmul.f32 %v3220_v30, %v198_v18  ;;  %v396_v42 = vmax.f32 %v3279_v34, 0.0  ;;  %v161_v7 = vmul.f32 %v3225_v31, %v120_v54 }
  0xcd   :  { %v259_v25 = vadd.f32 %v243_v19, %v158_v22 }
  0xce   :  { %v130_v57 = vpop.permute.xlu0 %129 }
  0xcf   :  { %v291_v26 = vpop.permute.xlu1 %290  ;;  %v360_v32 = vadd.f32 %v344_v23, %v259_v25 }
  0xd0   :  { %v342_v33 = vmul.f32 %v3232_v35, %v291_v26 }
  0xd1   :  { %v3287_v40 = vadd.f32 %v3245_v50, %v360_v32 }
  0xd2   :  { %v358_v36 = vadd.f32 %v342_v33, %v257_v28 }
  0xd3   :  { %v295_v37 = vpop.permute.xlu1 %294  ;;  %v399_v48 = vmax.f32 %v3287_v40, 0.0  ;;  %v210_v3 = vpop.permute.xlu0 %209 }
  0xd4   :  { %v3282_v39 = vadd.f32 %v3245_v50, %v358_v36  ;;  %v343_v41 = vmul.f32 %v3232_v35, %v295_v37  ;;  %v246_v8 = vmul.f32 %v3220_v30, %v210_v3  ;;  %v2996_v3 = vld [vmem:[#allocation3 + $0x8] sm:$0xff]  }
  0xd6   :  { %v397_v43 = vmax.f32 %v3282_v39, 0.0  ;;  %v359_v44 = vadd.f32 %v343_v41, %v258_v38  ;;  %v262_v14 = vadd.f32 %v246_v8, %v161_v7 }
  0xd7   :  { %v222_v37 = vpop.permute.xlu0 %221 }
  0xd8   :  { %v3291_v45 = vadd.f32 %v3245_v50, %v359_v44  ;;  %v110_v46 = vpop.permute.xlu1 %109  ;;  %v410_v47 = vpack.c.bf16 %v397_v43, %v396_v42 }
  0xd9   :  { %v159_v5 = vmul.f32 %v3225_v31, %v110_v46 }
  0xda   :  { %v398_v49 = vmax.f32 %v3291_v45, 0.0  ;;  %2693 = vmatprep.mubr.msk.bf16.mxu0 %vm439_vm0, %v410_v47 }
  0xdb   :  { %v226_v42 = vpop.permute.xlu0 %225 }
  0xdc   :  { %v411_v51 = vpack.c.bf16 %v399_v48, %v398_v49  ;;  %v163_v48 = vmul.f32 %v3225_v31, %v130_v57 }
  0xdd   :  { %v202_v53 = vpop.permute.xlu1 %201 }
  0xde   :  { %2694 = vmatmul.mubr.msk.bf16.gmra.mrb[4].mxu0 %vm439_vm0, %v411_v51  ;;  %v244_v4 = vmul.f32 %v3220_v30, %v202_v53 }
  0xe0   :  { %v260_v11 = vadd.f32 %v244_v4, %v159_v5  ;;  %v319_v47 = vpop.permute.xlu0 %318  ;;  %v250_v5 = vmul.f32 %v3220_v30, %v226_v42 }
  0xe1   :  { %v206_v55 = vpop.permute.xlu1 %205  ;;  %v349_v51 = vmul.f32 %v3232_v35, %v319_v47 }
  0xe2   :  { %v245_v59 = vmul.f32 %v3220_v30, %v206_v55  ;;  %v2995_v55 = vld [vmem:[#allocation3] sm:$0xff]  }
  0xe3   :  { %2705 = vmatprep.subr.bf16.mxu1 %v2995_v55 }
  0xe4   :  { %v261_v1 = vadd.f32 %v245_v59, %v160_v61  ;;  %v331_v54 = vpop.permute.xlu0 %330 }
  0xe6   :  { %v125_v56 = vpop.permute.xlu1 %124  ;;  %v362_v6 = vadd.f32 %v346_v62, %v261_v1 }
  0xe7   :  { %v162_v19 = vmul.f32 %v3225_v31, %v125_v56  ;;  %v249_v56 = vmul.f32 %v3220_v30, %v222_v37 }
  0xe8   :  { %v3306_v10 = vadd.f32 %v3245_v50, %v362_v6 }
  0xea   :  { %v401_v22 = vmax.f32 %v3306_v10, 0.0 }
  0xeb   :  { %v214_v2 = vpop.permute.xlu1 %213 }
  0xec   :  { %v247_v16 = vmul.f32 %v3220_v30, %v214_v2  ;;  %v352_v2 = vmul.f32 %v3232_v35, %v331_v54 }
  0xee   :  { %v263_v24 = vadd.f32 %v247_v16, %v162_v19 }
  0xf0   :  { %v303_v9 = vpop.permute.xlu1 %302 }
  0xf1   :  { %v345_v12 = vmul.f32 %v3232_v35, %v303_v9 }
  0xf3   :  { %v361_v13 = vadd.f32 %v345_v12, %v260_v11 }
  0xf4   :  { %v311_v15 = vpop.permute.xlu1 %310 }
  0xf5   :  { %v3310_v17 = vadd.f32 %v3245_v50, %v361_v13  ;;  %v347_v18 = vmul.f32 %v3232_v35, %v311_v15 }
  0xf7   :  { %v363_v20 = vadd.f32 %v347_v18, %v262_v14  ;;  %v400_v21 = vmax.f32 %v3310_v17, 0.0 }
  0xf8   :  { %v315_v23 = vpop.permute.xlu1 %314 }
  0xf9   :  { %v348_v25 = vmul.f32 %v3232_v35, %v315_v23  ;;  %v412_v26 = vpack.c.bf16 %v401_v22, %v400_v21  ;;  %v3318_v27 = vadd.f32 %v3245_v50, %v363_v20 }
  0xfb   :  { %v364_v28 = vadd.f32 %v348_v25, %v263_v24  ;;  %2697 = vmatprep.mubr.msk.bf16.mxu1 %vm439_vm0, %v412_v26  ;;  %v402_v32 = vmax.f32 %v3318_v27, 0.0 }
  0xfd   :  { %v3322_v29 = vadd.f32 %v3245_v50, %v364_v28  ;;  %v135_v33 = vpop.permute.xlu1 %134 }
  0xfe   :  { %v164_v59 = vmul.f32 %v3225_v31, %v135_v33 }
  0xff   :  { %v403_v36 = vmax.f32 %v3322_v29, 0.0 }
 0x100   :  { %v265_v4 = vadd.f32 %v249_v56, %v164_v59 }
 0x101   :  { %v413_v38 = vpack.c.bf16 %v403_v36, %v402_v32 }
 0x102   :  { %v218_v41 = vpop.permute.xlu1 %217 }
 0x103   :  { %2698 = vmatmul.mubr.msk.bf16.vlgmr.msra.gmra.mrb[0].mxu1 %vm439_vm0, %v413_v38  ;;  %v248_v46 = vmul.f32 %v3220_v30, %v218_v41 }
 0x104   :  { %2706 = vmatpush3.bf16.msra.mxu1 %v2995_v55 }
 0x105   :  { %v264_v49 = vadd.f32 %v248_v46, %v163_v48  ;;  %2707 = vmatprep.subr.bf16.mxu1 %v2996_v3 }
 0x107   :  { %v140_v43 = vpop.permute.xlu1 %139  ;;  %v365_v62 = vadd.f32 %v349_v51, %v264_v49 }
 0x108   :  { %v165_v6 = vmul.f32 %v3225_v31, %v140_v43  ;;  %2708 = vmatpush3.bf16.msra.mxu1 %v2996_v3 }
 0x109   :  { %v3339_v8 = vadd.f32 %v3245_v50, %v365_v62 }
 0x10a   :  { %v266_v13 = vadd.f32 %v250_v5, %v165_v6 }
 0x10b   :  { %v145_v44 = vpop.permute.xlu1 %144 }
 0x10c   :  { %v166_v61 = vmul.f32 %v3225_v31, %v145_v44 }
 0x110   :  { %v230_v52 = vpop.permute.xlu1 %229 }
 0x111   :  { %v251_v53 = vmul.f32 %v3220_v30, %v230_v52  ;;  %v404_v30 = vmax.f32 %v3339_v8, 0.0 }
 0x113   :  { %v267_v1 = vadd.f32 %v251_v53, %v166_v61 }
 0x115   :  { %v323_v57 = vpop.permute.xlu1 %322  ;;  %v368_v9 = vadd.f32 %v352_v2, %v267_v1 }
 0x116   :  { %v350_v7 = vmul.f32 %v3232_v35, %v323_v57 }
 0x117   :  { %v3347_v31 = vadd.f32 %v3245_v50, %v368_v9 }
 0x118   :  { %v366_v11 = vadd.f32 %v350_v7, %v265_v4 }
 0x119   :  { %v327_v12 = vpop.permute.xlu1 %326  ;;  %v407_v21 = vmax.f32 %v3347_v31, 0.0 }
 0x11a   :  { %v3342_v14 = vadd.f32 %v3245_v50, %v366_v11  ;;  %v351_v15 = vmul.f32 %v3232_v35, %v327_v12  ;;  %v2417_v35 = vld [vmem:[%s3895_s4] ss:$0 sm:$0xff] }
 0x11c   :  { %v405_v16 = vmax.f32 %v3342_v14, 0.0  ;;  %v367_v18 = vadd.f32 %v351_v15, %v266_v13 }
 0x11e   :  { %v3351_v19 = vadd.f32 %v3245_v50, %v367_v18  ;;  %v414_v20 = vpack.c.bf16 %v405_v16, %v404_v30  ;;  %v2997_v18 = vld [vmem:[%s3894_s3 + $0x10] sm:$0xff]  }
 0x11f   :  { %2725 = vmatprep.subr.bf16.mxu0 %v2997_v18 }
 0x120   :  { %v406_v22 = vmax.f32 %v3351_v19, 0.0  ;;  %2701 = vmatprep.mubr.msk.bf16.mxu1 %vm439_vm0, %v414_v20  ;;  %2726 = vmatpush3.bf16.msra.mxu0 %v2997_v18  ;;  %v2998_v20 = vld [vmem:[%s3894_s3 + $0x18] sm:$0xff]  }
 0x121   :  { %2727 = vmatprep.subr.bf16.mxu0 %v2998_v20 }
 0x122   :  { %v415_v23 = vpack.c.bf16 %v407_v21, %v406_v22 }
 0x124   :  { %2702 = vmatmul.mubr.msk.bf16.gmra.mrb[4].mxu1 %vm439_vm0, %v415_v23  ;;  %2728 = vmatpush3.bf16.msra.mxu0 %v2998_v20 }
 0x190   :  { %v2691_v24 = vpop.f32.mrb[0].mxu0 }
 0x191   :  { %v507_v25 = vadd.f32 %v2691_v24, %v2417_v35  ;;  %v498_v26 = vpop.f32.mrb[1].mxu0 }
 0x192   :  { %v499_v28 = vadd.f32 %v2417_v35, %v498_v26  ;;  %v2692_v50 = vpop.f32.mrb[2].mxu0 }
 0x193   :  { %v510_v33 = vadd.f32 %v2692_v50, %v2417_v35  ;;  %v501_v32 = vpop.f32.mrb[3].mxu0  ;;  %v563_v37 = vmax.f32 %v507_v25, 0.0 }
 0x194   :  { %v502_v36 = vadd.f32 %v2417_v35, %v501_v32  ;;  %v561_v41 = vmax.f32 %v499_v28, 0.0 }
 0x195   :  { %v564_v38 = vmax.f32 %v510_v33, 0.0 }
 0x196   :  { %v562_v42 = vmax.f32 %v502_v36, 0.0 }
 0x197   :  { %v578_v43 = vpack.c.bf16 %v564_v38, %v563_v37 }
 0x198   :  { %v577_v44 = vpack.c.bf16 %v562_v42, %v561_v41 }
 0x19a   :  { %2709 = vmatprep.mubr.msk.bf16.mxu1 %vm439_vm0, %v577_v44  ;;  %v3378_v44 = vld [vmem:[%s3897_s6] ss:$0 sm:$0xff] }
 0x19b   :  { %2710 = vmatmul.mubr.msk.bf16.vlgmr.msra.gmra.mrb[8].mxu1 %vm439_vm0, %v578_v43 }
 0x1b1   :  { %v2695_v46 = vpop.f32.mrb[4].mxu0 }
 0x1b2   :  { %v523_v47 = vadd.f32 %v2695_v46, %v2417_v35  ;;  %v514_v48 = vpop.f32.mrb[5].mxu0 }
 0x1b3   :  { %v515_v49 = vadd.f32 %v2417_v35, %v514_v48  ;;  %v2696_v51 = vpop.f32.mrb[6].mxu0 }
 0x1b4   :  { %v526_v52 = vadd.f32 %v2696_v51, %v2417_v35  ;;  %v517_v53 = vpop.f32.mrb[7].mxu0  ;;  %v567_v55 = vmax.f32 %v523_v47, 0.0 }
 0x1b5   :  { %v518_v54 = vadd.f32 %v2417_v35, %v517_v53  ;;  %v565_v59 = vmax.f32 %v515_v49, 0.0 }
 0x1b6   :  { %v568_v56 = vmax.f32 %v526_v52, 0.0 }
 0x1b7   :  { %v566_v61 = vmax.f32 %v518_v54, 0.0 }
 0x1b8   :  { %v580_v62 = vpack.c.bf16 %v568_v56, %v567_v55 }
 0x1b9   :  { %v579_v1 = vpack.c.bf16 %v566_v61, %v565_v59 }
 0x1bb   :  { %2713 = vmatprep.mubr.msk.bf16.mxu1 %vm439_vm0, %v579_v1 }
 0x1bc   :  { %2714 = vmatmul.mubr.msk.bf16.gmra.mrb[12].mxu1 %vm439_vm0, %v580_v62 }
 0x1d6   :  { %v2699_v2 = vpop.f32.mrb[0].mxu1 }
 0x1d7   :  { %v539_v57 = vadd.f32 %v2699_v2, %v2417_v35  ;;  %v530_v3 = vpop.f32.mrb[1].mxu1 }
 0x1d8   :  { %v531_v4 = vadd.f32 %v2417_v35, %v530_v3  ;;  %v2700_v5 = vpop.f32.mrb[2].mxu1 }
 0x1d9   :  { %v542_v6 = vadd.f32 %v2700_v5, %v2417_v35  ;;  %v533_v7 = vpop.f32.mrb[3].mxu1  ;;  %v571_v11 = vmax.f32 %v539_v57, 0.0 }
 0x1da   :  { %v534_v9 = vadd.f32 %v2417_v35, %v533_v7  ;;  %v569_v13 = vmax.f32 %v531_v4, 0.0 }
 0x1db   :  { %v572_v12 = vmax.f32 %v542_v6, 0.0 }
 0x1dc   :  { %v570_v15 = vmax.f32 %v534_v9, 0.0 }
 0x1dd   :  { %v582_v30 = vpack.c.bf16 %v572_v12, %v571_v11 }
 0x1de   :  { %v581_v16 = vpack.c.bf16 %v570_v15, %v569_v13 }
 0x1e0   :  { %2717 = vmatprep.mubr.msk.bf16.mxu1 %vm439_vm0, %v581_v16 }
 0x1e1   :  { %2718 = vmatmul.mubr.msk.bf16.gmra.mrb[16].mxu1 %vm439_vm0, %v582_v30 }
 0x1f7   :  { %v2703_v21 = vpop.f32.mrb[4].mxu1 }
 0x1f8   :  { %v555_v22 = vadd.f32 %v2703_v21, %v2417_v35  ;;  %v546_v23 = vpop.f32.mrb[5].mxu1 }
 0x1f9   :  { %v547_v24 = vadd.f32 %v2417_v35, %v546_v23  ;;  %v2704_v25 = vpop.f32.mrb[6].mxu1 }
 0x1fa   :  { %v558_v26 = vadd.f32 %v2704_v25, %v2417_v35  ;;  %v549_v28 = vpop.f32.mrb[7].mxu1  ;;  %v575_v33 = vmax.f32 %v555_v22, 0.0 }
 0x1fb   :  { %v550_v50 = vadd.f32 %v2417_v35, %v549_v28  ;;  %v573_v36 = vmax.f32 %v547_v24, 0.0 }
 0x1fc   :  { %v576_v32 = vmax.f32 %v558_v26, 0.0 }
 0x1fd   :  { %v574_v37 = vmax.f32 %v550_v50, 0.0 }
 0x1fe   :  { %v584_v38 = vpack.c.bf16 %v576_v32, %v575_v33 }
 0x1ff   :  { %v583_v41 = vpack.c.bf16 %v574_v37, %v573_v36  ;;  %v3000_v36 = vld [vmem:[#allocation3 + $0x18] sm:$0xff]  }
 0x201   :  { %2721 = vmatprep.mubr.msk.bf16.mxu1 %vm439_vm0, %v583_v41 }
 0x202   :  { %2722 = vmatmul.mubr.msk.bf16.gmra.mrb[20].mxu1 %vm439_vm0, %v584_v38 }
 0x26e   :  { %v2711_v42 = vpop.f32.mrb[8].mxu1 }
 0x26f   :  { %v724_v43 = vadd.f32 %v2711_v42, %v3253_v60  ;;  %v659_v46 = vpop.f32.mrb[9].mxu1 }
 0x270   :  { %v722_v35 = vadd.f32 %v659_v46, %v3250_v58  ;;  %v2712_v47 = vpop.f32.mrb[10].mxu1 }
 0x271   :  { %v725_v48 = vadd.f32 %v2712_v47, %v3259_v0  ;;  %v662_v49 = vpop.f32.mrb[11].mxu1  ;;  %v3387_v53 = vadd.f32 %v3378_v44, %v724_v43 }
 0x272   :  { %v3383_v51 = vadd.f32 %v3378_v44, %v722_v35  ;;  %v723_v52 = vadd.f32 %v662_v49, %v3256_v63 }
 0x273   :  { %v3390_v60 = vadd.f32 %v3378_v44, %v725_v48  ;;  %v763_v56 = vmax.f32 %v3387_v53, 0.0 }
 0x274   :  { %v3393_v54 = vadd.f32 %v3378_v44, %v723_v52  ;;  %v761_v55 = vmax.f32 %v3383_v51, 0.0 }
 0x275   :  { %v764_v58 = vmax.f32 %v3390_v60, 0.0 }
 0x276   :  { %v762_v0 = vmax.f32 %v3393_v54, 0.0 }
 0x277   :  { %v778_v61 = vpack.c.bf16 %v764_v58, %v763_v56 }
 0x278   :  { %v777_v59 = vpack.c.bf16 %v762_v0, %v761_v55 }
 0x27a   :  { %2729 = vmatprep.mubr.msk.bf16.mxu0 %vm439_vm0, %v777_v59 }
 0x27b   :  { %2730 = vmatmul.mubr.msk.bf16.vlgmr.msra.gmra.mrb[8].mxu0 %vm439_vm0, %v778_v61 }
 0x28f   :  { %v2715_v63 = vpop.f32.mrb[12].mxu1 }
 0x290   :  { %v728_v62 = vadd.f32 %v2715_v63, %v3291_v45  ;;  %v675_v1 = vpop.f32.mrb[13].mxu1 }
 0x291   :  { %v726_v2 = vadd.f32 %v675_v1, %v3279_v34  ;;  %v2716_v57 = vpop.f32.mrb[14].mxu1 }
 0x292   :  { %v729_v3 = vadd.f32 %v2716_v57, %v3287_v40  ;;  %v678_v4 = vpop.f32.mrb[15].mxu1  ;;  %v3409_v7 = vadd.f32 %v3378_v44, %v728_v62 }
 0x293   :  { %v3405_v5 = vadd.f32 %v3378_v44, %v726_v2  ;;  %v727_v6 = vadd.f32 %v678_v4, %v3282_v39 }
 0x294   :  { %v3412_v9 = vadd.f32 %v3378_v44, %v729_v3  ;;  %v767_v12 = vmax.f32 %v3409_v7, 0.0 }
 0x295   :  { %v3415_v45 = vadd.f32 %v3378_v44, %v727_v6  ;;  %v765_v11 = vmax.f32 %v3405_v5, 0.0 }
 0x296   :  { %v768_v34 = vmax.f32 %v3412_v9, 0.0 }
 0x297   :  { %v766_v40 = vmax.f32 %v3415_v45, 0.0 }
 0x298   :  { %v780_v15 = vpack.c.bf16 %v768_v34, %v767_v12 }
 0x299   :  { %v779_v13 = vpack.c.bf16 %v766_v40, %v765_v11 }
 0x29b   :  { %2733 = vmatprep.mubr.msk.bf16.mxu0 %vm439_vm0, %v779_v13 }
 0x29c   :  { %2734 = vmatmul.mubr.msk.bf16.gmra.mrb[12].mxu0 %vm439_vm0, %v780_v15 }
 0x2b4   :  { %v2719_v39 = vpop.f32.mrb[16].mxu1 }
 0x2b5   :  { %v732_v30 = vadd.f32 %v2719_v39, %v3318_v27  ;;  %v691_v16 = vpop.f32.mrb[17].mxu1 }
 0x2b6   :  { %v730_v18 = vadd.f32 %v691_v16, %v3310_v17  ;;  %v2720_v20 = vpop.f32.mrb[18].mxu1 }
 0x2b7   :  { %v733_v21 = vadd.f32 %v2720_v20, %v3322_v29  ;;  %v694_v22 = vpop.f32.mrb[19].mxu1  ;;  %v3431_v25 = vadd.f32 %v3378_v44, %v732_v30 }
 0x2b8   :  { %v3427_v23 = vadd.f32 %v3378_v44, %v730_v18  ;;  %v731_v24 = vadd.f32 %v694_v22, %v3306_v10  ;;  %v2999_v10 = vld [vmem:[#allocation3 + $0x10] sm:$0xff]  }
 0x2b9   :  { %v3434_v26 = vadd.f32 %v3378_v44, %v733_v21  ;;  %v771_v50 = vmax.f32 %v3431_v25, 0.0  ;;  %2745 = vmatprep.subr.bf16.mxu1 %v2999_v10 }
 0x2ba   :  { %v3437_v27 = vadd.f32 %v3378_v44, %v731_v24  ;;  %v769_v28 = vmax.f32 %v3427_v23, 0.0  ;;  %2746 = vmatpush3.bf16.msra.mxu1 %v2999_v10 }
 0x2bb   :  { %v772_v17 = vmax.f32 %v3434_v26, 0.0  ;;  %2747 = vmatprep.subr.bf16.mxu1 %v3000_v36 }
 0x2bc   :  { %v770_v29 = vmax.f32 %v3437_v27, 0.0 }
 0x2bd   :  { %v782_v32 = vpack.c.bf16 %v772_v17, %v771_v50 }
 0x2be   :  { %v781_v33 = vpack.c.bf16 %v770_v29, %v769_v28  ;;  %2748 = vmatpush3.bf16.msra.mxu1 %v3000_v36 }
 0x2c0   :  { %2737 = vmatprep.mubr.msk.bf16.mxu0 %vm439_vm0, %v781_v33 }
 0x2c1   :  { %2738 = vmatmul.mubr.msk.bf16.gmra.mrb[16].mxu0 %vm439_vm0, %v782_v32 }
 0x2d5   :  { %v2723_v37 = vpop.f32.mrb[20].mxu1 }
 0x2d6   :  { %v736_v38 = vadd.f32 %v2723_v37, %v3351_v19  ;;  %v707_v41 = vpop.f32.mrb[21].mxu1 }
 0x2d7   :  { %v734_v42 = vadd.f32 %v707_v41, %v3339_v8  ;;  %v2724_v43 = vpop.f32.mrb[22].mxu1 }
 0x2d8   :  { %v737_v46 = vadd.f32 %v2724_v43, %v3347_v31  ;;  %v710_v35 = vpop.f32.mrb[23].mxu1  ;;  %v3453_v49 = vadd.f32 %v3378_v44, %v736_v38 }
 0x2d9   :  { %v3449_v47 = vadd.f32 %v3378_v44, %v734_v42  ;;  %v735_v48 = vadd.f32 %v710_v35, %v3342_v14  ;;  %v2444_v14 = vld [vmem:[%s3895_s4 + $0x1] ss:$0 sm:$0xff] }
 0x2da   :  { %v3456_v52 = vadd.f32 %v3378_v44, %v737_v46  ;;  %v775_v55 = vmax.f32 %v3453_v49, 0.0 }
 0x2db   :  { %v3459_v19 = vadd.f32 %v3378_v44, %v735_v48  ;;  %v773_v58 = vmax.f32 %v3449_v47, 0.0 }
 0x2dc   :  { %v776_v8 = vmax.f32 %v3456_v52, 0.0 }
 0x2dd   :  { %v774_v31 = vmax.f32 %v3459_v19, 0.0 }
 0x2de   :  { %v784_v56 = vpack.c.bf16 %v776_v8, %v775_v55 }
 0x2df   :  { %v783_v0 = vpack.c.bf16 %v774_v31, %v773_v58  ;;  %v3001_v58 = vld [vmem:[%s3894_s3 + $0x20] sm:$0xff]   ;;  %v3002_v31 = vld [vmem:[%s3894_s3 + $0x28] sm:$0xff]  }
 0x2e0   :  { %2765 = vmatprep.subr.bf16.mxu0 %v3001_v58 }
 0x2e1   :  { %2741 = vmatprep.mubr.msk.bf16.mxu0 %vm439_vm0, %v783_v0  ;;  %2766 = vmatpush3.bf16.msra.mxu0 %v3001_v58 }
 0x2e2   :  { %2742 = vmatmul.mubr.msk.bf16.gmra.mrb[20].mxu0 %vm439_vm0, %v784_v56  ;;  %2767 = vmatprep.subr.bf16.mxu0 %v3002_v31 }
 0x2e5   :  { %2768 = vmatpush3.bf16.msra.mxu0 %v3002_v31 }
 0x34e   :  { %v2731_v44 = vpop.f32.mrb[8].mxu0 }
 0x34f   :  { %v877_v59 = vadd.f32 %v2731_v44, %v2444_v14  ;;  %v868_v61 = vpop.f32.mrb[9].mxu0 }
 0x350   :  { %v869_v63 = vadd.f32 %v2444_v14, %v868_v61  ;;  %v2732_v62 = vpop.f32.mrb[10].mxu0 }
 0x351   :  { %v880_v1 = vadd.f32 %v2732_v62, %v2444_v14  ;;  %v871_v2 = vpop.f32.mrb[11].mxu0  ;;  %v933_v3 = vmax.f32 %v877_v59, 0.0 }
 0x352   :  { %v872_v57 = vadd.f32 %v2444_v14, %v871_v2  ;;  %v931_v6 = vmax.f32 %v869_v63, 0.0 }
 0x353   :  { %v934_v4 = vmax.f32 %v880_v1, 0.0 }
 0x354   :  { %v932_v34 = vmax.f32 %v872_v57, 0.0 }
 0x355   :  { %v948_v11 = vpack.c.bf16 %v934_v4, %v933_v3 }
 0x356   :  { %v947_v40 = vpack.c.bf16 %v932_v34, %v931_v6 }
 0x358   :  { %2749 = vmatprep.mubr.msk.bf16.mxu1 %vm439_vm0, %v947_v40  ;;  %v3488_v40 = vld [vmem:[%s3897_s6 + $0x1] ss:$0 sm:$0xff] }
 0x359   :  { %2750 = vmatmul.mubr.msk.bf16.vlgmr.msra.gmra.mrb[24].mxu1 %vm439_vm0, %v948_v11 }
 0x36f   :  { %v2735_v12 = vpop.f32.mrb[12].mxu0 }
 0x370   :  { %v893_v13 = vadd.f32 %v2735_v12, %v2444_v14  ;;  %v884_v15 = vpop.f32.mrb[13].mxu0 }
 0x371   :  { %v885_v39 = vadd.f32 %v2444_v14, %v884_v15  ;;  %v2736_v30 = vpop.f32.mrb[14].mxu0 }
 0x372   :  { %v896_v16 = vadd.f32 %v2736_v30, %v2444_v14  ;;  %v887_v18 = vpop.f32.mrb[15].mxu0  ;;  %v937_v21 = vmax.f32 %v893_v13, 0.0 }
 0x373   :  { %v888_v20 = vadd.f32 %v2444_v14, %v887_v18  ;;  %v935_v24 = vmax.f32 %v885_v39, 0.0 }
 0x374   :  { %v938_v22 = vmax.f32 %v896_v16, 0.0 }
 0x375   :  { %v936_v17 = vmax.f32 %v888_v20, 0.0 }
 0x376   :  { %v950_v28 = vpack.c.bf16 %v938_v22, %v937_v21 }
 0x377   :  { %v949_v29 = vpack.c.bf16 %v936_v17, %v935_v24 }
 0x379   :  { %2753 = vmatprep.mubr.msk.bf16.mxu1 %vm439_vm0, %v949_v29 }
 0x37a   :  { %2754 = vmatmul.mubr.msk.bf16.gmra.mrb[28].mxu1 %vm439_vm0, %v950_v28 }
 0x394   :  { %v2739_v50 = vpop.f32.mrb[16].mxu0 }
 0x395   :  { %v909_v33 = vadd.f32 %v2739_v50, %v2444_v14  ;;  %v900_v32 = vpop.f32.mrb[17].mxu0 }
 0x396   :  { %v901_v10 = vadd.f32 %v2444_v14, %v900_v32  ;;  %v2740_v36 = vpop.f32.mrb[18].mxu0 }
 0x397   :  { %v912_v37 = vadd.f32 %v2740_v36, %v2444_v14  ;;  %v903_v38 = vpop.f32.mrb[19].mxu0  ;;  %v941_v42 = vmax.f32 %v909_v33, 0.0 }
 0x398   :  { %v904_v41 = vadd.f32 %v2444_v14, %v903_v38  ;;  %v939_v46 = vmax.f32 %v901_v10, 0.0 }
 0x399   :  { %v942_v43 = vmax.f32 %v912_v37, 0.0 }
 0x39a   :  { %v940_v35 = vmax.f32 %v904_v41, 0.0 }
 0x39b   :  { %v952_v48 = vpack.c.bf16 %v942_v43, %v941_v42 }
 0x39c   :  { %v951_v8 = vpack.c.bf16 %v940_v35, %v939_v46 }
 0x39e   :  { %2757 = vmatprep.mubr.msk.bf16.mxu1 %vm439_vm0, %v951_v8 }
 0x39f   :  { %2758 = vmatmul.mubr.msk.bf16.gmra.mrb[32].mxu1 %vm439_vm0, %v952_v48 }
 0x3b5   :  { %v2743_v55 = vpop.f32.mrb[20].mxu0 }
 0x3b6   :  { %v925_v0 = vadd.f32 %v2743_v55, %v2444_v14  ;;  %v916_v56 = vpop.f32.mrb[21].mxu0 }
 0x3b7   :  { %v917_v44 = vadd.f32 %v2444_v14, %v916_v56  ;;  %v2744_v59 = vpop.f32.mrb[22].mxu0 }
 0x3b8   :  { %v928_v61 = vadd.f32 %v2744_v59, %v2444_v14  ;;  %v919_v63 = vpop.f32.mrb[23].mxu0  ;;  %v945_v1 = vmax.f32 %v925_v0, 0.0 }
 0x3b9   :  { %v920_v62 = vadd.f32 %v2444_v14, %v919_v63  ;;  %v943_v57 = vmax.f32 %v917_v44, 0.0 }
 0x3ba   :  { %v946_v2 = vmax.f32 %v928_v61, 0.0 }
 0x3bb   :  { %v944_v3 = vmax.f32 %v920_v62, 0.0 }
 0x3bc   :  { %v954_v4 = vpack.c.bf16 %v946_v2, %v945_v1 }
 0x3bd   :  { %v953_v6 = vpack.c.bf16 %v944_v3, %v943_v57  ;;  %v3004_v57 = vld [vmem:[#allocation3 + $0x28] sm:$0xff]  }
 0x3bf   :  { %2761 = vmatprep.mubr.msk.bf16.mxu1 %vm439_vm0, %v953_v6 }
 0x3c0   :  { %2762 = vmatmul.mubr.msk.bf16.gmra.mrb[36].mxu1 %vm439_vm0, %v954_v4 }
 0x42c   :  { %v2751_v34 = vpop.f32.mrb[24].mxu1 }
 0x42d   :  { %v1095_v11 = vadd.f32 %v2751_v34, %v3387_v53  ;;  %v1030_v12 = vpop.f32.mrb[25].mxu1 }
 0x42e   :  { %v1093_v14 = vadd.f32 %v1030_v12, %v3383_v51  ;;  %v2752_v13 = vpop.f32.mrb[26].mxu1 }
 0x42f   :  { %v1096_v15 = vadd.f32 %v2752_v13, %v3390_v60  ;;  %v1033_v39 = vpop.f32.mrb[27].mxu1  ;;  %v3497_v18 = vadd.f32 %v3488_v40, %v1095_v11 }
 0x430   :  { %v3493_v30 = vadd.f32 %v3488_v40, %v1093_v14  ;;  %v1094_v16 = vadd.f32 %v1033_v39, %v3393_v54 }
 0x431   :  { %v3500_v53 = vadd.f32 %v3488_v40, %v1096_v15  ;;  %v1135_v22 = vmax.f32 %v3497_v18, 0.0 }
 0x432   :  { %v3503_v20 = vadd.f32 %v3488_v40, %v1094_v16  ;;  %v1133_v21 = vmax.f32 %v3493_v30, 0.0 }
 0x433   :  { %v1136_v51 = vmax.f32 %v3500_v53, 0.0 }
 0x434   :  { %v1134_v60 = vmax.f32 %v3503_v20, 0.0 }
 0x435   :  { %v1150_v17 = vpack.c.bf16 %v1136_v51, %v1135_v22 }
 0x436   :  { %v1149_v24 = vpack.c.bf16 %v1134_v60, %v1133_v21 }
 0x438   :  { %2769 = vmatprep.mubr.msk.bf16.mxu0 %vm439_vm0, %v1149_v24 }
 0x439   :  { %2770 = vmatmul.mubr.msk.bf16.vlgmr.msra.gmra.mrb[24].mxu0 %vm439_vm0, %v1150_v17 }
 0x44d   :  { %v2755_v54 = vpop.f32.mrb[28].mxu1 }
 0x44e   :  { %v1099_v28 = vadd.f32 %v2755_v54, %v3409_v7  ;;  %v1046_v29 = vpop.f32.mrb[29].mxu1 }
 0x44f   :  { %v1097_v50 = vadd.f32 %v1046_v29, %v3405_v5  ;;  %v2756_v33 = vpop.f32.mrb[30].mxu1 }
 0x450   :  { %v1100_v32 = vadd.f32 %v2756_v33, %v3412_v9  ;;  %v1049_v10 = vpop.f32.mrb[31].mxu1  ;;  %v3519_v38 = vadd.f32 %v3488_v40, %v1099_v28 }
 0x451   :  { %v3515_v36 = vadd.f32 %v3488_v40, %v1097_v50  ;;  %v1098_v37 = vadd.f32 %v1049_v10, %v3415_v45 }
 0x452   :  { %v3522_v41 = vadd.f32 %v3488_v40, %v1100_v32  ;;  %v1139_v43 = vmax.f32 %v3519_v38, 0.0 }
 0x453   :  { %v3525_v7 = vadd.f32 %v3488_v40, %v1098_v37  ;;  %v1137_v42 = vmax.f32 %v3515_v36, 0.0 }
 0x454   :  { %v1140_v5 = vmax.f32 %v3522_v41, 0.0 }
 0x455   :  { %v1138_v9 = vmax.f32 %v3525_v7, 0.0 }
 0x456   :  { %v1152_v35 = vpack.c.bf16 %v1140_v5, %v1139_v43 }
 0x457   :  { %v1151_v46 = vpack.c.bf16 %v1138_v9, %v1137_v42 }
 0x459   :  { %2773 = vmatprep.mubr.msk.bf16.mxu0 %vm439_vm0, %v1151_v46 }
 0x45a   :  { %2774 = vmatmul.mubr.msk.bf16.gmra.mrb[28].mxu0 %vm439_vm0, %v1152_v35 }
 0x472   :  { %v2759_v45 = vpop.f32.mrb[32].mxu1 }
 0x473   :  { %v1103_v48 = vadd.f32 %v2759_v45, %v3431_v25  ;;  %v1062_v8 = vpop.f32.mrb[33].mxu1 }
 0x474   :  { %v1101_v58 = vadd.f32 %v1062_v8, %v3427_v23  ;;  %v2760_v31 = vpop.f32.mrb[34].mxu1 }
 0x475   :  { %v1104_v55 = vadd.f32 %v2760_v31, %v3434_v26  ;;  %v1065_v0 = vpop.f32.mrb[35].mxu1  ;;  %v3541_v59 = vadd.f32 %v3488_v40, %v1103_v48 }
 0x476   :  { %v3537_v56 = vadd.f32 %v3488_v40, %v1101_v58  ;;  %v1102_v44 = vadd.f32 %v1065_v0, %v3437_v27  ;;  %v3003_v27 = vld [vmem:[#allocation3 + $0x20] sm:$0xff]  }
 0x477   :  { %v3544_v61 = vadd.f32 %v3488_v40, %v1104_v55  ;;  %v1143_v62 = vmax.f32 %v3541_v59, 0.0  ;;  %2785 = vmatprep.subr.bf16.mxu1 %v3003_v27 }
 0x478   :  { %v3547_v25 = vadd.f32 %v3488_v40, %v1102_v44  ;;  %v1141_v63 = vmax.f32 %v3537_v56, 0.0  ;;  %2786 = vmatpush3.bf16.msra.mxu1 %v3003_v27 }
 0x479   :  { %v1144_v23 = vmax.f32 %v3544_v61, 0.0  ;;  %2787 = vmatprep.subr.bf16.mxu1 %v3004_v57 }
 0x47a   :  { %v1142_v26 = vmax.f32 %v3547_v25, 0.0 }
 0x47b   :  { %v1154_v2 = vpack.c.bf16 %v1144_v23, %v1143_v62 }
 0x47c   :  { %v1153_v1 = vpack.c.bf16 %v1142_v26, %v1141_v63  ;;  %2788 = vmatpush3.bf16.msra.mxu1 %v3004_v57 }
 0x47e   :  { %2777 = vmatprep.mubr.msk.bf16.mxu0 %vm439_vm0, %v1153_v1 }
 0x47f   :  { %2778 = vmatmul.mubr.msk.bf16.gmra.mrb[32].mxu0 %vm439_vm0, %v1154_v2 }
 0x493   :  { %v2763_v3 = vpop.f32.mrb[36].mxu1 }
 0x494   :  { %v1107_v4 = vadd.f32 %v2763_v3, %v3453_v49  ;;  %v1078_v6 = vpop.f32.mrb[37].mxu1 }
 0x495   :  { %v1105_v34 = vadd.f32 %v1078_v6, %v3449_v47  ;;  %v2764_v11 = vpop.f32.mrb[38].mxu1 }
 0x496   :  { %v1108_v12 = vadd.f32 %v2764_v11, %v3456_v52  ;;  %v1081_v14 = vpop.f32.mrb[39].mxu1  ;;  %v3563_v39 = vadd.f32 %v3488_v40, %v1107_v4 }
 0x497   :  { %v3559_v13 = vadd.f32 %v3488_v40, %v1105_v34  ;;  %v1106_v15 = vadd.f32 %v1081_v14, %v3459_v19  ;;  %v2472_v19 = vld [vmem:[%s3895_s4 + $0x2] ss:$0 sm:$0xff] }
 0x498   :  { %v3566_v16 = vadd.f32 %v3488_v40, %v1108_v12  ;;  %v1147_v21 = vmax.f32 %v3563_v39, 0.0 }
 0x499   :  { %v3569_v49 = vadd.f32 %v3488_v40, %v1106_v15  ;;  %v1145_v51 = vmax.f32 %v3559_v13, 0.0 }
 0x49a   :  { %v1148_v47 = vmax.f32 %v3566_v16, 0.0 }
 0x49b   :  { %v1146_v52 = vmax.f32 %v3569_v49, 0.0 }
 0x49c   :  { %v1156_v22 = vpack.c.bf16 %v1148_v47, %v1147_v21 }
 0x49d   :  { %v1155_v60 = vpack.c.bf16 %v1146_v52, %v1145_v51  ;;  %v3005_v51 = vld [vmem:[%s3894_s3 + $0x30] sm:$0xff]   ;;  %v3006_v52 = vld [vmem:[%s3894_s3 + $0x38] sm:$0xff]  }
 0x49e   :  { %2805 = vmatprep.subr.bf16.mxu0 %v3005_v51 }
 0x49f   :  { %2781 = vmatprep.mubr.msk.bf16.mxu0 %vm439_vm0, %v1155_v60  ;;  %2806 = vmatpush3.bf16.msra.mxu0 %v3005_v51 }
 0x4a0   :  { %2782 = vmatmul.mubr.msk.bf16.gmra.mrb[36].mxu0 %vm439_vm0, %v1156_v22  ;;  %2807 = vmatprep.subr.bf16.mxu0 %v3006_v52 }
 0x4a3   :  { %2808 = vmatpush3.bf16.msra.mxu0 %v3006_v52 }
 0x50c   :  { %v2771_v40 = vpop.f32.mrb[24].mxu0 }
 0x50d   :  { %v1249_v24 = vadd.f32 %v2771_v40, %v2472_v19  ;;  %v1240_v17 = vpop.f32.mrb[25].mxu0 }
 0x50e   :  { %v1241_v54 = vadd.f32 %v2472_v19, %v1240_v17  ;;  %v2772_v28 = vpop.f32.mrb[26].mxu0 }
 0x50f   :  { %v1252_v29 = vadd.f32 %v2772_v28, %v2472_v19  ;;  %v1243_v50 = vpop.f32.mrb[27].mxu0  ;;  %v1305_v32 = vmax.f32 %v1249_v24, 0.0 }
 0x510   :  { %v1244_v33 = vadd.f32 %v2472_v19, %v1243_v50  ;;  %v1303_v37 = vmax.f32 %v1241_v54, 0.0 }
 0x511   :  { %v1306_v10 = vmax.f32 %v1252_v29, 0.0 }
 0x512   :  { %v1304_v5 = vmax.f32 %v1244_v33, 0.0 }
 0x513   :  { %v1320_v42 = vpack.c.bf16 %v1306_v10, %v1305_v32 }
 0x514   :  { %v1319_v9 = vpack.c.bf16 %v1304_v5, %v1303_v37 }
 0x516   :  { %2789 = vmatprep.mubr.msk.bf16.mxu1 %vm439_vm0, %v1319_v9  ;;  %v3598_v9 = vld [vmem:[%s3897_s6 + $0x2] ss:$0 sm:$0xff] }
 0x517   :  { %2790 = vmatmul.mubr.msk.bf16.vlgmr.msra.gmra.mrb[40].mxu1 %vm439_vm0, %v1320_v42 }
 0x52d   :  { %v2775_v43 = vpop.f32.mrb[28].mxu0 }
 0x52e   :  { %v1265_v46 = vadd.f32 %v2775_v43, %v2472_v19  ;;  %v1256_v35 = vpop.f32.mrb[29].mxu0 }
 0x52f   :  { %v1257_v45 = vadd.f32 %v2472_v19, %v1256_v35  ;;  %v2776_v48 = vpop.f32.mrb[30].mxu0 }
 0x530   :  { %v1268_v8 = vadd.f32 %v2776_v48, %v2472_v19  ;;  %v1259_v58 = vpop.f32.mrb[31].mxu0  ;;  %v1309_v55 = vmax.f32 %v1265_v46, 0.0 }
 0x531   :  { %v1260_v31 = vadd.f32 %v2472_v19, %v1259_v58  ;;  %v1307_v44 = vmax.f32 %v1257_v45, 0.0 }
 0x532   :  { %v1310_v0 = vmax.f32 %v1268_v8, 0.0 }
 0x533   :  { %v1308_v23 = vmax.f32 %v1260_v31, 0.0 }
 0x534   :  { %v1322_v63 = vpack.c.bf16 %v1310_v0, %v1309_v55 }
 0x535   :  { %v1321_v26 = vpack.c.bf16 %v1308_v23, %v1307_v44 }
 0x537   :  { %2793 = vmatprep.mubr.msk.bf16.mxu1 %vm439_vm0, %v1321_v26 }
 0x538   :  { %2794 = vmatmul.mubr.msk.bf16.gmra.mrb[44].mxu1 %vm439_vm0, %v1322_v63 }
 0x552   :  { %v2779_v62 = vpop.f32.mrb[32].mxu0 }
 0x553   :  { %v1281_v1 = vadd.f32 %v2779_v62, %v2472_v19  ;;  %v1272_v2 = vpop.f32.mrb[33].mxu0 }
 0x554   :  { %v1273_v27 = vadd.f32 %v2472_v19, %v1272_v2  ;;  %v2780_v57 = vpop.f32.mrb[34].mxu0 }
 0x555   :  { %v1284_v3 = vadd.f32 %v2780_v57, %v2472_v19  ;;  %v1275_v4 = vpop.f32.mrb[35].mxu0  ;;  %v1313_v34 = vmax.f32 %v1281_v1, 0.0 }
 0x556   :  { %v1276_v6 = vadd.f32 %v2472_v19, %v1275_v4  ;;  %v1311_v12 = vmax.f32 %v1273_v27, 0.0 }
 0x557   :  { %v1314_v11 = vmax.f32 %v1284_v3, 0.0 }
 0x558   :  { %v1312_v14 = vmax.f32 %v1276_v6, 0.0 }
 0x559   :  { %v1324_v15 = vpack.c.bf16 %v1314_v11, %v1313_v34 }
 0x55a   :  { %v1323_v47 = vpack.c.bf16 %v1312_v14, %v1311_v12 }
 0x55c   :  { %2797 = vmatprep.mubr.msk.bf16.mxu1 %vm439_vm0, %v1323_v47 }
 0x55d   :  { %2798 = vmatmul.mubr.msk.bf16.gmra.mrb[48].mxu1 %vm439_vm0, %v1324_v15 }
 0x573   :  { %v2783_v21 = vpop.f32.mrb[36].mxu0 }
 0x574   :  { %v1297_v60 = vadd.f32 %v2783_v21, %v2472_v19  ;;  %v1288_v22 = vpop.f32.mrb[37].mxu0 }
 0x575   :  { %v1289_v40 = vadd.f32 %v2472_v19, %v1288_v22  ;;  %v2784_v24 = vpop.f32.mrb[38].mxu0 }
 0x576   :  { %v1300_v17 = vadd.f32 %v2784_v24, %v2472_v19  ;;  %v1291_v54 = vpop.f32.mrb[39].mxu0  ;;  %v1317_v29 = vmax.f32 %v1297_v60, 0.0 }
 0x577   :  { %v1292_v28 = vadd.f32 %v2472_v19, %v1291_v54  ;;  %v1315_v33 = vmax.f32 %v1289_v40, 0.0 }
 0x578   :  { %v1318_v50 = vmax.f32 %v1300_v17, 0.0 }
 0x579   :  { %v1316_v32 = vmax.f32 %v1292_v28, 0.0 }
 0x57a   :  { %v1326_v10 = vpack.c.bf16 %v1318_v50, %v1317_v29 }
 0x57b   :  { %v1325_v37 = vpack.c.bf16 %v1316_v32, %v1315_v33  ;;  %v3008_v33 = vld [vmem:[#allocation3 + $0x38] sm:$0xff]  }
 0x57d   :  { %2801 = vmatprep.mubr.msk.bf16.mxu1 %vm439_vm0, %v1325_v37 }
 0x57e   :  { %2802 = vmatmul.mubr.msk.bf16.gmra.mrb[52].mxu1 %vm439_vm0, %v1326_v10 }
 0x5ea   :  { %v2791_v5 = vpop.f32.mrb[40].mxu1 }
 0x5eb   :  { %v1467_v42 = vadd.f32 %v2791_v5, %v3497_v18  ;;  %v1402_v43 = vpop.f32.mrb[41].mxu1 }
 0x5ec   :  { %v1465_v19 = vadd.f32 %v1402_v43, %v3493_v30  ;;  %v2792_v46 = vpop.f32.mrb[42].mxu1 }
 0x5ed   :  { %v1468_v35 = vadd.f32 %v2792_v46, %v3500_v53  ;;  %v1405_v45 = vpop.f32.mrb[43].mxu1  ;;  %v3607_v58 = vadd.f32 %v3598_v9, %v1467_v42 }
 0x5ee   :  { %v3603_v48 = vadd.f32 %v3598_v9, %v1465_v19  ;;  %v1466_v8 = vadd.f32 %v1405_v45, %v3503_v20 }
 0x5ef   :  { %v3610_v18 = vadd.f32 %v3598_v9, %v1468_v35  ;;  %v1507_v0 = vmax.f32 %v3607_v58, 0.0 }
 0x5f0   :  { %v3613_v31 = vadd.f32 %v3598_v9, %v1466_v8  ;;  %v1505_v55 = vmax.f32 %v3603_v48, 0.0 }
 0x5f1   :  { %v1508_v30 = vmax.f32 %v3610_v18, 0.0 }
 0x5f2   :  { %v1506_v53 = vmax.f32 %v3613_v31, 0.0 }
 0x5f3   :  { %v1522_v23 = vpack.c.bf16 %v1508_v30, %v1507_v0 }
 0x5f4   :  { %v1521_v44 = vpack.c.bf16 %v1506_v53, %v1505_v55 }
 0x5f6   :  { %2809 = vmatprep.mubr.msk.bf16.mxu0 %vm439_vm0, %v1521_v44 }
 0x5f7   :  { %2810 = vmatmul.mubr.msk.bf16.vlgmr.msra.gmra.mrb[40].mxu0 %vm439_vm0, %v1522_v23 }
 0x60b   :  { %v2795_v20 = vpop.f32.mrb[44].mxu1 }
 0x60c   :  { %v1471_v63 = vadd.f32 %v2795_v20, %v3519_v38  ;;  %v1418_v26 = vpop.f32.mrb[45].mxu1 }
 0x60d   :  { %v1469_v62 = vadd.f32 %v1418_v26, %v3515_v36  ;;  %v2796_v1 = vpop.f32.mrb[46].mxu1 }
 0x60e   :  { %v1472_v2 = vadd.f32 %v2796_v1, %v3522_v41  ;;  %v1421_v27 = vpop.f32.mrb[47].mxu1  ;;  %v3629_v4 = vadd.f32 %v3598_v9, %v1471_v63 }
 0x60f   :  { %v3625_v57 = vadd.f32 %v3598_v9, %v1469_v62  ;;  %v1470_v3 = vadd.f32 %v1421_v27, %v3525_v7 }
 0x610   :  { %v3632_v6 = vadd.f32 %v3598_v9, %v1472_v2  ;;  %v1511_v11 = vmax.f32 %v3629_v4, 0.0 }
 0x611   :  { %v3635_v38 = vadd.f32 %v3598_v9, %v1470_v3  ;;  %v1509_v34 = vmax.f32 %v3625_v57, 0.0 }
 0x612   :  { %v1512_v36 = vmax.f32 %v3632_v6, 0.0 }
 0x613   :  { %v1510_v41 = vmax.f32 %v3635_v38, 0.0 }
 0x614   :  { %v1524_v14 = vpack.c.bf16 %v1512_v36, %v1511_v11 }
 0x615   :  { %v1523_v12 = vpack.c.bf16 %v1510_v41, %v1509_v34 }
 0x617   :  { %2813 = vmatprep.mubr.msk.bf16.mxu0 %vm439_vm0, %v1523_v12 }
 0x618   :  { %2814 = vmatmul.mubr.msk.bf16.gmra.mrb[44].mxu0 %vm439_vm0, %v1524_v14 }
 0x630   :  { %v2799_v7 = vpop.f32.mrb[48].mxu1 }
 0x631   :  { %v1475_v15 = vadd.f32 %v2799_v7, %v3541_v59  ;;  %v1434_v47 = vpop.f32.mrb[49].mxu1 }
 0x632   :  { %v1473_v51 = vadd.f32 %v1434_v47, %v3537_v56  ;;  %v2800_v52 = vpop.f32.mrb[50].mxu1 }
 0x633   :  { %v1476_v21 = vadd.f32 %v2800_v52, %v3544_v61  ;;  %v1437_v60 = vpop.f32.mrb[51].mxu1  ;;  %v3651_v24 = vadd.f32 %v3598_v9, %v1475_v15 }
 0x634   :  { %v3647_v22 = vadd.f32 %v3598_v9, %v1473_v51  ;;  %v1474_v40 = vadd.f32 %v1437_v60, %v3547_v25  ;;  %v3007_v25 = vld [vmem:[#allocation3 + $0x30] sm:$0xff]  }
 0x635   :  { %v3654_v17 = vadd.f32 %v3598_v9, %v1476_v21  ;;  %v1515_v28 = vmax.f32 %v3651_v24, 0.0  ;;  %2825 = vmatprep.subr.bf16.mxu1 %v3007_v25 }
 0x636   :  { %v3657_v59 = vadd.f32 %v3598_v9, %v1474_v40  ;;  %v1513_v54 = vmax.f32 %v3647_v22, 0.0  ;;  %2826 = vmatpush3.bf16.msra.mxu1 %v3007_v25 }
 0x637   :  { %v1516_v56 = vmax.f32 %v3654_v17, 0.0  ;;  %2827 = vmatprep.subr.bf16.mxu1 %v3008_v33 }
 0x638   :  { %v1514_v61 = vmax.f32 %v3657_v59, 0.0 }
 0x639   :  { %v1526_v50 = vpack.c.bf16 %v1516_v56, %v1515_v28 }
 0x63a   :  { %v1525_v29 = vpack.c.bf16 %v1514_v61, %v1513_v54  ;;  %2828 = vmatpush3.bf16.msra.mxu1 %v3008_v33 }
 0x63c   :  { %2817 = vmatprep.mubr.msk.bf16.mxu0 %vm439_vm0, %v1525_v29 }
 0x63d   :  { %2818 = vmatmul.mubr.msk.bf16.gmra.mrb[48].mxu0 %vm439_vm0, %v1526_v50 }
 0x651   :  { %v2803_v32 = vpop.f32.mrb[52].mxu1 }
 0x652   :  { %v1479_v10 = vadd.f32 %v2803_v32, %v3563_v39  ;;  %v1450_v37 = vpop.f32.mrb[53].mxu1 }
 0x653   :  { %v1477_v5 = vadd.f32 %v1450_v37, %v3559_v13  ;;  %v2804_v42 = vpop.f32.mrb[54].mxu1 }
 0x654   :  { %v1480_v43 = vadd.f32 %v2804_v42, %v3566_v16  ;;  %v1453_v19 = vpop.f32.mrb[55].mxu1  ;;  %v3673_v45 = vadd.f32 %v3598_v9, %v1479_v10 }
 0x655   :  { %v3669_v46 = vadd.f32 %v3598_v9, %v1477_v5  ;;  %v1478_v35 = vadd.f32 %v1453_v19, %v3569_v49  ;;  %v2500_v49 = vld [vmem:[%s3895_s4 + $0x3] ss:$0 sm:$0xff] }
 0x656   :  { %v3676_v8 = vadd.f32 %v3598_v9, %v1480_v43  ;;  %v1519_v55 = vmax.f32 %v3673_v45, 0.0 }
 0x657   :  { %v3679_v39 = vadd.f32 %v3598_v9, %v1478_v35  ;;  %v1517_v30 = vmax.f32 %v3669_v46, 0.0 }
 0x658   :  { %v1520_v13 = vmax.f32 %v3676_v8, 0.0 }
 0x659   :  { %v1518_v16 = vmax.f32 %v3679_v39, 0.0 }
 0x65a   :  { %v1528_v0 = vpack.c.bf16 %v1520_v13, %v1519_v55 }
 0x65b   :  { %v1527_v53 = vpack.c.bf16 %v1518_v16, %v1517_v30  ;;  %v3009_v30 = vld [vmem:[%s3894_s3 + $0x40] sm:$0xff]   ;;  %v3010_v16 = vld [vmem:[%s3894_s3 + $0x48] sm:$0xff]  }
 0x65c   :  { %2845 = vmatprep.subr.bf16.mxu0 %v3009_v30 }
 0x65d   :  { %2821 = vmatprep.mubr.msk.bf16.mxu0 %vm439_vm0, %v1527_v53  ;;  %2846 = vmatpush3.bf16.msra.mxu0 %v3009_v30 }
 0x65e   :  { %2822 = vmatmul.mubr.msk.bf16.gmra.mrb[52].mxu0 %vm439_vm0, %v1528_v0  ;;  %2847 = vmatprep.subr.bf16.mxu0 %v3010_v16 }
 0x661   :  { %2848 = vmatpush3.bf16.msra.mxu0 %v3010_v16 }
 0x6ca   :  { %v2811_v9 = vpop.f32.mrb[40].mxu0 }
 0x6cb   :  { %v1621_v44 = vadd.f32 %v2811_v9, %v2500_v49  ;;  %v1612_v23 = vpop.f32.mrb[41].mxu0 }
 0x6cc   :  { %v1613_v20 = vadd.f32 %v2500_v49, %v1612_v23  ;;  %v2812_v63 = vpop.f32.mrb[42].mxu0 }
 0x6cd   :  { %v1624_v26 = vadd.f32 %v2812_v63, %v2500_v49  ;;  %v1615_v62 = vpop.f32.mrb[43].mxu0  ;;  %v1677_v2 = vmax.f32 %v1621_v44, 0.0 }
 0x6ce   :  { %v1616_v1 = vadd.f32 %v2500_v49, %v1615_v62  ;;  %v1675_v3 = vmax.f32 %v1613_v20, 0.0 }
 0x6cf   :  { %v1678_v27 = vmax.f32 %v1624_v26, 0.0 }
 0x6d0   :  { %v1676_v36 = vmax.f32 %v1616_v1, 0.0 }
 0x6d1   :  { %v1692_v34 = vpack.c.bf16 %v1678_v27, %v1677_v2 }
 0x6d2   :  { %v1691_v41 = vpack.c.bf16 %v1676_v36, %v1675_v3 }
 0x6d4   :  { %2829 = vmatprep.mubr.msk.bf16.mxu1 %vm439_vm0, %v1691_v41  ;;  %v3708_v41 = vld [vmem:[%s3897_s6 + $0x3] ss:$0 sm:$0xff] }
 0x6d5   :  { %2830 = vmatmul.mubr.msk.bf16.vlgmr.msra.gmra.mrb[56].mxu1 %vm439_vm0, %v1692_v34 }
 0x6eb   :  { %v2815_v11 = vpop.f32.mrb[44].mxu0 }
 0x6ec   :  { %v1637_v12 = vadd.f32 %v2815_v11, %v2500_v49  ;;  %v1628_v14 = vpop.f32.mrb[45].mxu0 }
 0x6ed   :  { %v1629_v7 = vadd.f32 %v2500_v49, %v1628_v14  ;;  %v2816_v15 = vpop.f32.mrb[46].mxu0 }
 0x6ee   :  { %v1640_v47 = vadd.f32 %v2816_v15, %v2500_v49  ;;  %v1631_v51 = vpop.f32.mrb[47].mxu0  ;;  %v1681_v21 = vmax.f32 %v1637_v12, 0.0 }
 0x6ef   :  { %v1632_v52 = vadd.f32 %v2500_v49, %v1631_v51  ;;  %v1679_v40 = vmax.f32 %v1629_v7, 0.0 }
 0x6f0   :  { %v1682_v60 = vmax.f32 %v1640_v47, 0.0 }
 0x6f1   :  { %v1680_v56 = vmax.f32 %v1632_v52, 0.0 }
 0x6f2   :  { %v1694_v54 = vpack.c.bf16 %v1682_v60, %v1681_v21 }
 0x6f3   :  { %v1693_v61 = vpack.c.bf16 %v1680_v56, %v1679_v40 }
 0x6f5   :  { %2833 = vmatprep.mubr.msk.bf16.mxu1 %vm439_vm0, %v1693_v61 }
 0x6f6   :  { %2834 = vmatmul.mubr.msk.bf16.gmra.mrb[60].mxu1 %vm439_vm0, %v1694_v54 }
 0x710   :  { %v2819_v28 = vpop.f32.mrb[48].mxu0 }
 0x711   :  { %v1653_v29 = vadd.f32 %v2819_v28, %v2500_v49  ;;  %v1644_v50 = vpop.f32.mrb[49].mxu0 }
 0x712   :  { %v1645_v25 = vadd.f32 %v2500_v49, %v1644_v50  ;;  %v2820_v33 = vpop.f32.mrb[50].mxu0 }
 0x713   :  { %v1656_v32 = vadd.f32 %v2820_v33, %v2500_v49  ;;  %v1647_v10 = vpop.f32.mrb[51].mxu0  ;;  %v1685_v5 = vmax.f32 %v1653_v29, 0.0 }
 0x714   :  { %v1648_v37 = vadd.f32 %v2500_v49, %v1647_v10  ;;  %v1683_v43 = vmax.f32 %v1645_v25, 0.0 }
 0x715   :  { %v1686_v42 = vmax.f32 %v1656_v32, 0.0 }
 0x716   :  { %v1684_v19 = vmax.f32 %v1648_v37, 0.0 }
 0x717   :  { %v1696_v35 = vpack.c.bf16 %v1686_v42, %v1685_v5 }
 0x718   :  { %v1695_v13 = vpack.c.bf16 %v1684_v19, %v1683_v43 }
 0x71a   :  { %2837 = vmatprep.mubr.msk.bf16.mxu1 %vm439_vm0, %v1695_v13 }
 0x71b   :  { %2838 = vmatmul.mubr.msk.bf16.gmra.mrb[64].mxu1 %vm439_vm0, %v1696_v35 }
 0x731   :  { %v2823_v55 = vpop.f32.mrb[52].mxu0 }
 0x732   :  { %v1669_v53 = vadd.f32 %v2823_v55, %v2500_v49  ;;  %v1660_v0 = vpop.f32.mrb[53].mxu0 }
 0x733   :  { %v1661_v9 = vadd.f32 %v2500_v49, %v1660_v0  ;;  %v2824_v44 = vpop.f32.mrb[54].mxu0 }
 0x734   :  { %v1672_v23 = vadd.f32 %v2824_v44, %v2500_v49  ;;  %v1663_v20 = vpop.f32.mrb[55].mxu0  ;;  %v1689_v26 = vmax.f32 %v1669_v53, 0.0 }
 0x735   :  { %v1664_v63 = vadd.f32 %v2500_v49, %v1663_v20  ;;  %v1687_v1 = vmax.f32 %v1661_v9, 0.0 }
 0x736   :  { %v1690_v62 = vmax.f32 %v1672_v23, 0.0 }
 0x737   :  { %v1688_v2 = vmax.f32 %v1664_v63, 0.0 }
 0x738   :  { %v1698_v27 = vpack.c.bf16 %v1690_v62, %v1689_v26 }
 0x739   :  { %v1697_v3 = vpack.c.bf16 %v1688_v2, %v1687_v1  ;;  %v3012_v1 = vld [vmem:[#allocation3 + $0x48] sm:$0xff]  }
 0x73b   :  { %2841 = vmatprep.mubr.msk.bf16.mxu1 %vm439_vm0, %v1697_v3 }
 0x73c   :  { %2842 = vmatmul.mubr.msk.bf16.gmra.mrb[68].mxu1 %vm439_vm0, %v1698_v27 }
 0x7a8   :  { %v2831_v36 = vpop.f32.mrb[56].mxu1 }
 0x7a9   :  { %v1839_v34 = vadd.f32 %v2831_v36, %v3607_v58  ;;  %v1774_v11 = vpop.f32.mrb[57].mxu1 }
 0x7aa   :  { %v1837_v49 = vadd.f32 %v1774_v11, %v3603_v48  ;;  %v2832_v12 = vpop.f32.mrb[58].mxu1 }
 0x7ab   :  { %v1840_v14 = vadd.f32 %v2832_v12, %v3610_v18  ;;  %v1777_v7 = vpop.f32.mrb[59].mxu1  ;;  %v3717_v51 = vadd.f32 %v3708_v41, %v1839_v34 }
 0x7ac   :  { %v3713_v15 = vadd.f32 %v3708_v41, %v1837_v49  ;;  %v1838_v47 = vadd.f32 %v1777_v7, %v3613_v31 }
 0x7ad   :  { %v3720_v58 = vadd.f32 %v3708_v41, %v1840_v14  ;;  %v1879_v60 = vmax.f32 %v3717_v51, 0.0 }
 0x7ae   :  { %v3723_v52 = vadd.f32 %v3708_v41, %v1838_v47  ;;  %v1877_v21 = vmax.f32 %v3713_v15, 0.0 }
 0x7af   :  { %v1880_v48 = vmax.f32 %v3720_v58, 0.0 }
 0x7b0   :  { %v1878_v18 = vmax.f32 %v3723_v52, 0.0 }
 0x7b1   :  { %v1894_v56 = vpack.c.bf16 %v1880_v48, %v1879_v60 }
 0x7b2   :  { %v1893_v40 = vpack.c.bf16 %v1878_v18, %v1877_v21 }
 0x7b4   :  { %2849 = vmatprep.mubr.msk.bf16.mxu0 %vm439_vm0, %v1893_v40 }
 0x7b5   :  { %2850 = vmatmul.mubr.msk.bf16.vlgmr.msra.gmra.mrb[56].mxu0 %vm439_vm0, %v1894_v56 }
 0x7c9   :  { %v2835_v31 = vpop.f32.mrb[60].mxu1 }
 0x7ca   :  { %v1843_v54 = vadd.f32 %v2835_v31, %v3629_v4  ;;  %v1790_v61 = vpop.f32.mrb[61].mxu1 }
 0x7cb   :  { %v1841_v28 = vadd.f32 %v1790_v61, %v3625_v57  ;;  %v2836_v29 = vpop.f32.mrb[62].mxu1 }
 0x7cc   :  { %v1844_v50 = vadd.f32 %v2836_v29, %v3632_v6  ;;  %v1793_v25 = vpop.f32.mrb[63].mxu1  ;;  %v3739_v10 = vadd.f32 %v3708_v41, %v1843_v54 }
 0x7cd   :  { %v3735_v33 = vadd.f32 %v3708_v41, %v1841_v28  ;;  %v1842_v32 = vadd.f32 %v1793_v25, %v3635_v38 }
 0x7ce   :  { %v3742_v37 = vadd.f32 %v3708_v41, %v1844_v50  ;;  %v1883_v42 = vmax.f32 %v3739_v10, 0.0 }
 0x7cf   :  { %v3745_v4 = vadd.f32 %v3708_v41, %v1842_v32  ;;  %v1881_v5 = vmax.f32 %v3735_v33, 0.0 }
 0x7d0   :  { %v1884_v57 = vmax.f32 %v3742_v37, 0.0 }
 0x7d1   :  { %v1882_v6 = vmax.f32 %v3745_v4, 0.0 }
 0x7d2   :  { %v1896_v19 = vpack.c.bf16 %v1884_v57, %v1883_v42 }
 0x7d3   :  { %v1895_v43 = vpack.c.bf16 %v1882_v6, %v1881_v5 }
 0x7d5   :  { %2853 = vmatprep.mubr.msk.bf16.mxu0 %vm439_vm0, %v1895_v43 }
 0x7d6   :  { %2854 = vmatmul.mubr.msk.bf16.gmra.mrb[60].mxu0 %vm439_vm0, %v1896_v19 }
 0x7ee   :  { %v2839_v38 = vpop.f32.mrb[64].mxu1 }
 0x7ef   :  { %v1847_v35 = vadd.f32 %v2839_v38, %v3651_v24  ;;  %v1806_v13 = vpop.f32.mrb[65].mxu1 }
 0x7f0   :  { %v1845_v30 = vadd.f32 %v1806_v13, %v3647_v22  ;;  %v2840_v16 = vpop.f32.mrb[66].mxu1 }
 0x7f1   :  { %v1848_v55 = vadd.f32 %v2840_v16, %v3654_v17  ;;  %v1809_v53 = vpop.f32.mrb[67].mxu1  ;;  %v3761_v44 = vadd.f32 %v3708_v41, %v1847_v35 }
 0x7f2   :  { %v3757_v0 = vadd.f32 %v3708_v41, %v1845_v30  ;;  %v1846_v9 = vadd.f32 %v1809_v53, %v3657_v59  ;;  %v3011_v59 = vld [vmem:[#allocation3 + $0x40] sm:$0xff]  }
 0x7f3   :  { %v3764_v23 = vadd.f32 %v3708_v41, %v1848_v55  ;;  %v1887_v63 = vmax.f32 %v3761_v44, 0.0  ;;  %2865 = vmatprep.subr.bf16.mxu1 %v3011_v59 }
 0x7f4   :  { %v3767_v24 = vadd.f32 %v3708_v41, %v1846_v9  ;;  %v1885_v20 = vmax.f32 %v3757_v0, 0.0  ;;  %2866 = vmatpush3.bf16.msra.mxu1 %v3011_v59 }
 0x7f5   :  { %v1888_v22 = vmax.f32 %v3764_v23, 0.0  ;;  %2867 = vmatprep.subr.bf16.mxu1 %v3012_v1 }
 0x7f6   :  { %v1886_v17 = vmax.f32 %v3767_v24, 0.0 }
 0x7f7   :  { %v1898_v62 = vpack.c.bf16 %v1888_v22, %v1887_v63 }
 0x7f8   :  { %v1897_v26 = vpack.c.bf16 %v1886_v17, %v1885_v20  ;;  %2868 = vmatpush3.bf16.msra.mxu1 %v3012_v1 }
 0x7fa   :  { %2857 = vmatprep.mubr.msk.bf16.mxu0 %vm439_vm0, %v1897_v26 }
 0x7fb   :  { %2858 = vmatmul.mubr.msk.bf16.gmra.mrb[64].mxu0 %vm439_vm0, %v1898_v62 }
 0x80f   :  { %v2843_v2 = vpop.f32.mrb[68].mxu1 }
 0x810   :  { %v1851_v27 = vadd.f32 %v2843_v2, %v3673_v45  ;;  %v1822_v3 = vpop.f32.mrb[69].mxu1 }
 0x811   :  { %v1849_v36 = vadd.f32 %v1822_v3, %v3669_v46  ;;  %v2844_v34 = vpop.f32.mrb[70].mxu1 }
 0x812   :  { %v1852_v11 = vadd.f32 %v2844_v34, %v3676_v8  ;;  %v1825_v49 = vpop.f32.mrb[71].mxu1  ;;  %v3783_v7 = vadd.f32 %v3708_v41, %v1851_v27 }
 0x813   :  { %v3779_v12 = vadd.f32 %v3708_v41, %v1849_v36  ;;  %v1850_v14 = vadd.f32 %v1825_v49, %v3679_v39  ;;  %v2528_v39 = vld [vmem:[%s3895_s4 + $0x4] ss:$0 sm:$0xff] }
 0x814   :  { %v3786_v47 = vadd.f32 %v3708_v41, %v1852_v11  ;;  %v1891_v21 = vmax.f32 %v3783_v7, 0.0 }
 0x815   :  { %v3789_v45 = vadd.f32 %v3708_v41, %v1850_v14  ;;  %v1889_v48 = vmax.f32 %v3779_v12, 0.0 }
 0x816   :  { %v1892_v46 = vmax.f32 %v3786_v47, 0.0 }
 0x817   :  { %v1890_v8 = vmax.f32 %v3789_v45, 0.0 }
 0x818   :  { %v1900_v60 = vpack.c.bf16 %v1892_v46, %v1891_v21 }
 0x819   :  { %v1899_v18 = vpack.c.bf16 %v1890_v8, %v1889_v48 }
 0x81b   :  { %2861 = vmatprep.mubr.msk.bf16.mxu0 %vm439_vm0, %v1899_v18 }
 0x81c   :  { %2862 = vmatmul.mubr.msk.bf16.gmra.mrb[68].mxu0 %vm439_vm0, %v1900_v60 }
 0x888   :  { %v2851_v41 = vpop.f32.mrb[56].mxu0 }
 0x889   :  { %v1993_v40 = vadd.f32 %v2851_v41, %v2528_v39  ;;  %v1984_v56 = vpop.f32.mrb[57].mxu0  ;;  %v3067_v41 = vmov 0.0|0.0  }
 0x88a   :  { %v1985_v31 = vadd.f32 %v2528_v39, %v1984_v56  ;;  %v2852_v54 = vpop.f32.mrb[58].mxu0  ;;  %2920 = vmatprep.subr.bf16.mxu0 %v3067_v41 }
 0x88b   :  { %v1996_v61 = vadd.f32 %v2852_v54, %v2528_v39  ;;  %v1987_v28 = vpop.f32.mrb[59].mxu0  ;;  %v2049_v50 = vmax.f32 %v1993_v40, 0.0 }
 0x88c   :  { %v1988_v29 = vadd.f32 %v2528_v39, %v1987_v28  ;;  %v2047_v32 = vmax.f32 %v1985_v31, 0.0 }
 0x88d   :  { %v2050_v25 = vmax.f32 %v1996_v61, 0.0 }
 0x88e   :  { %v2048_v57 = vmax.f32 %v1988_v29, 0.0 }
 0x88f   :  { %v2064_v5 = vpack.c.bf16 %v2050_v25, %v2049_v50 }
 0x890   :  { %v2063_v6 = vpack.c.bf16 %v2048_v57, %v2047_v32  ;;  %v3069_v32 = vmov 0.0  }
 0x891   :  { %2917 = vmatprep.mubr.msk.f32.mxu0 %vm3068_vm1, %v3069_v32 }
 0x892   :  { %2869 = vmatprep.mubr.msk.bf16.mxu1 %vm439_vm0, %v2063_v6 }
 0x893   :  { %2870 = vmatmul.mubr.msk.bf16.vlgmr.msra.gmra.mrb[72].mxu1 %vm439_vm0, %v2064_v5  ;;  %v3812_v5 = vld [vmem:[%s3897_s6 + $0x4] ss:$0 sm:$0xff] }
 0x8a9   :  { %v2855_v42 = vpop.f32.mrb[60].mxu0 }
 0x8aa   :  { %v2009_v43 = vadd.f32 %v2855_v42, %v2528_v39  ;;  %v2000_v19 = vpop.f32.mrb[61].mxu0 }
 0x8ab   :  { %v2001_v38 = vadd.f32 %v2528_v39, %v2000_v19  ;;  %v2856_v35 = vpop.f32.mrb[62].mxu0  ;;  %v2266_v19 = vld [vmem:[#allocation2] sm:$0x1] }
 0x8ac   :  { %v2012_v13 = vadd.f32 %v2856_v35, %v2528_v39  ;;  %v2003_v30 = vpop.f32.mrb[63].mxu0  ;;  %v2053_v55 = vmax.f32 %v2009_v43, 0.0  ;;  %2269 = vperm.xlu1 %2991, %v2266_v19  }
 0x8ad   :  { %v2004_v16 = vadd.f32 %v2528_v39, %v2003_v30  ;;  %v2051_v9 = vmax.f32 %v2001_v38, 0.0 }
 0x8ae   :  { %v2054_v53 = vmax.f32 %v2012_v13, 0.0 }
 0x8af   :  { %v2052_v22 = vmax.f32 %v2004_v16, 0.0 }
 0x8b0   :  { %v2066_v20 = vpack.c.bf16 %v2054_v53, %v2053_v55 }
 0x8b1   :  { %v2065_v17 = vpack.c.bf16 %v2052_v22, %v2051_v9 }
 0x8b3   :  { %2873 = vmatprep.mubr.msk.bf16.mxu1 %vm439_vm0, %v2065_v17 }
 0x8b4   :  { %2874 = vmatmul.mubr.msk.bf16.gmra.mrb[76].mxu1 %vm439_vm0, %v2066_v20 }
 0x8ce   :  { %v2859_v63 = vpop.f32.mrb[64].mxu0 }
 0x8cf   :  { %v2025_v26 = vadd.f32 %v2859_v63, %v2528_v39  ;;  %v2016_v62 = vpop.f32.mrb[65].mxu0 }
 0x8d0   :  { %v2017_v59 = vadd.f32 %v2528_v39, %v2016_v62  ;;  %v2860_v1 = vpop.f32.mrb[66].mxu0 }
 0x8d1   :  { %v2028_v2 = vadd.f32 %v2860_v1, %v2528_v39  ;;  %v2019_v27 = vpop.f32.mrb[67].mxu0  ;;  %v2057_v36 = vmax.f32 %v2025_v26, 0.0 }
 0x8d2   :  { %v2020_v3 = vadd.f32 %v2528_v39, %v2019_v27  ;;  %v2055_v11 = vmax.f32 %v2017_v59, 0.0 }
 0x8d3   :  { %v2058_v34 = vmax.f32 %v2028_v2, 0.0 }
 0x8d4   :  { %v2056_v49 = vmax.f32 %v2020_v3, 0.0 }
 0x8d5   :  { %v2068_v14 = vpack.c.bf16 %v2058_v34, %v2057_v36 }
 0x8d6   :  { %v2067_v46 = vpack.c.bf16 %v2056_v49, %v2055_v11 }
 0x8d8   :  { %2877 = vmatprep.mubr.msk.bf16.mxu1 %vm439_vm0, %v2067_v46 }
 0x8d9   :  { %2878 = vmatmul.mubr.msk.bf16.gmra.mrb[80].mxu1 %vm439_vm0, %v2068_v14 }
 0x8ef   :  { %v2863_v48 = vpop.f32.mrb[68].mxu0 }
 0x8f0   :  { %v2041_v8 = vadd.f32 %v2863_v48, %v2528_v39  ;;  %v2032_v21 = vpop.f32.mrb[69].mxu0 }
 0x8f1   :  { %v2033_v18 = vadd.f32 %v2528_v39, %v2032_v21  ;;  %v2864_v60 = vpop.f32.mrb[70].mxu0 }
 0x8f2   :  { %v2044_v40 = vadd.f32 %v2864_v60, %v2528_v39  ;;  %v2035_v56 = vpop.f32.mrb[71].mxu0  ;;  %v2061_v54 = vmax.f32 %v2041_v8, 0.0 }
 0x8f3   :  { %v2036_v31 = vadd.f32 %v2528_v39, %v2035_v56  ;;  %v2059_v28 = vmax.f32 %v2033_v18, 0.0 }
 0x8f4   :  { %v2062_v61 = vmax.f32 %v2044_v40, 0.0 }
 0x8f5   :  { %v2060_v29 = vmax.f32 %v2036_v31, 0.0 }
 0x8f6   :  { %v2070_v50 = vpack.c.bf16 %v2062_v61, %v2061_v54 }
 0x8f7   :  { %v2069_v25 = vpack.c.bf16 %v2060_v29, %v2059_v28 }
 0x8f9   :  { %2881 = vmatprep.mubr.msk.bf16.mxu1 %vm439_vm0, %v2069_v25 }
 0x8fa   :  { %2882 = vmatmul.mubr.msk.bf16.gmra.mrb[84].mxu1 %vm439_vm0, %v2070_v50 }
 0x966   :  { %v2871_v57 = vpop.f32.mrb[72].mxu1 }
 0x967   :  { %v2211_v39 = vadd.f32 %v2871_v57, %v3717_v51  ;;  %v2146_v6 = vpop.f32.mrb[73].mxu1 }
 0x968   :  { %v2209_v42 = vadd.f32 %v2146_v6, %v3713_v15  ;;  %v2872_v43 = vpop.f32.mrb[74].mxu1 }
 0x969   :  { %v2235_v38 = vadd.f32 %v3812_v5, %v2211_v39  ;;  %v2212_v35 = vadd.f32 %v2872_v43, %v3720_v58  ;;  %v2149_v13 = vpop.f32.mrb[75].mxu1 }
 0x96a   :  { %v2233_v30 = vadd.f32 %v3812_v5, %v2209_v42  ;;  %v2210_v16 = vadd.f32 %v2149_v13, %v3723_v52 }
 0x96b   :  { %v2236_v55 = vadd.f32 %v3812_v5, %v2212_v35  ;;  %v2251_v51 = vmax.f32 %v2235_v38, 0.0 }
 0x96c   :  { %v2234_v53 = vadd.f32 %v3812_v5, %v2210_v16  ;;  %v2249_v22 = vmax.f32 %v2233_v30, 0.0 }
 0x96d   :  { %v2252_v9 = vmax.f32 %v2236_v55, 0.0 }
 0x96e   :  { %v2250_v15 = vmax.f32 %v2234_v53, 0.0 }
 0x96f   :  { %v2925_v20 = vpack.c.bf16 %v2252_v9, %v2251_v51 }
 0x970   :  { %v2921_v58 = vpack.c.bf16 %v2250_v15, %v2249_v22  ;;  %v2270_v22 = vpop.permute.xlu1 %2269 }
 0x972   :  { %2923 = vmatpush3.bf16.xpose.msk.msra.mxu0 %vm3824_vm2, %v2921_v58 }
 0x973   :  { %2924 = vmatprep.subr.bf16.mxu0 %v3067_v41 }
 0x97a   :  { %2927 = vmatpush3.bf16.xpose.msk.msra.mxu0 %vm3824_vm2, %v2925_v20 }
 0x97b   :  { %2928 = vmatprep.subr.bf16.mxu0 %v3067_v41 }
 0x987   :  { %v2875_v52 = vpop.f32.mrb[76].mxu1 }
 0x988   :  { %v2215_v63 = vadd.f32 %v2875_v52, %v3739_v10  ;;  %v2162_v26 = vpop.f32.mrb[77].mxu1 }
 0x989   :  { %v2213_v62 = vadd.f32 %v2162_v26, %v3735_v33  ;;  %v2876_v59 = vpop.f32.mrb[78].mxu1 }
 0x98a   :  { %v2239_v1 = vadd.f32 %v3812_v5, %v2215_v63  ;;  %v2216_v2 = vadd.f32 %v2876_v59, %v3742_v37  ;;  %v2165_v27 = vpop.f32.mrb[79].mxu1 }
 0x98b   :  { %v2237_v3 = vadd.f32 %v3812_v5, %v2213_v62  ;;  %v2214_v36 = vadd.f32 %v2165_v27, %v3745_v4 }
 0x98c   :  { %v2240_v34 = vadd.f32 %v3812_v5, %v2216_v2  ;;  %v2255_v49 = vmax.f32 %v2239_v1, 0.0 }
 0x98d   :  { %v2238_v11 = vadd.f32 %v3812_v5, %v2214_v36  ;;  %v2253_v10 = vmax.f32 %v2237_v3, 0.0 }
 0x98e   :  { %v2256_v14 = vmax.f32 %v2240_v34, 0.0 }
 0x98f   :  { %v2254_v46 = vmax.f32 %v2238_v11, 0.0 }
 0x990   :  { %v2933_v48 = vpack.c.bf16 %v2256_v14, %v2255_v49 }
 0x991   :  { %v2929_v33 = vpack.c.bf16 %v2254_v46, %v2253_v10 }
 0x993   :  { %2931 = vmatpush3.bf16.xpose.msk.msra.mxu0 %vm3824_vm2, %v2929_v33 }
 0x994   :  { %2932 = vmatprep.subr.bf16.mxu0 %v3067_v41 }
 0x99b   :  { %2935 = vmatpush3.bf16.xpose.msk.msra.mxu0 %vm3824_vm2, %v2933_v48 }
 0x99c   :  { %2936 = vmatprep.subr.bf16.mxu0 %v3067_v41 }
 0x9ac   :  { %v2879_v37 = vpop.f32.mrb[80].mxu1 }
 0x9ad   :  { %v2219_v4 = vadd.f32 %v2879_v37, %v3761_v44  ;;  %v2178_v8 = vpop.f32.mrb[81].mxu1 }
 0x9ae   :  { %v2217_v21 = vadd.f32 %v2178_v8, %v3757_v0  ;;  %v2880_v18 = vpop.f32.mrb[82].mxu1 }
 0x9af   :  { %v2243_v60 = vadd.f32 %v3812_v5, %v2219_v4  ;;  %v2220_v40 = vadd.f32 %v2880_v18, %v3764_v23  ;;  %v2181_v56 = vpop.f32.mrb[83].mxu1 }
 0x9b0   :  { %v2241_v31 = vadd.f32 %v3812_v5, %v2217_v21  ;;  %v2218_v54 = vadd.f32 %v2181_v56, %v3767_v24 }
 0x9b1   :  { %v2244_v61 = vadd.f32 %v3812_v5, %v2220_v40  ;;  %v2259_v29 = vmax.f32 %v2243_v60, 0.0 }
 0x9b2   :  { %v2242_v28 = vadd.f32 %v3812_v5, %v2218_v54  ;;  %v2257_v44 = vmax.f32 %v2241_v31, 0.0 }
 0x9b3   :  { %v2260_v50 = vmax.f32 %v2244_v61, 0.0 }
 0x9b4   :  { %v2258_v25 = vmax.f32 %v2242_v28, 0.0 }
 0x9b5   :  { %v2941_v32 = vpack.c.bf16 %v2260_v50, %v2259_v29 }
 0x9b6   :  { %v2937_v0 = vpack.c.bf16 %v2258_v25, %v2257_v44 }
 0x9b8   :  { %2939 = vmatpush3.bf16.xpose.msk.msra.mxu0 %vm3824_vm2, %v2937_v0 }
 0x9b9   :  { %2940 = vmatprep.subr.bf16.mxu0 %v3067_v41 }
 0x9c0   :  { %2943 = vmatpush3.bf16.xpose.msk.msra.mxu0 %vm3824_vm2, %v2941_v32 }
 0x9c1   :  { %2944 = vmatprep.subr.bf16.mxu0 %v3067_v41 }
 0x9cd   :  { %v2883_v23 = vpop.f32.mrb[84].mxu1 }
 0x9ce   :  { %v2223_v24 = vadd.f32 %v2883_v23, %v3783_v7  ;;  %v2194_v57 = vpop.f32.mrb[85].mxu1 }
 0x9cf   :  { %v2221_v39 = vadd.f32 %v2194_v57, %v3779_v12  ;;  %v2884_v6 = vpop.f32.mrb[86].mxu1 }
 0x9d0   :  { %v2247_v42 = vadd.f32 %v3812_v5, %v2223_v24  ;;  %v2224_v43 = vadd.f32 %v2884_v6, %v3786_v47  ;;  %v2197_v19 = vpop.f32.mrb[87].mxu1  ;;  %v2265_v47 = vld [vmem:[%s3898_s7] sm:$0x1] }
 0x9d1   :  { %v2245_v38 = vadd.f32 %v3812_v5, %v2221_v39  ;;  %v2222_v35 = vadd.f32 %v2197_v19, %v3789_v45  ;;  %v2272_v45 = vlaneseq }
 0x9d2   :  { %v2248_v13 = vadd.f32 %v3812_v5, %v2224_v43  ;;  %v2263_v16 = vmax.f32 %v2247_v42, 0.0 }
 0x9d3   :  { %v2246_v30 = vadd.f32 %v3812_v5, %v2222_v35  ;;  %v2261_v7 = vmax.f32 %v2245_v38, 0.0  ;;  %v2273_v5 = vshrl.u32 %v2272_v45, 7 }
 0x9d4   :  { %v2264_v55 = vmax.f32 %v2248_v13, 0.0 }
 0x9d5   :  { %v2262_v53 = vmax.f32 %v2246_v30, 0.0  ;;  %v2274_v9 = vsub.s32 0, %v2273_v5 }
 0x9d6   :  { %v2949_v51 = vpack.c.bf16 %v2264_v55, %v2263_v16 }
 0x9d7   :  { %v2945_v12 = vpack.c.bf16 %v2262_v53, %v2261_v7  ;;  %v2275_v15 = vrot.slane %v2270_v22, %v2274_v9 }
 0x9d9   :  { %2947 = vmatpush3.bf16.xpose.msk.msra.mxu0 %vm3824_vm2, %v2945_v12 }
 0x9da   :  { %2948 = vmatprep.subr.bf16.mxu0 %v3067_v41 }
 0x9e1   :  { %2951 = vmatpush3.bf16.xpose.msk.msra.mxu0 %vm3824_vm2, %v2949_v51 }
 0x9e8   :  { %2918 = vmatmul.mubr.msk.f32.vlgmr.msra.gmra.mrb[72].mxu0 %vm439_vm0, %v2265_v47 }
 0xabb   :  { %v2393_v20 = vpop.f32.mrb[72].mxu0 }
 0xabc   :  { %v2394_v58 = vadd.f32 %v2393_v20, %v2275_v15  ;;  %v2919_v52 = vpop.f32.mrb[73].mxu0 }
 0xabe   :  { %2397 = vst [vmem:[#allocation6] sm:$0x1] %v2394_v58 }
 0xabf   :  { %3046 = shalt.err (!%p3043_p12)
}
 0xac0   :  { %s3047_s11 = scalar_lea.hbm %s3900_s9, 16 }
 0xac1   :  { %p3048_p13 = scmp.ne.s32.totalorder %s3900_s9, %s3047_s11  ;;  %p3051_p0 = scmp.lt.u32.totalorder %s3047_s11, %s3900_s9 }
 0xac3   :  { %p3053_p1 = pnand %p3051_p0, %p3048_p13 }
 0xac5   :  { %3056 = shalt.err (!%p3053_p1)
}
 0xac6   :  { %2407 = dma.vmem_to_hbm [thread:$0]  %s2405_s28, 16, %s3900_s9, [#allocation5]  }
 0xac7   :  { %3059 = dma.done.wait [#allocation5], 16  }
 0xac8   :  { %3060 = vsyncadd [#allocation5], 4294967280 }
 0xac9   :  { %2411 = vsyncpa [#allocation4], 1 }
 0xaca   :  { %2412 = vsyncpa [#allocation5], 1 }

// kernel: tpu_custom_call.1
= control target key start
LH: loop header
LB: loop body
LE: loop exit
PB: predicated region body
PF: predicated region fallthrough
CT: control target
= control target key end

     0   :  { %s3891_s0 = inlined_call_operand.vmem [shape: f32[128,3], index: 0, kind: input, shape index: {}]   ;;  %s3892_s1 = inlined_call_operand.vmem [shape: f32[3,32], index: 1, kind: input, shape index: {}]   ;;  %s3893_s2 = inlined_call_operand.vmem [shape: f32[1,32], index: 2, kind: input, shape index: {}]   ;;  %s3894_s3 = inlined_call_operand.vmem [shape: bf16[5,32,32], index: 3, kind: input, shape index: {}]   ;;  %s3895_s4 = inlined_call_operand.vmem [shape: f32[5,1,32], index: 4, kind: input, shape index: {}]   ;;  %s3896_s5 = inlined_call_operand.hbm [shape: bf16[5,32,32], index: 5, kind: input, shape index: {}]   ;;  %s3897_s6 = inlined_call_operand.vmem [shape: f32[5,1,32], index: 6, kind: input, shape index: {}]   ;;  %s3898_s7 = inlined_call_operand.vmem [shape: f32[1,32], index: 7, kind: input, shape index: {}]   ;;  %s3899_s8 = inlined_call_operand.<no memory space> [shape: f32[1,1], index: 8, kind: input, shape index: {}]   ;;  %s3900_s9 = inlined_call_operand.hbm [shape: f32[1,128], index: 9, kind: output, shape index: {}]  }
   0x1   :  { %v14_v0 = vstv %s3899_s8 }
   0x2   :  { %15 = vst [vmem:[#allocation2] sm:$0x1] %v14_v0 }
   0x3   :  { %16 = vsyncpa [#allocation4], 0 }
   0x4   :  { %17 = vsyncpa [#allocation5], 0  ;;  %s3061_s11 = smov [#allocation3]   ;;  %s3013_s15 = scalar_lea.hbm %s3896_s5, 1280 }
   0x5   :  { %s33_s12 = sshll.u32 %s3061_s11, 4  ;;  %p3014_p0 = scmp.ne.s32.totalorder %s3896_s5, %s3013_s15  ;;  %s34_s12 = int_to_ptr.vmem [resolvable:$true] %s33_s12 }
   0x6   :  { %p3017_p1 = scmp.lt.u32.totalorder %s3013_s15, %s3896_s5 }
   0x8   :  { %p3019_p2 = pnand %p3017_p1, %p3014_p0 }
   0xa   :  { %3022 = shalt.err (!%p3019_p2)
}
   0xb   :  { %s3023_s8 = scalar_lea.vmem %s34_s12, 1280  ;;  %p3028_p4 = scmp.lt.s32.totalorder %s34_s12, %s34_s12 }
   0xc   :  { %p3024_p3 = scmp.ne.s32.totalorder %s34_s12, %s3023_s8  ;;  %p3029_p5 = scmp.lt.s32.totalorder %s3023_s8, %s3023_s8 }
   0xe   :  { %p3030_p6 = por %p3029_p5, %p3028_p4 }
  0x10   :  { %p3031_p7 = pnand %p3030_p6, %p3024_p3 }
  0x12   :  { %3034 = shalt.err (!%p3031_p7)
}
  0x13   :  { %s3062_s20 = smov 64   ;;  %s3063_s21 = smov 4  }
  0x14   :  { %39 = dma.hbm_to_vmem [thread:$0]  %s3896_s5, 1280, %s34_s12, [#allocation4], %s3062_s20, %s3062_s20, %s3063_s21  }
  0x15   :  { %3057 = dma.done.wait [#allocation4], 1280  }
  0x16   :  { %3058 = vsyncadd [#allocation4], 4294966016  ;;  %v3064_v1 = vmov 1   ;;  %v3065_v2 = vmov 0   ;;  %v50_v3 = vld [vmem:[%s3891_s0] sm:$0xff]  ;;  %v51_v4 = vld [vmem:[%s3891_s0 + $0x8] sm:$0xff] }
  0x17   :  { %2967 = vset.pattern.permute.xlu1 %v3064_v1  ;;  %2966 = vset.pattern.permute.xlu0 %v3065_v2  ;;  %v52_v5 = vld [vmem:[%s3891_s0 + $0x10] sm:$0xff]  ;;  %v53_v6 = vld [vmem:[%s3891_s0 + $0x18] sm:$0xff]  ;;  %v55_v7 = vld [vmem:[%s3891_s0 + $0x28] sm:$0xff]  ;;  %v3066_v9 = vmov 2   ;;  %vm439_vm0 = vcmask 261120   ;;  %vm3068_vm1 = vmmov 0  }
  0x18   :  { %169 = vperm.xlu1 %2967, %v50_v3   ;;  %69 = vperm.xlu0 %2966, %v50_v3   ;;  %v56_v8 = vld [vmem:[%s3891_s0 + $0x30] sm:$0xff]  ;;  %v54_v10 = vld [vmem:[%s3891_s0 + $0x20] sm:$0xff]  ;;  %v57_v12 = vld [vmem:[%s3891_s0 + $0x38] sm:$0xff]  ;;  %s3070_s5 = smov [#allocation6]  }
  0x19   :  { %v2993_v11 = vld [vmem:[%s3894_s3] sm:$0xff]   ;;  %v2994_v13 = vld [vmem:[%s3894_s3 + $0x8] sm:$0xff]   ;;  %v60_v15 = vld [vmem:[%s3891_s0 + $0x50] sm:$0xff]  ;;  %s2404_s28 = sshll.u32 %s3070_s5, 4  ;;  %s2405_s28 = int_to_ptr.vmem [resolvable:$true] %s2404_s28 }
  0x1a   :  { %2685 = vmatprep.subr.bf16.mxu0 %v2993_v11  ;;  %2952 = vmatprep.subr.bf16.mxu1 %v2993_v11  ;;  %v59_v14 = vld [vmem:[%s3891_s0 + $0x48] sm:$0xff]  ;;  %v62_v16 = vld [vmem:[%s3891_s0 + $0x60] sm:$0xff]  ;;  %v64_v19 = vld [vmem:[%s3891_s0 + $0x70] sm:$0xff]  ;;  %s3035_s29 = scalar_lea.vmem %s2405_s28, 16  ;;  %s3039_s30 = scalar_lea.vmem %s2405_s28, 32 }
  0x1b   :  { %2686 = vmatpush3.bf16.msra.mxu0 %v2993_v11  ;;  %2954 = vmatpush3.bf16.msra.mxu1 %v2993_v11  ;;  %v63_v17 = vld [vmem:[%s3891_s0 + $0x68] sm:$0xff]  ;;  %v58_v18 = vld [vmem:[%s3891_s0 + $0x40] sm:$0xff]  ;;  %v61_v20 = vld [vmem:[%s3891_s0 + $0x58] sm:$0xff]  ;;  %p3036_p8 = scmp.ne.s32.totalorder %s2405_s28, %s3035_s29  ;;  %p3040_p9 = scmp.lt.s32.totalorder %s2405_s28, %s2405_s28 }
  0x1c   :  { %173 = vperm.xlu1 %2967, %v51_v4   ;;  %74 = vperm.xlu0 %2966, %v51_v4   ;;  %v65_v21 = vld [vmem:[%s3891_s0 + $0x78] sm:$0xff]  ;;  %v3220_v30 = vld [vmem:[%s3892_s1 + $0x1] ss:$0 sm:$0xff]  ;;  %v3225_v31 = vld [vmem:[%s3892_s1] ss:$0 sm:$0xff]  ;;  %p3041_p10 = scmp.lt.s32.totalorder %s3039_s30, %s3035_s29 }
  0x1d   :  { %2687 = vmatprep.subr.bf16.mxu0 %v2994_v13  ;;  %2953 = vmatprep.subr.bf16.mxu1 %v2994_v13  ;;  %v3232_v35 = vld [vmem:[%s3892_s1 + $0x2] ss:$0 sm:$0xff]  ;;  %v3245_v50 = vld [vmem:[%s3893_s2] ss:$0 sm:$0xff]  ;;  %vm3824_vm2 = vmpackc.low %vm439_vm0, %vm439_vm0 }
  0x1e   :  { %p3042_p11 = por %p3041_p10, %p3040_p9 }
  0x1f   :  { %2688 = vmatpush3.bf16.msra.mxu0 %v2994_v13  ;;  %2955 = vmatpush3.bf16.msra.mxu1 %v2994_v13 }
  0x20   :  { %2968 = vset.pattern.permute.xlu1 %v3065_v2  ;;  %79 = vperm.xlu0 %2966, %v52_v5   ;;  %p3043_p12 = pnand %p3042_p11, %p3036_p8 }
  0x21   :  { %84 = vperm.xlu1 %2968, %v53_v6  }
  0x24   :  { %2969 = vset.pattern.permute.xlu0 %v3064_v1 }
  0x25   :  { %2970 = vset.pattern.permute.xlu1 %v3064_v1  ;;  %177 = vperm.xlu0 %2969, %v52_v5  }
  0x26   :  { %181 = vperm.xlu1 %2970, %v53_v6  }
  0x29   :  { %189 = vperm.xlu0 %2969, %v55_v7  }
  0x2a   :  { %2971 = vset.pattern.permute.xlu1 %v3066_v9 }
  0x2b   :  { %270 = vperm.xlu1 %2971, %v50_v3  }
  0x2d   :  { %193 = vperm.xlu0 %2969, %v56_v8  }
  0x2f   :  { %278 = vperm.xlu1 %2971, %v52_v5  }
  0x31   :  { %2975 = vset.pattern.permute.xlu0 %v3066_v9 }
  0x32   :  { %274 = vperm.xlu0 %2975, %v51_v4  }
  0x33   :  { %282 = vperm.xlu1 %2971, %v53_v6  }
  0x36   :  { %286 = vperm.xlu0 %2975, %v54_v10  }
  0x37   :  { %2972 = vset.pattern.permute.xlu1 %v3065_v2 }
  0x38   :  { %94 = vperm.xlu1 %2972, %v55_v7  }
  0x3a   :  { %298 = vperm.xlu0 %2975, %v57_v12  }
  0x3c   :  { %2973 = vset.pattern.permute.xlu1 %v3064_v1 }
  0x3d   :  { %185 = vperm.xlu1 %2973, %v54_v10  }
  0x3e   :  { %306 = vperm.xlu0 %2975, %v59_v14  }
  0x41   :  { %2974 = vset.pattern.permute.xlu1 %v3065_v2 }
  0x42   :  { %99 = vperm.xlu1 %2974, %v56_v8   ;;  %2983 = vset.pattern.permute.xlu0 %v3065_v2 }
  0x43   :  { %89 = vperm.xlu0 %2983, %v54_v10  }
  0x46   :  { %104 = vperm.xlu1 %2974, %v57_v12  }
  0x47   :  { %114 = vperm.xlu0 %2983, %v59_v14  }
  0x4a   :  { %2976 = vset.pattern.permute.xlu1 %v3064_v1 }
  0x4b   :  { %197 = vperm.xlu1 %2976, %v57_v12   ;;  %119 = vperm.xlu0 %2983, %v60_v15  }
  0x4f   :  { %2977 = vset.pattern.permute.xlu1 %v3066_v9  ;;  %129 = vperm.xlu0 %2983, %v62_v16  }
  0x50   :  { %290 = vperm.xlu1 %2977, %v55_v7  }
  0x53   :  { %2984 = vset.pattern.permute.xlu0 %v3064_v1 }
  0x54   :  { %294 = vperm.xlu1 %2977, %v56_v8   ;;  %209 = vperm.xlu0 %2984, %v60_v15  }
  0x58   :  { %2978 = vset.pattern.permute.xlu1 %v3065_v2  ;;  %221 = vperm.xlu0 %2984, %v63_v17  }
  0x59   :  { %109 = vperm.xlu1 %2978, %v58_v18  }
  0x5c   :  { %225 = vperm.xlu0 %2984, %v64_v19  }
  0x5d   :  { %2979 = vset.pattern.permute.xlu1 %v3064_v1 }
  0x5e   :  { %201 = vperm.xlu1 %2979, %v58_v18  }
  0x60   :  { %2989 = vset.pattern.permute.xlu0 %v3066_v9 }
  0x61   :  { %318 = vperm.xlu0 %2989, %v62_v16  }
  0x62   :  { %205 = vperm.xlu1 %2979, %v59_v14  }
  0x65   :  { %330 = vperm.xlu0 %2989, %v65_v21  }
  0x66   :  { %2980 = vset.pattern.permute.xlu1 %v3065_v2 }
  0x67   :  { %124 = vperm.xlu1 %2980, %v61_v20  }
  0x69   :  { %2992 = vset.pattern.permute.xlu0 %v3065_v2 }
  0x6b   :  { %2981 = vset.pattern.permute.xlu1 %v3064_v1 }
  0x6c   :  { %213 = vperm.xlu1 %2981, %v61_v20  }
  0x70   :  { %2982 = vset.pattern.permute.xlu1 %v3066_v9 }
  0x71   :  { %302 = vperm.xlu1 %2982, %v58_v18  }
  0x75   :  { %310 = vperm.xlu1 %2982, %v60_v15  }
  0x79   :  { %314 = vperm.xlu1 %2982, %v61_v20  }
  0x7d   :  { %2985 = vset.pattern.permute.xlu1 %v3065_v2 }
  0x7e   :  { %134 = vperm.xlu1 %2985, %v63_v17  }
  0x82   :  { %2986 = vset.pattern.permute.xlu1 %v3064_v1 }
  0x83   :  { %217 = vperm.xlu1 %2986, %v62_v16  }
  0x87   :  { %2987 = vset.pattern.permute.xlu1 %v3065_v2 }
  0x88   :  { %139 = vperm.xlu1 %2987, %v64_v19  }
  0x8c   :  { %144 = vperm.xlu1 %2987, %v65_v21  }
  0x90   :  { %2988 = vset.pattern.permute.xlu1 %v3064_v1 }
  0x91   :  { %229 = vperm.xlu1 %2988, %v65_v21  }
  0x95   :  { %2990 = vset.pattern.permute.xlu1 %v3066_v9 }
  0x96   :  { %322 = vperm.xlu1 %2990, %v63_v17  }
  0x97   :  { %v170_v22 = vpop.permute.xlu1 %169  ;;  %v70_v23 = vpop.permute.xlu0 %69 }
  0x98   :  { %v236_v36 = vmul.f32 %v3220_v30, %v170_v22  ;;  %v151_v37 = vmul.f32 %v3225_v31, %v70_v23 }
  0x9a   :  { %326 = vperm.xlu1 %2990, %v64_v19   ;;  %v252_v42 = vadd.f32 %v236_v36, %v151_v37 }
  0x9b   :  { %v174_v24 = vpop.permute.xlu1 %173  ;;  %v75_v25 = vpop.permute.xlu0 %74 }
  0x9c   :  { %v237_v43 = vmul.f32 %v3220_v30, %v174_v24  ;;  %v152_v44 = vmul.f32 %v3225_v31, %v75_v25 }
  0x9e   :  { %2991 = vset.pattern.permute.xlu1 %v3065_v2  ;;  %v253_v53 = vadd.f32 %v237_v43, %v152_v44 }
  0x9f   :  { %v80_v26 = vpop.permute.xlu0 %79 }
  0xa0   :  { %v85_v27 = vpop.permute.xlu1 %84  ;;  %v153_v33 = vmul.f32 %v3225_v31, %v80_v26 }
  0xa1   :  { %v154_v49 = vmul.f32 %v3225_v31, %v85_v27 }
  0xa4   :  { %v178_v28 = vpop.permute.xlu0 %177 }
  0xa5   :  { %v182_v29 = vpop.permute.xlu1 %181  ;;  %v238_v34 = vmul.f32 %v3220_v30, %v178_v28 }
  0xa6   :  { %v239_v46 = vmul.f32 %v3220_v30, %v182_v29 }
  0xa7   :  { %v254_v41 = vadd.f32 %v238_v34, %v153_v33 }
  0xa8   :  { %v190_v32 = vpop.permute.xlu0 %189  ;;  %v255_v56 = vadd.f32 %v239_v46, %v154_v49 }
  0xa9   :  { %v241_v20 = vmul.f32 %v3220_v30, %v190_v32 }
  0xaa   :  { %v271_v38 = vpop.permute.xlu1 %270 }
  0xab   :  { %v337_v39 = vmul.f32 %v3232_v35, %v271_v38 }
  0xac   :  { %v194_v40 = vpop.permute.xlu0 %193 }
  0xad   :  { %v353_v48 = vadd.f32 %v337_v39, %v252_v42  ;;  %v242_v27 = vmul.f32 %v3220_v30, %v194_v40 }
  0xae   :  { %v279_v45 = vpop.permute.xlu1 %278 }
  0xaf   :  { %v339_v47 = vmul.f32 %v3232_v35, %v279_v45  ;;  %v3250_v58 = vadd.f32 %v3245_v50, %v353_v48 }
  0xb1   :  { %v355_v51 = vadd.f32 %v339_v47, %v254_v41  ;;  %v275_v52 = vpop.permute.xlu0 %274  ;;  %v392_v2 = vmax.f32 %v3250_v58, 0.0 }
  0xb2   :  { %v338_v54 = vmul.f32 %v3232_v35, %v275_v52  ;;  %v283_v55 = vpop.permute.xlu1 %282 }
  0xb3   :  { %v340_v57 = vmul.f32 %v3232_v35, %v283_v55  ;;  %v3253_v60 = vadd.f32 %v3245_v50, %v355_v51 }
  0xb4   :  { %v354_v59 = vadd.f32 %v338_v54, %v253_v53 }
  0xb5   :  { %v356_v61 = vadd.f32 %v340_v57, %v255_v56  ;;  %v287_v62 = vpop.permute.xlu0 %286  ;;  %v394_v4 = vmax.f32 %v3253_v60, 0.0 }
  0xb6   :  { %v3256_v63 = vadd.f32 %v3245_v50, %v354_v59  ;;  %v341_v16 = vmul.f32 %v3232_v35, %v287_v62 }
  0xb7   :  { %v3259_v0 = vadd.f32 %v3245_v50, %v356_v61  ;;  %v95_v1 = vpop.permute.xlu1 %94 }
  0xb8   :  { %v393_v3 = vmax.f32 %v3256_v63, 0.0  ;;  %v156_v21 = vmul.f32 %v3225_v31, %v95_v1 }
  0xb9   :  { %v395_v5 = vmax.f32 %v3259_v0, 0.0  ;;  %v299_v6 = vpop.permute.xlu0 %298 }
  0xba   :  { %v408_v7 = vpack.c.bf16 %v393_v3, %v392_v2  ;;  %v344_v23 = vmul.f32 %v3232_v35, %v299_v6  ;;  %v257_v28 = vadd.f32 %v241_v20, %v156_v21 }
  0xbb   :  { %v409_v8 = vpack.c.bf16 %v395_v5, %v394_v4 }
  0xbc   :  { %v186_v9 = vpop.permute.xlu1 %185  ;;  %2689 = vmatprep.mubr.msk.bf16.mxu0 %vm439_vm0, %v408_v7 }
  0xbd   :  { %2690 = vmatmul.mubr.msk.bf16.vlgmr.msra.gmra.mrb[0].mxu0 %vm439_vm0, %v409_v8  ;;  %v307_v10 = vpop.permute.xlu0 %306  ;;  %v240_v15 = vmul.f32 %v3220_v30, %v186_v9 }
  0xbe   :  { %v346_v62 = vmul.f32 %v3232_v35, %v307_v10 }
  0xc1   :  { %v100_v11 = vpop.permute.xlu1 %99 }
  0xc2   :  { %v90_v12 = vpop.permute.xlu0 %89  ;;  %v157_v29 = vmul.f32 %v3225_v31, %v100_v11 }
  0xc3   :  { %v155_v14 = vmul.f32 %v3225_v31, %v90_v12 }
  0xc4   :  { %v258_v38 = vadd.f32 %v242_v27, %v157_v29 }
  0xc5   :  { %v105_v13 = vpop.permute.xlu1 %104  ;;  %v256_v17 = vadd.f32 %v240_v15, %v155_v14 }
  0xc6   :  { %v158_v22 = vmul.f32 %v3225_v31, %v105_v13  ;;  %v115_v52 = vpop.permute.xlu0 %114 }
  0xc7   :  { %v357_v24 = vadd.f32 %v341_v16, %v256_v17  ;;  %v160_v61 = vmul.f32 %v3225_v31, %v115_v52 }
  0xc9   :  { %v3279_v34 = vadd.f32 %v3245_v50, %v357_v24 }
  0xca   :  { %v198_v18 = vpop.permute.xlu1 %197  ;;  %v120_v54 = vpop.permute.xlu0 %119 }
  0xcb   :  { %v243_v19 = vmul.f32 %v3220_v30, %v198_v18  ;;  %v396_v42 = vmax.f32 %v3279_v34, 0.0  ;;  %v161_v7 = vmul.f32 %v3225_v31, %v120_v54 }
  0xcd   :  { %v259_v25 = vadd.f32 %v243_v19, %v158_v22 }
  0xce   :  { %v130_v57 = vpop.permute.xlu0 %129 }
  0xcf   :  { %v291_v26 = vpop.permute.xlu1 %290  ;;  %v360_v32 = vadd.f32 %v344_v23, %v259_v25 }
  0xd0   :  { %v342_v33 = vmul.f32 %v3232_v35, %v291_v26 }
  0xd1   :  { %v3287_v40 = vadd.f32 %v3245_v50, %v360_v32 }
  0xd2   :  { %v358_v36 = vadd.f32 %v342_v33, %v257_v28 }
  0xd3   :  { %v295_v37 = vpop.permute.xlu1 %294  ;;  %v399_v48 = vmax.f32 %v3287_v40, 0.0  ;;  %v210_v3 = vpop.permute.xlu0 %209 }
  0xd4   :  { %v3282_v39 = vadd.f32 %v3245_v50, %v358_v36  ;;  %v343_v41 = vmul.f32 %v3232_v35, %v295_v37  ;;  %v246_v8 = vmul.f32 %v3220_v30, %v210_v3  ;;  %v2996_v3 = vld [vmem:[#allocation3 + $0x8] sm:$0xff]  }
  0xd6   :  { %v397_v43 = vmax.f32 %v3282_v39, 0.0  ;;  %v359_v44 = vadd.f32 %v343_v41, %v258_v38  ;;  %v262_v14 = vadd.f32 %v246_v8, %v161_v7 }
  0xd7   :  { %v222_v37 = vpop.permute.xlu0 %221 }
  0xd8   :  { %v3291_v45 = vadd.f32 %v3245_v50, %v359_v44  ;;  %v110_v46 = vpop.permute.xlu1 %109  ;;  %v410_v47 = vpack.c.bf16 %v397_v43, %v396_v42 }
  0xd9   :  { %v159_v5 = vmul.f32 %v3225_v31, %v110_v46 }
  0xda   :  { %v398_v49 = vmax.f32 %v3291_v45, 0.0  ;;  %2693 = vmatprep.mubr.msk.bf16.mxu0 %vm439_vm0, %v410_v47 }
  0xdb   :  { %v226_v42 = vpop.permute.xlu0 %225 }
  0xdc   :  { %v411_v51 = vpack.c.bf16 %v399_v48, %v398_v49  ;;  %v163_v48 = vmul.f32 %v3225_v31, %v130_v57 }
  0xdd   :  { %v202_v53 = vpop.permute.xlu1 %201 }
  0xde   :  { %2694 = vmatmul.mubr.msk.bf16.gmra.mrb[4].mxu0 %vm439_vm0, %v411_v51  ;;  %v244_v4 = vmul.f32 %v3220_v30, %v202_v53 }
  0xe0   :  { %v260_v11 = vadd.f32 %v244_v4, %v159_v5  ;;  %v319_v47 = vpop.permute.xlu0 %318  ;;  %v250_v5 = vmul.f32 %v3220_v30, %v226_v42 }
  0xe1   :  { %v206_v55 = vpop.permute.xlu1 %205  ;;  %v349_v51 = vmul.f32 %v3232_v35, %v319_v47 }
  0xe2   :  { %v245_v59 = vmul.f32 %v3220_v30, %v206_v55  ;;  %v2995_v55 = vld [vmem:[#allocation3] sm:$0xff]  }
  0xe3   :  { %2705 = vmatprep.subr.bf16.mxu1 %v2995_v55 }
  0xe4   :  { %v261_v1 = vadd.f32 %v245_v59, %v160_v61  ;;  %v331_v54 = vpop.permute.xlu0 %330 }
  0xe6   :  { %v125_v56 = vpop.permute.xlu1 %124  ;;  %v362_v6 = vadd.f32 %v346_v62, %v261_v1 }
  0xe7   :  { %v162_v19 = vmul.f32 %v3225_v31, %v125_v56  ;;  %v249_v56 = vmul.f32 %v3220_v30, %v222_v37 }
  0xe8   :  { %v3306_v10 = vadd.f32 %v3245_v50, %v362_v6 }
  0xea   :  { %v401_v22 = vmax.f32 %v3306_v10, 0.0 }
  0xeb   :  { %v214_v2 = vpop.permute.xlu1 %213 }
  0xec   :  { %v247_v16 = vmul.f32 %v3220_v30, %v214_v2  ;;  %v352_v2 = vmul.f32 %v3232_v35, %v331_v54 }
  0xee   :  { %v263_v24 = vadd.f32 %v247_v16, %v162_v19 }
  0xf0   :  { %v303_v9 = vpop.permute.xlu1 %302 }
  0xf1   :  { %v345_v12 = vmul.f32 %v3232_v35, %v303_v9 }
  0xf3   :  { %v361_v13 = vadd.f32 %v345_v12, %v260_v11 }
  0xf4   :  { %v311_v15 = vpop.permute.xlu1 %310 }
  0xf5   :  { %v3310_v17 = vadd.f32 %v3245_v50, %v361_v13  ;;  %v347_v18 = vmul.f32 %v3232_v35, %v311_v15 }
  0xf7   :  { %v363_v20 = vadd.f32 %v347_v18, %v262_v14  ;;  %v400_v21 = vmax.f32 %v3310_v17, 0.0 }
  0xf8   :  { %v315_v23 = vpop.permute.xlu1 %314 }
  0xf9   :  { %v348_v25 = vmul.f32 %v3232_v35, %v315_v23  ;;  %v412_v26 = vpack.c.bf16 %v401_v22, %v400_v21  ;;  %v3318_v27 = vadd.f32 %v3245_v50, %v363_v20 }
  0xfb   :  { %v364_v28 = vadd.f32 %v348_v25, %v263_v24  ;;  %2697 = vmatprep.mubr.msk.bf16.mxu1 %vm439_vm0, %v412_v26  ;;  %v402_v32 = vmax.f32 %v3318_v27, 0.0 }
  0xfd   :  { %v3322_v29 = vadd.f32 %v3245_v50, %v364_v28  ;;  %v135_v33 = vpop.permute.xlu1 %134 }
  0xfe   :  { %v164_v59 = vmul.f32 %v3225_v31, %v135_v33 }
  0xff   :  { %v403_v36 = vmax.f32 %v3322_v29, 0.0 }
 0x100   :  { %v265_v4 = vadd.f32 %v249_v56, %v164_v59 }
 0x101   :  { %v413_v38 = vpack.c.bf16 %v403_v36, %v402_v32 }
 0x102   :  { %v218_v41 = vpop.permute.xlu1 %217 }
 0x103   :  { %2698 = vmatmul.mubr.msk.bf16.vlgmr.msra.gmra.mrb[0].mxu1 %vm439_vm0, %v413_v38  ;;  %v248_v46 = vmul.f32 %v3220_v30, %v218_v41 }
 0x104   :  { %2706 = vmatpush3.bf16.msra.mxu1 %v2995_v55 }
 0x105   :  { %v264_v49 = vadd.f32 %v248_v46, %v163_v48  ;;  %2707 = vmatprep.subr.bf16.mxu1 %v2996_v3 }
 0x107   :  { %v140_v43 = vpop.permute.xlu1 %139  ;;  %v365_v62 = vadd.f32 %v349_v51, %v264_v49 }
 0x108   :  { %v165_v6 = vmul.f32 %v3225_v31, %v140_v43  ;;  %2708 = vmatpush3.bf16.msra.mxu1 %v2996_v3 }
 0x109   :  { %v3339_v8 = vadd.f32 %v3245_v50, %v365_v62 }
 0x10a   :  { %v266_v13 = vadd.f32 %v250_v5, %v165_v6 }
 0x10b   :  { %v145_v44 = vpop.permute.xlu1 %144 }
 0x10c   :  { %v166_v61 = vmul.f32 %v3225_v31, %v145_v44 }
 0x110   :  { %v230_v52 = vpop.permute.xlu1 %229 }
 0x111   :  { %v251_v53 = vmul.f32 %v3220_v30, %v230_v52  ;;  %v404_v30 = vmax.f32 %v3339_v8, 0.0 }
 0x113   :  { %v267_v1 = vadd.f32 %v251_v53, %v166_v61 }
 0x115   :  { %v323_v57 = vpop.permute.xlu1 %322  ;;  %v368_v9 = vadd.f32 %v352_v2, %v267_v1 }
 0x116   :  { %v350_v7 = vmul.f32 %v3232_v35, %v323_v57 }
 0x117   :  { %v3347_v31 = vadd.f32 %v3245_v50, %v368_v9 }
 0x118   :  { %v366_v11 = vadd.f32 %v350_v7, %v265_v4 }
 0x119   :  { %v327_v12 = vpop.permute.xlu1 %326  ;;  %v407_v21 = vmax.f32 %v3347_v31, 0.0 }
 0x11a   :  { %v3342_v14 = vadd.f32 %v3245_v50, %v366_v11  ;;  %v351_v15 = vmul.f32 %v3232_v35, %v327_v12  ;;  %v2417_v35 = vld [vmem:[%s3895_s4] ss:$0 sm:$0xff] }
 0x11c   :  { %v405_v16 = vmax.f32 %v3342_v14, 0.0  ;;  %v367_v18 = vadd.f32 %v351_v15, %v266_v13 }
 0x11e   :  { %v3351_v19 = vadd.f32 %v3245_v50, %v367_v18  ;;  %v414_v20 = vpack.c.bf16 %v405_v16, %v404_v30  ;;  %v2997_v18 = vld [vmem:[%s3894_s3 + $0x10] sm:$0xff]  }
 0x11f   :  { %2725 = vmatprep.subr.bf16.mxu0 %v2997_v18 }
 0x120   :  { %v406_v22 = vmax.f32 %v3351_v19, 0.0  ;;  %2701 = vmatprep.mubr.msk.bf16.mxu1 %vm439_vm0, %v414_v20  ;;  %2726 = vmatpush3.bf16.msra.mxu0 %v2997_v18  ;;  %v2998_v20 = vld [vmem:[%s3894_s3 + $0x18] sm:$0xff]  }
 0x121   :  { %2727 = vmatprep.subr.bf16.mxu0 %v2998_v20 }
 0x122   :  { %v415_v23 = vpack.c.bf16 %v407_v21, %v406_v22 }
 0x124   :  { %2702 = vmatmul.mubr.msk.bf16.gmra.mrb[4].mxu1 %vm439_vm0, %v415_v23  ;;  %2728 = vmatpush3.bf16.msra.mxu0 %v2998_v20 }
 0x190   :  { %v2691_v24 = vpop.f32.mrb[0].mxu0 }
 0x191   :  { %v507_v25 = vadd.f32 %v2691_v24, %v2417_v35  ;;  %v498_v26 = vpop.f32.mrb[1].mxu0 }
 0x192   :  { %v499_v28 = vadd.f32 %v2417_v35, %v498_v26  ;;  %v2692_v50 = vpop.f32.mrb[2].mxu0 }
 0x193   :  { %v510_v33 = vadd.f32 %v2692_v50, %v2417_v35  ;;  %v501_v32 = vpop.f32.mrb[3].mxu0  ;;  %v563_v37 = vmax.f32 %v507_v25, 0.0 }
 0x194   :  { %v502_v36 = vadd.f32 %v2417_v35, %v501_v32  ;;  %v561_v41 = vmax.f32 %v499_v28, 0.0 }
 0x195   :  { %v564_v38 = vmax.f32 %v510_v33, 0.0 }
 0x196   :  { %v562_v42 = vmax.f32 %v502_v36, 0.0 }
 0x197   :  { %v578_v43 = vpack.c.bf16 %v564_v38, %v563_v37 }
 0x198   :  { %v577_v44 = vpack.c.bf16 %v562_v42, %v561_v41 }
 0x19a   :  { %2709 = vmatprep.mubr.msk.bf16.mxu1 %vm439_vm0, %v577_v44  ;;  %v3378_v44 = vld [vmem:[%s3897_s6] ss:$0 sm:$0xff] }
 0x19b   :  { %2710 = vmatmul.mubr.msk.bf16.vlgmr.msra.gmra.mrb[8].mxu1 %vm439_vm0, %v578_v43 }
 0x1b1   :  { %v2695_v46 = vpop.f32.mrb[4].mxu0 }
 0x1b2   :  { %v523_v47 = vadd.f32 %v2695_v46, %v2417_v35  ;;  %v514_v48 = vpop.f32.mrb[5].mxu0 }
 0x1b3   :  { %v515_v49 = vadd.f32 %v2417_v35, %v514_v48  ;;  %v2696_v51 = vpop.f32.mrb[6].mxu0 }
 0x1b4   :  { %v526_v52 = vadd.f32 %v2696_v51, %v2417_v35  ;;  %v517_v53 = vpop.f32.mrb[7].mxu0  ;;  %v567_v55 = vmax.f32 %v523_v47, 0.0 }
 0x1b5   :  { %v518_v54 = vadd.f32 %v2417_v35, %v517_v53  ;;  %v565_v59 = vmax.f32 %v515_v49, 0.0 }
 0x1b6   :  { %v568_v56 = vmax.f32 %v526_v52, 0.0 }
 0x1b7   :  { %v566_v61 = vmax.f32 %v518_v54, 0.0 }
 0x1b8   :  { %v580_v62 = vpack.c.bf16 %v568_v56, %v567_v55 }
 0x1b9   :  { %v579_v1 = vpack.c.bf16 %v566_v61, %v565_v59 }
 0x1bb   :  { %2713 = vmatprep.mubr.msk.bf16.mxu1 %vm439_vm0, %v579_v1 }
 0x1bc   :  { %2714 = vmatmul.mubr.msk.bf16.gmra.mrb[12].mxu1 %vm439_vm0, %v580_v62 }
 0x1d6   :  { %v2699_v2 = vpop.f32.mrb[0].mxu1 }
 0x1d7   :  { %v539_v57 = vadd.f32 %v2699_v2, %v2417_v35  ;;  %v530_v3 = vpop.f32.mrb[1].mxu1 }
 0x1d8   :  { %v531_v4 = vadd.f32 %v2417_v35, %v530_v3  ;;  %v2700_v5 = vpop.f32.mrb[2].mxu1 }
 0x1d9   :  { %v542_v6 = vadd.f32 %v2700_v5, %v2417_v35  ;;  %v533_v7 = vpop.f32.mrb[3].mxu1  ;;  %v571_v11 = vmax.f32 %v539_v57, 0.0 }
 0x1da   :  { %v534_v9 = vadd.f32 %v2417_v35, %v533_v7  ;;  %v569_v13 = vmax.f32 %v531_v4, 0.0 }
 0x1db   :  { %v572_v12 = vmax.f32 %v542_v6, 0.0 }
 0x1dc   :  { %v570_v15 = vmax.f32 %v534_v9, 0.0 }
 0x1dd   :  { %v582_v30 = vpack.c.bf16 %v572_v12, %v571_v11 }
 0x1de   :  { %v581_v16 = vpack.c.bf16 %v570_v15, %v569_v13 }
 0x1e0   :  { %2717 = vmatprep.mubr.msk.bf16.mxu1 %vm439_vm0, %v581_v16 }
 0x1e1   :  { %2718 = vmatmul.mubr.msk.bf16.gmra.mrb[16].mxu1 %vm439_vm0, %v582_v30 }
 0x1f7   :  { %v2703_v21 = vpop.f32.mrb[4].mxu1 }
 0x1f8   :  { %v555_v22 = vadd.f32 %v2703_v21, %v2417_v35  ;;  %v546_v23 = vpop.f32.mrb[5].mxu1 }
 0x1f9   :  { %v547_v24 = vadd.f32 %v2417_v35, %v546_v23  ;;  %v2704_v25 = vpop.f32.mrb[6].mxu1 }
 0x1fa   :  { %v558_v26 = vadd.f32 %v2704_v25, %v2417_v35  ;;  %v549_v28 = vpop.f32.mrb[7].mxu1  ;;  %v575_v33 = vmax.f32 %v555_v22, 0.0 }
 0x1fb   :  { %v550_v50 = vadd.f32 %v2417_v35, %v549_v28  ;;  %v573_v36 = vmax.f32 %v547_v24, 0.0 }
 0x1fc   :  { %v576_v32 = vmax.f32 %v558_v26, 0.0 }
 0x1fd   :  { %v574_v37 = vmax.f32 %v550_v50, 0.0 }
 0x1fe   :  { %v584_v38 = vpack.c.bf16 %v576_v32, %v575_v33 }
 0x1ff   :  { %v583_v41 = vpack.c.bf16 %v574_v37, %v573_v36  ;;  %v3000_v36 = vld [vmem:[#allocation3 + $0x18] sm:$0xff]  }
 0x201   :  { %2721 = vmatprep.mubr.msk.bf16.mxu1 %vm439_vm0, %v583_v41 }
 0x202   :  { %2722 = vmatmul.mubr.msk.bf16.gmra.mrb[20].mxu1 %vm439_vm0, %v584_v38 }
 0x26e   :  { %v2711_v42 = vpop.f32.mrb[8].mxu1 }
 0x26f   :  { %v724_v43 = vadd.f32 %v2711_v42, %v3253_v60  ;;  %v659_v46 = vpop.f32.mrb[9].mxu1 }
 0x270   :  { %v722_v35 = vadd.f32 %v659_v46, %v3250_v58  ;;  %v2712_v47 = vpop.f32.mrb[10].mxu1 }
 0x271   :  { %v725_v48 = vadd.f32 %v2712_v47, %v3259_v0  ;;  %v662_v49 = vpop.f32.mrb[11].mxu1  ;;  %v3387_v53 = vadd.f32 %v3378_v44, %v724_v43 }
 0x272   :  { %v3383_v51 = vadd.f32 %v3378_v44, %v722_v35  ;;  %v723_v52 = vadd.f32 %v662_v49, %v3256_v63 }
 0x273   :  { %v3390_v60 = vadd.f32 %v3378_v44, %v725_v48  ;;  %v763_v56 = vmax.f32 %v3387_v53, 0.0 }
 0x274   :  { %v3393_v54 = vadd.f32 %v3378_v44, %v723_v52  ;;  %v761_v55 = vmax.f32 %v3383_v51, 0.0 }
 0x275   :  { %v764_v58 = vmax.f32 %v3390_v60, 0.0 }
 0x276   :  { %v762_v0 = vmax.f32 %v3393_v54, 0.0 }
 0x277   :  { %v778_v61 = vpack.c.bf16 %v764_v58, %v763_v56 }
 0x278   :  { %v777_v59 = vpack.c.bf16 %v762_v0, %v761_v55 }
 0x27a   :  { %2729 = vmatprep.mubr.msk.bf16.mxu0 %vm439_vm0, %v777_v59 }
 0x27b   :  { %2730 = vmatmul.mubr.msk.bf16.vlgmr.msra.gmra.mrb[8].mxu0 %vm439_vm0, %v778_v61 }
 0x28f   :  { %v2715_v63 = vpop.f32.mrb[12].mxu1 }
 0x290   :  { %v728_v62 = vadd.f32 %v2715_v63, %v3291_v45  ;;  %v675_v1 = vpop.f32.mrb[13].mxu1 }
 0x291   :  { %v726_v2 = vadd.f32 %v675_v1, %v3279_v34  ;;  %v2716_v57 = vpop.f32.mrb[14].mxu1 }
 0x292   :  { %v729_v3 = vadd.f32 %v2716_v57, %v3287_v40  ;;  %v678_v4 = vpop.f32.mrb[15].mxu1  ;;  %v3409_v7 = vadd.f32 %v3378_v44, %v728_v62 }
 0x293   :  { %v3405_v5 = vadd.f32 %v3378_v44, %v726_v2  ;;  %v727_v6 = vadd.f32 %v678_v4, %v3282_v39 }
 0x294   :  { %v3412_v9 = vadd.f32 %v3378_v44, %v729_v3  ;;  %v767_v12 = vmax.f32 %v3409_v7, 0.0 }
 0x295   :  { %v3415_v45 = vadd.f32 %v3378_v44, %v727_v6  ;;  %v765_v11 = vmax.f32 %v3405_v5, 0.0 }
 0x296   :  { %v768_v34 = vmax.f32 %v3412_v9, 0.0 }
 0x297   :  { %v766_v40 = vmax.f32 %v3415_v45, 0.0 }
 0x298   :  { %v780_v15 = vpack.c.bf16 %v768_v34, %v767_v12 }
 0x299   :  { %v779_v13 = vpack.c.bf16 %v766_v40, %v765_v11 }
 0x29b   :  { %2733 = vmatprep.mubr.msk.bf16.mxu0 %vm439_vm0, %v779_v13 }
 0x29c   :  { %2734 = vmatmul.mubr.msk.bf16.gmra.mrb[12].mxu0 %vm439_vm0, %v780_v15 }
 0x2b4   :  { %v2719_v39 = vpop.f32.mrb[16].mxu1 }
 0x2b5   :  { %v732_v30 = vadd.f32 %v2719_v39, %v3318_v27  ;;  %v691_v16 = vpop.f32.mrb[17].mxu1 }
 0x2b6   :  { %v730_v18 = vadd.f32 %v691_v16, %v3310_v17  ;;  %v2720_v20 = vpop.f32.mrb[18].mxu1 }
 0x2b7   :  { %v733_v21 = vadd.f32 %v2720_v20, %v3322_v29  ;;  %v694_v22 = vpop.f32.mrb[19].mxu1  ;;  %v3431_v25 = vadd.f32 %v3378_v44, %v732_v30 }
 0x2b8   :  { %v3427_v23 = vadd.f32 %v3378_v44, %v730_v18  ;;  %v731_v24 = vadd.f32 %v694_v22, %v3306_v10  ;;  %v2999_v10 = vld [vmem:[#allocation3 + $0x10] sm:$0xff]  }
 0x2b9   :  { %v3434_v26 = vadd.f32 %v3378_v44, %v733_v21  ;;  %v771_v50 = vmax.f32 %v3431_v25, 0.0  ;;  %2745 = vmatprep.subr.bf16.mxu1 %v2999_v10 }
 0x2ba   :  { %v3437_v27 = vadd.f32 %v3378_v44, %v731_v24  ;;  %v769_v28 = vmax.f32 %v3427_v23, 0.0  ;;  %2746 = vmatpush3.bf16.msra.mxu1 %v2999_v10 }
 0x2bb   :  { %v772_v17 = vmax.f32 %v3434_v26, 0.0  ;;  %2747 = vmatprep.subr.bf16.mxu1 %v3000_v36 }
 0x2bc   :  { %v770_v29 = vmax.f32 %v3437_v27, 0.0 }
 0x2bd   :  { %v782_v32 = vpack.c.bf16 %v772_v17, %v771_v50 }
 0x2be   :  { %v781_v33 = vpack.c.bf16 %v770_v29, %v769_v28  ;;  %2748 = vmatpush3.bf16.msra.mxu1 %v3000_v36 }
 0x2c0   :  { %2737 = vmatprep.mubr.msk.bf16.mxu0 %vm439_vm0, %v781_v33 }
 0x2c1   :  { %2738 = vmatmul.mubr.msk.bf16.gmra.mrb[16].mxu0 %vm439_vm0, %v782_v32 }
 0x2d5   :  { %v2723_v37 = vpop.f32.mrb[20].mxu1 }
 0x2d6   :  { %v736_v38 = vadd.f32 %v2723_v37, %v3351_v19  ;;  %v707_v41 = vpop.f32.mrb[21].mxu1 }
 0x2d7   :  { %v734_v42 = vadd.f32 %v707_v41, %v3339_v8  ;;  %v2724_v43 = vpop.f32.mrb[22].mxu1 }
 0x2d8   :  { %v737_v46 = vadd.f32 %v2724_v43, %v3347_v31  ;;  %v710_v35 = vpop.f32.mrb[23].mxu1  ;;  %v3453_v49 = vadd.f32 %v3378_v44, %v736_v38 }
 0x2d9   :  { %v3449_v47 = vadd.f32 %v3378_v44, %v734_v42  ;;  %v735_v48 = vadd.f32 %v710_v35, %v3342_v14  ;;  %v2444_v14 = vld [vmem:[%s3895_s4 + $0x1] ss:$0 sm:$0xff] }
 0x2da   :  { %v3456_v52 = vadd.f32 %v3378_v44, %v737_v46  ;;  %v775_v55 = vmax.f32 %v3453_v49, 0.0 }
 0x2db   :  { %v3459_v19 = vadd.f32 %v3378_v44, %v735_v48  ;;  %v773_v58 = vmax.f32 %v3449_v47, 0.0 }
 0x2dc   :  { %v776_v8 = vmax.f32 %v3456_v52, 0.0 }
 0x2dd   :  { %v774_v31 = vmax.f32 %v3459_v19, 0.0 }
 0x2de   :  { %v784_v56 = vpack.c.bf16 %v776_v8, %v775_v55 }
 0x2df   :  { %v783_v0 = vpack.c.bf16 %v774_v31, %v773_v58  ;;  %v3001_v58 = vld [vmem:[%s3894_s3 + $0x20] sm:$0xff]   ;;  %v3002_v31 = vld [vmem:[%s3894_s3 + $0x28] sm:$0xff]  }
 0x2e0   :  { %2765 = vmatprep.subr.bf16.mxu0 %v3001_v58 }
 0x2e1   :  { %2741 = vmatprep.mubr.msk.bf16.mxu0 %vm439_vm0, %v783_v0  ;;  %2766 = vmatpush3.bf16.msra.mxu0 %v3001_v58 }
 0x2e2   :  { %2742 = vmatmul.mubr.msk.bf16.gmra.mrb[20].mxu0 %vm439_vm0, %v784_v56  ;;  %2767 = vmatprep.subr.bf16.mxu0 %v3002_v31 }
 0x2e5   :  { %2768 = vmatpush3.bf16.msra.mxu0 %v3002_v31 }
 0x34e   :  { %v2731_v44 = vpop.f32.mrb[8].mxu0 }
 0x34f   :  { %v877_v59 = vadd.f32 %v2731_v44, %v2444_v14  ;;  %v868_v61 = vpop.f32.mrb[9].mxu0 }
 0x350   :  { %v869_v63 = vadd.f32 %v2444_v14, %v868_v61  ;;  %v2732_v62 = vpop.f32.mrb[10].mxu0 }
 0x351   :  { %v880_v1 = vadd.f32 %v2732_v62, %v2444_v14  ;;  %v871_v2 = vpop.f32.mrb[11].mxu0  ;;  %v933_v3 = vmax.f32 %v877_v59, 0.0 }
 0x352   :  { %v872_v57 = vadd.f32 %v2444_v14, %v871_v2  ;;  %v931_v6 = vmax.f32 %v869_v63, 0.0 }
 0x353   :  { %v934_v4 = vmax.f32 %v880_v1, 0.0 }
 0x354   :  { %v932_v34 = vmax.f32 %v872_v57, 0.0 }
 0x355   :  { %v948_v11 = vpack.c.bf16 %v934_v4, %v933_v3 }
 0x356   :  { %v947_v40 = vpack.c.bf16 %v932_v34, %v931_v6 }
 0x358   :  { %2749 = vmatprep.mubr.msk.bf16.mxu1 %vm439_vm0, %v947_v40  ;;  %v3488_v40 = vld [vmem:[%s3897_s6 + $0x1] ss:$0 sm:$0xff] }
 0x359   :  { %2750 = vmatmul.mubr.msk.bf16.vlgmr.msra.gmra.mrb[24].mxu1 %vm439_vm0, %v948_v11 }
 0x36f   :  { %v2735_v12 = vpop.f32.mrb[12].mxu0 }
 0x370   :  { %v893_v13 = vadd.f32 %v2735_v12, %v2444_v14  ;;  %v884_v15 = vpop.f32.mrb[13].mxu0 }
 0x371   :  { %v885_v39 = vadd.f32 %v2444_v14, %v884_v15  ;;  %v2736_v30 = vpop.f32.mrb[14].mxu0 }
 0x372   :  { %v896_v16 = vadd.f32 %v2736_v30, %v2444_v14  ;;  %v887_v18 = vpop.f32.mrb[15].mxu0  ;;  %v937_v21 = vmax.f32 %v893_v13, 0.0 }
 0x373   :  { %v888_v20 = vadd.f32 %v2444_v14, %v887_v18  ;;  %v935_v24 = vmax.f32 %v885_v39, 0.0 }
 0x374   :  { %v938_v22 = vmax.f32 %v896_v16, 0.0 }
 0x375   :  { %v936_v17 = vmax.f32 %v888_v20, 0.0 }
 0x376   :  { %v950_v28 = vpack.c.bf16 %v938_v22, %v937_v21 }
 0x377   :  { %v949_v29 = vpack.c.bf16 %v936_v17, %v935_v24 }
 0x379   :  { %2753 = vmatprep.mubr.msk.bf16.mxu1 %vm439_vm0, %v949_v29 }
 0x37a   :  { %2754 = vmatmul.mubr.msk.bf16.gmra.mrb[28].mxu1 %vm439_vm0, %v950_v28 }
 0x394   :  { %v2739_v50 = vpop.f32.mrb[16].mxu0 }
 0x395   :  { %v909_v33 = vadd.f32 %v2739_v50, %v2444_v14  ;;  %v900_v32 = vpop.f32.mrb[17].mxu0 }
 0x396   :  { %v901_v10 = vadd.f32 %v2444_v14, %v900_v32  ;;  %v2740_v36 = vpop.f32.mrb[18].mxu0 }
 0x397   :  { %v912_v37 = vadd.f32 %v2740_v36, %v2444_v14  ;;  %v903_v38 = vpop.f32.mrb[19].mxu0  ;;  %v941_v42 = vmax.f32 %v909_v33, 0.0 }
 0x398   :  { %v904_v41 = vadd.f32 %v2444_v14, %v903_v38  ;;  %v939_v46 = vmax.f32 %v901_v10, 0.0 }
 0x399   :  { %v942_v43 = vmax.f32 %v912_v37, 0.0 }
 0x39a   :  { %v940_v35 = vmax.f32 %v904_v41, 0.0 }
 0x39b   :  { %v952_v48 = vpack.c.bf16 %v942_v43, %v941_v42 }
 0x39c   :  { %v951_v8 = vpack.c.bf16 %v940_v35, %v939_v46 }
 0x39e   :  { %2757 = vmatprep.mubr.msk.bf16.mxu1 %vm439_vm0, %v951_v8 }
 0x39f   :  { %2758 = vmatmul.mubr.msk.bf16.gmra.mrb[32].mxu1 %vm439_vm0, %v952_v48 }
 0x3b5   :  { %v2743_v55 = vpop.f32.mrb[20].mxu0 }
 0x3b6   :  { %v925_v0 = vadd.f32 %v2743_v55, %v2444_v14  ;;  %v916_v56 = vpop.f32.mrb[21].mxu0 }
 0x3b7   :  { %v917_v44 = vadd.f32 %v2444_v14, %v916_v56  ;;  %v2744_v59 = vpop.f32.mrb[22].mxu0 }
 0x3b8   :  { %v928_v61 = vadd.f32 %v2744_v59, %v2444_v14  ;;  %v919_v63 = vpop.f32.mrb[23].mxu0  ;;  %v945_v1 = vmax.f32 %v925_v0, 0.0 }
 0x3b9   :  { %v920_v62 = vadd.f32 %v2444_v14, %v919_v63  ;;  %v943_v57 = vmax.f32 %v917_v44, 0.0 }
 0x3ba   :  { %v946_v2 = vmax.f32 %v928_v61, 0.0 }
 0x3bb   :  { %v944_v3 = vmax.f32 %v920_v62, 0.0 }
 0x3bc   :  { %v954_v4 = vpack.c.bf16 %v946_v2, %v945_v1 }
 0x3bd   :  { %v953_v6 = vpack.c.bf16 %v944_v3, %v943_v57  ;;  %v3004_v57 = vld [vmem:[#allocation3 + $0x28] sm:$0xff]  }
 0x3bf   :  { %2761 = vmatprep.mubr.msk.bf16.mxu1 %vm439_vm0, %v953_v6 }
 0x3c0   :  { %2762 = vmatmul.mubr.msk.bf16.gmra.mrb[36].mxu1 %vm439_vm0, %v954_v4 }
 0x42c   :  { %v2751_v34 = vpop.f32.mrb[24].mxu1 }
 0x42d   :  { %v1095_v11 = vadd.f32 %v2751_v34, %v3387_v53  ;;  %v1030_v12 = vpop.f32.mrb[25].mxu1 }
 0x42e   :  { %v1093_v14 = vadd.f32 %v1030_v12, %v3383_v51  ;;  %v2752_v13 = vpop.f32.mrb[26].mxu1 }
 0x42f   :  { %v1096_v15 = vadd.f32 %v2752_v13, %v3390_v60  ;;  %v1033_v39 = vpop.f32.mrb[27].mxu1  ;;  %v3497_v18 = vadd.f32 %v3488_v40, %v1095_v11 }
 0x430   :  { %v3493_v30 = vadd.f32 %v3488_v40, %v1093_v14  ;;  %v1094_v16 = vadd.f32 %v1033_v39, %v3393_v54 }
 0x431   :  { %v3500_v53 = vadd.f32 %v3488_v40, %v1096_v15  ;;  %v1135_v22 = vmax.f32 %v3497_v18, 0.0 }
 0x432   :  { %v3503_v20 = vadd.f32 %v3488_v40, %v1094_v16  ;;  %v1133_v21 = vmax.f32 %v3493_v30, 0.0 }
 0x433   :  { %v1136_v51 = vmax.f32 %v3500_v53, 0.0 }
 0x434   :  { %v1134_v60 = vmax.f32 %v3503_v20, 0.0 }
 0x435   :  { %v1150_v17 = vpack.c.bf16 %v1136_v51, %v1135_v22 }
 0x436   :  { %v1149_v24 = vpack.c.bf16 %v1134_v60, %v1133_v21 }
 0x438   :  { %2769 = vmatprep.mubr.msk.bf16.mxu0 %vm439_vm0, %v1149_v24 }
 0x439   :  { %2770 = vmatmul.mubr.msk.bf16.vlgmr.msra.gmra.mrb[24].mxu0 %vm439_vm0, %v1150_v17 }
 0x44d   :  { %v2755_v54 = vpop.f32.mrb[28].mxu1 }
 0x44e   :  { %v1099_v28 = vadd.f32 %v2755_v54, %v3409_v7  ;;  %v1046_v29 = vpop.f32.mrb[29].mxu1 }
 0x44f   :  { %v1097_v50 = vadd.f32 %v1046_v29, %v3405_v5  ;;  %v2756_v33 = vpop.f32.mrb[30].mxu1 }
 0x450   :  { %v1100_v32 = vadd.f32 %v2756_v33, %v3412_v9  ;;  %v1049_v10 = vpop.f32.mrb[31].mxu1  ;;  %v3519_v38 = vadd.f32 %v3488_v40, %v1099_v28 }
 0x451   :  { %v3515_v36 = vadd.f32 %v3488_v40, %v1097_v50  ;;  %v1098_v37 = vadd.f32 %v1049_v10, %v3415_v45 }
 0x452   :  { %v3522_v41 = vadd.f32 %v3488_v40, %v1100_v32  ;;  %v1139_v43 = vmax.f32 %v3519_v38, 0.0 }
 0x453   :  { %v3525_v7 = vadd.f32 %v3488_v40, %v1098_v37  ;;  %v1137_v42 = vmax.f32 %v3515_v36, 0.0 }
 0x454   :  { %v1140_v5 = vmax.f32 %v3522_v41, 0.0 }
 0x455   :  { %v1138_v9 = vmax.f32 %v3525_v7, 0.0 }
 0x456   :  { %v1152_v35 = vpack.c.bf16 %v1140_v5, %v1139_v43 }
 0x457   :  { %v1151_v46 = vpack.c.bf16 %v1138_v9, %v1137_v42 }
 0x459   :  { %2773 = vmatprep.mubr.msk.bf16.mxu0 %vm439_vm0, %v1151_v46 }
 0x45a   :  { %2774 = vmatmul.mubr.msk.bf16.gmra.mrb[28].mxu0 %vm439_vm0, %v1152_v35 }
 0x472   :  { %v2759_v45 = vpop.f32.mrb[32].mxu1 }
 0x473   :  { %v1103_v48 = vadd.f32 %v2759_v45, %v3431_v25  ;;  %v1062_v8 = vpop.f32.mrb[33].mxu1 }
 0x474   :  { %v1101_v58 = vadd.f32 %v1062_v8, %v3427_v23  ;;  %v2760_v31 = vpop.f32.mrb[34].mxu1 }
 0x475   :  { %v1104_v55 = vadd.f32 %v2760_v31, %v3434_v26  ;;  %v1065_v0 = vpop.f32.mrb[35].mxu1  ;;  %v3541_v59 = vadd.f32 %v3488_v40, %v1103_v48 }
 0x476   :  { %v3537_v56 = vadd.f32 %v3488_v40, %v1101_v58  ;;  %v1102_v44 = vadd.f32 %v1065_v0, %v3437_v27  ;;  %v3003_v27 = vld [vmem:[#allocation3 + $0x20] sm:$0xff]  }
 0x477   :  { %v3544_v61 = vadd.f32 %v3488_v40, %v1104_v55  ;;  %v1143_v62 = vmax.f32 %v3541_v59, 0.0  ;;  %2785 = vmatprep.subr.bf16.mxu1 %v3003_v27 }
 0x478   :  { %v3547_v25 = vadd.f32 %v3488_v40, %v1102_v44  ;;  %v1141_v63 = vmax.f32 %v3537_v56, 0.0  ;;  %2786 = vmatpush3.bf16.msra.mxu1 %v3003_v27 }
 0x479   :  { %v1144_v23 = vmax.f32 %v3544_v61, 0.0  ;;  %2787 = vmatprep.subr.bf16.mxu1 %v3004_v57 }
 0x47a   :  { %v1142_v26 = vmax.f32 %v3547_v25, 0.0 }
 0x47b   :  { %v1154_v2 = vpack.c.bf16 %v1144_v23, %v1143_v62 }
 0x47c   :  { %v1153_v1 = vpack.c.bf16 %v1142_v26, %v1141_v63  ;;  %2788 = vmatpush3.bf16.msra.mxu1 %v3004_v57 }
 0x47e   :  { %2777 = vmatprep.mubr.msk.bf16.mxu0 %vm439_vm0, %v1153_v1 }
 0x47f   :  { %2778 = vmatmul.mubr.msk.bf16.gmra.mrb[32].mxu0 %vm439_vm0, %v1154_v2 }
 0x493   :  { %v2763_v3 = vpop.f32.mrb[36].mxu1 }
 0x494   :  { %v1107_v4 = vadd.f32 %v2763_v3, %v3453_v49  ;;  %v1078_v6 = vpop.f32.mrb[37].mxu1 }
 0x495   :  { %v1105_v34 = vadd.f32 %v1078_v6, %v3449_v47  ;;  %v2764_v11 = vpop.f32.mrb[38].mxu1 }
 0x496   :  { %v1108_v12 = vadd.f32 %v2764_v11, %v3456_v52  ;;  %v1081_v14 = vpop.f32.mrb[39].mxu1  ;;  %v3563_v39 = vadd.f32 %v3488_v40, %v1107_v4 }
 0x497   :  { %v3559_v13 = vadd.f32 %v3488_v40, %v1105_v34  ;;  %v1106_v15 = vadd.f32 %v1081_v14, %v3459_v19  ;;  %v2472_v19 = vld [vmem:[%s3895_s4 + $0x2] ss:$0 sm:$0xff] }
 0x498   :  { %v3566_v16 = vadd.f32 %v3488_v40, %v1108_v12  ;;  %v1147_v21 = vmax.f32 %v3563_v39, 0.0 }
 0x499   :  { %v3569_v49 = vadd.f32 %v3488_v40, %v1106_v15  ;;  %v1145_v51 = vmax.f32 %v3559_v13, 0.0 }
 0x49a   :  { %v1148_v47 = vmax.f32 %v3566_v16, 0.0 }
 0x49b   :  { %v1146_v52 = vmax.f32 %v3569_v49, 0.0 }
 0x49c   :  { %v1156_v22 = vpack.c.bf16 %v1148_v47, %v1147_v21 }
 0x49d   :  { %v1155_v60 = vpack.c.bf16 %v1146_v52, %v1145_v51  ;;  %v3005_v51 = vld [vmem:[%s3894_s3 + $0x30] sm:$0xff]   ;;  %v3006_v52 = vld [vmem:[%s3894_s3 + $0x38] sm:$0xff]  }
 0x49e   :  { %2805 = vmatprep.subr.bf16.mxu0 %v3005_v51 }
 0x49f   :  { %2781 = vmatprep.mubr.msk.bf16.mxu0 %vm439_vm0, %v1155_v60  ;;  %2806 = vmatpush3.bf16.msra.mxu0 %v3005_v51 }
 0x4a0   :  { %2782 = vmatmul.mubr.msk.bf16.gmra.mrb[36].mxu0 %vm439_vm0, %v1156_v22  ;;  %2807 = vmatprep.subr.bf16.mxu0 %v3006_v52 }
 0x4a3   :  { %2808 = vmatpush3.bf16.msra.mxu0 %v3006_v52 }
 0x50c   :  { %v2771_v40 = vpop.f32.mrb[24].mxu0 }
 0x50d   :  { %v1249_v24 = vadd.f32 %v2771_v40, %v2472_v19  ;;  %v1240_v17 = vpop.f32.mrb[25].mxu0 }
 0x50e   :  { %v1241_v54 = vadd.f32 %v2472_v19, %v1240_v17  ;;  %v2772_v28 = vpop.f32.mrb[26].mxu0 }
 0x50f   :  { %v1252_v29 = vadd.f32 %v2772_v28, %v2472_v19  ;;  %v1243_v50 = vpop.f32.mrb[27].mxu0  ;;  %v1305_v32 = vmax.f32 %v1249_v24, 0.0 }
 0x510   :  { %v1244_v33 = vadd.f32 %v2472_v19, %v1243_v50  ;;  %v1303_v37 = vmax.f32 %v1241_v54, 0.0 }
 0x511   :  { %v1306_v10 = vmax.f32 %v1252_v29, 0.0 }
 0x512   :  { %v1304_v5 = vmax.f32 %v1244_v33, 0.0 }
 0x513   :  { %v1320_v42 = vpack.c.bf16 %v1306_v10, %v1305_v32 }
 0x514   :  { %v1319_v9 = vpack.c.bf16 %v1304_v5, %v1303_v37 }
 0x516   :  { %2789 = vmatprep.mubr.msk.bf16.mxu1 %vm439_vm0, %v1319_v9  ;;  %v3598_v9 = vld [vmem:[%s3897_s6 + $0x2] ss:$0 sm:$0xff] }
 0x517   :  { %2790 = vmatmul.mubr.msk.bf16.vlgmr.msra.gmra.mrb[40].mxu1 %vm439_vm0, %v1320_v42 }
 0x52d   :  { %v2775_v43 = vpop.f32.mrb[28].mxu0 }
 0x52e   :  { %v1265_v46 = vadd.f32 %v2775_v43, %v2472_v19  ;;  %v1256_v35 = vpop.f32.mrb[29].mxu0 }
 0x52f   :  { %v1257_v45 = vadd.f32 %v2472_v19, %v1256_v35  ;;  %v2776_v48 = vpop.f32.mrb[30].mxu0 }
 0x530   :  { %v1268_v8 = vadd.f32 %v2776_v48, %v2472_v19  ;;  %v1259_v58 = vpop.f32.mrb[31].mxu0  ;;  %v1309_v55 = vmax.f32 %v1265_v46, 0.0 }
 0x531   :  { %v1260_v31 = vadd.f32 %v2472_v19, %v1259_v58  ;;  %v1307_v44 = vmax.f32 %v1257_v45, 0.0 }
 0x532   :  { %v1310_v0 = vmax.f32 %v1268_v8, 0.0 }
 0x533   :  { %v1308_v23 = vmax.f32 %v1260_v31, 0.0 }
 0x534   :  { %v1322_v63 = vpack.c.bf16 %v1310_v0, %v1309_v55 }
 0x535   :  { %v1321_v26 = vpack.c.bf16 %v1308_v23, %v1307_v44 }
 0x537   :  { %2793 = vmatprep.mubr.msk.bf16.mxu1 %vm439_vm0, %v1321_v26 }
 0x538   :  { %2794 = vmatmul.mubr.msk.bf16.gmra.mrb[44].mxu1 %vm439_vm0, %v1322_v63 }
 0x552   :  { %v2779_v62 = vpop.f32.mrb[32].mxu0 }
 0x553   :  { %v1281_v1 = vadd.f32 %v2779_v62, %v2472_v19  ;;  %v1272_v2 = vpop.f32.mrb[33].mxu0 }
 0x554   :  { %v1273_v27 = vadd.f32 %v2472_v19, %v1272_v2  ;;  %v2780_v57 = vpop.f32.mrb[34].mxu0 }
 0x555   :  { %v1284_v3 = vadd.f32 %v2780_v57, %v2472_v19  ;;  %v1275_v4 = vpop.f32.mrb[35].mxu0  ;;  %v1313_v34 = vmax.f32 %v1281_v1, 0.0 }
 0x556   :  { %v1276_v6 = vadd.f32 %v2472_v19, %v1275_v4  ;;  %v1311_v12 = vmax.f32 %v1273_v27, 0.0 }
 0x557   :  { %v1314_v11 = vmax.f32 %v1284_v3, 0.0 }
 0x558   :  { %v1312_v14 = vmax.f32 %v1276_v6, 0.0 }
 0x559   :  { %v1324_v15 = vpack.c.bf16 %v1314_v11, %v1313_v34 }
 0x55a   :  { %v1323_v47 = vpack.c.bf16 %v1312_v14, %v1311_v12 }
 0x55c   :  { %2797 = vmatprep.mubr.msk.bf16.mxu1 %vm439_vm0, %v1323_v47 }
 0x55d   :  { %2798 = vmatmul.mubr.msk.bf16.gmra.mrb[48].mxu1 %vm439_vm0, %v1324_v15 }
 0x573   :  { %v2783_v21 = vpop.f32.mrb[36].mxu0 }
 0x574   :  { %v1297_v60 = vadd.f32 %v2783_v21, %v2472_v19  ;;  %v1288_v22 = vpop.f32.mrb[37].mxu0 }
 0x575   :  { %v1289_v40 = vadd.f32 %v2472_v19, %v1288_v22  ;;  %v2784_v24 = vpop.f32.mrb[38].mxu0 }
 0x576   :  { %v1300_v17 = vadd.f32 %v2784_v24, %v2472_v19  ;;  %v1291_v54 = vpop.f32.mrb[39].mxu0  ;;  %v1317_v29 = vmax.f32 %v1297_v60, 0.0 }
 0x577   :  { %v1292_v28 = vadd.f32 %v2472_v19, %v1291_v54  ;;  %v1315_v33 = vmax.f32 %v1289_v40, 0.0 }
 0x578   :  { %v1318_v50 = vmax.f32 %v1300_v17, 0.0 }
 0x579   :  { %v1316_v32 = vmax.f32 %v1292_v28, 0.0 }
 0x57a   :  { %v1326_v10 = vpack.c.bf16 %v1318_v50, %v1317_v29 }
 0x57b   :  { %v1325_v37 = vpack.c.bf16 %v1316_v32, %v1315_v33  ;;  %v3008_v33 = vld [vmem:[#allocation3 + $0x38] sm:$0xff]  }
 0x57d   :  { %2801 = vmatprep.mubr.msk.bf16.mxu1 %vm439_vm0, %v1325_v37 }
 0x57e   :  { %2802 = vmatmul.mubr.msk.bf16.gmra.mrb[52].mxu1 %vm439_vm0, %v1326_v10 }
 0x5ea   :  { %v2791_v5 = vpop.f32.mrb[40].mxu1 }
 0x5eb   :  { %v1467_v42 = vadd.f32 %v2791_v5, %v3497_v18  ;;  %v1402_v43 = vpop.f32.mrb[41].mxu1 }
 0x5ec   :  { %v1465_v19 = vadd.f32 %v1402_v43, %v3493_v30  ;;  %v2792_v46 = vpop.f32.mrb[42].mxu1 }
 0x5ed   :  { %v1468_v35 = vadd.f32 %v2792_v46, %v3500_v53  ;;  %v1405_v45 = vpop.f32.mrb[43].mxu1  ;;  %v3607_v58 = vadd.f32 %v3598_v9, %v1467_v42 }
 0x5ee   :  { %v3603_v48 = vadd.f32 %v3598_v9, %v1465_v19  ;;  %v1466_v8 = vadd.f32 %v1405_v45, %v3503_v20 }
 0x5ef   :  { %v3610_v18 = vadd.f32 %v3598_v9, %v1468_v35  ;;  %v1507_v0 = vmax.f32 %v3607_v58, 0.0 }
 0x5f0   :  { %v3613_v31 = vadd.f32 %v3598_v9, %v1466_v8  ;;  %v1505_v55 = vmax.f32 %v3603_v48, 0.0 }
 0x5f1   :  { %v1508_v30 = vmax.f32 %v3610_v18, 0.0 }
 0x5f2   :  { %v1506_v53 = vmax.f32 %v3613_v31, 0.0 }
 0x5f3   :  { %v1522_v23 = vpack.c.bf16 %v1508_v30, %v1507_v0 }
 0x5f4   :  { %v1521_v44 = vpack.c.bf16 %v1506_v53, %v1505_v55 }
 0x5f6   :  { %2809 = vmatprep.mubr.msk.bf16.mxu0 %vm439_vm0, %v1521_v44 }
 0x5f7   :  { %2810 = vmatmul.mubr.msk.bf16.vlgmr.msra.gmra.mrb[40].mxu0 %vm439_vm0, %v1522_v23 }
 0x60b   :  { %v2795_v20 = vpop.f32.mrb[44].mxu1 }
 0x60c   :  { %v1471_v63 = vadd.f32 %v2795_v20, %v3519_v38  ;;  %v1418_v26 = vpop.f32.mrb[45].mxu1 }
 0x60d   :  { %v1469_v62 = vadd.f32 %v1418_v26, %v3515_v36  ;;  %v2796_v1 = vpop.f32.mrb[46].mxu1 }
 0x60e   :  { %v1472_v2 = vadd.f32 %v2796_v1, %v3522_v41  ;;  %v1421_v27 = vpop.f32.mrb[47].mxu1  ;;  %v3629_v4 = vadd.f32 %v3598_v9, %v1471_v63 }
 0x60f   :  { %v3625_v57 = vadd.f32 %v3598_v9, %v1469_v62  ;;  %v1470_v3 = vadd.f32 %v1421_v27, %v3525_v7 }
 0x610   :  { %v3632_v6 = vadd.f32 %v3598_v9, %v1472_v2  ;;  %v1511_v11 = vmax.f32 %v3629_v4, 0.0 }
 0x611   :  { %v3635_v38 = vadd.f32 %v3598_v9, %v1470_v3  ;;  %v1509_v34 = vmax.f32 %v3625_v57, 0.0 }
 0x612   :  { %v1512_v36 = vmax.f32 %v3632_v6, 0.0 }
 0x613   :  { %v1510_v41 = vmax.f32 %v3635_v38, 0.0 }
 0x614   :  { %v1524_v14 = vpack.c.bf16 %v1512_v36, %v1511_v11 }
 0x615   :  { %v1523_v12 = vpack.c.bf16 %v1510_v41, %v1509_v34 }
 0x617   :  { %2813 = vmatprep.mubr.msk.bf16.mxu0 %vm439_vm0, %v1523_v12 }
 0x618   :  { %2814 = vmatmul.mubr.msk.bf16.gmra.mrb[44].mxu0 %vm439_vm0, %v1524_v14 }
 0x630   :  { %v2799_v7 = vpop.f32.mrb[48].mxu1 }
 0x631   :  { %v1475_v15 = vadd.f32 %v2799_v7, %v3541_v59  ;;  %v1434_v47 = vpop.f32.mrb[49].mxu1 }
 0x632   :  { %v1473_v51 = vadd.f32 %v1434_v47, %v3537_v56  ;;  %v2800_v52 = vpop.f32.mrb[50].mxu1 }
 0x633   :  { %v1476_v21 = vadd.f32 %v2800_v52, %v3544_v61  ;;  %v1437_v60 = vpop.f32.mrb[51].mxu1  ;;  %v3651_v24 = vadd.f32 %v3598_v9, %v1475_v15 }
 0x634   :  { %v3647_v22 = vadd.f32 %v3598_v9, %v1473_v51  ;;  %v1474_v40 = vadd.f32 %v1437_v60, %v3547_v25  ;;  %v3007_v25 = vld [vmem:[#allocation3 + $0x30] sm:$0xff]  }
 0x635   :  { %v3654_v17 = vadd.f32 %v3598_v9, %v1476_v21  ;;  %v1515_v28 = vmax.f32 %v3651_v24, 0.0  ;;  %2825 = vmatprep.subr.bf16.mxu1 %v3007_v25 }
 0x636   :  { %v3657_v59 = vadd.f32 %v3598_v9, %v1474_v40  ;;  %v1513_v54 = vmax.f32 %v3647_v22, 0.0  ;;  %2826 = vmatpush3.bf16.msra.mxu1 %v3007_v25 }
 0x637   :  { %v1516_v56 = vmax.f32 %v3654_v17, 0.0  ;;  %2827 = vmatprep.subr.bf16.mxu1 %v3008_v33 }
 0x638   :  { %v1514_v61 = vmax.f32 %v3657_v59, 0.0 }
 0x639   :  { %v1526_v50 = vpack.c.bf16 %v1516_v56, %v1515_v28 }
 0x63a   :  { %v1525_v29 = vpack.c.bf16 %v1514_v61, %v1513_v54  ;;  %2828 = vmatpush3.bf16.msra.mxu1 %v3008_v33 }
 0x63c   :  { %2817 = vmatprep.mubr.msk.bf16.mxu0 %vm439_vm0, %v1525_v29 }
 0x63d   :  { %2818 = vmatmul.mubr.msk.bf16.gmra.mrb[48].mxu0 %vm439_vm0, %v1526_v50 }
 0x651   :  { %v2803_v32 = vpop.f32.mrb[52].mxu1 }
 0x652   :  { %v1479_v10 = vadd.f32 %v2803_v32, %v3563_v39  ;;  %v1450_v37 = vpop.f32.mrb[53].mxu1 }
 0x653   :  { %v1477_v5 = vadd.f32 %v1450_v37, %v3559_v13  ;;  %v2804_v42 = vpop.f32.mrb[54].mxu1 }
 0x654   :  { %v1480_v43 = vadd.f32 %v2804_v42, %v3566_v16  ;;  %v1453_v19 = vpop.f32.mrb[55].mxu1  ;;  %v3673_v45 = vadd.f32 %v3598_v9, %v1479_v10 }
 0x655   :  { %v3669_v46 = vadd.f32 %v3598_v9, %v1477_v5  ;;  %v1478_v35 = vadd.f32 %v1453_v19, %v3569_v49  ;;  %v2500_v49 = vld [vmem:[%s3895_s4 + $0x3] ss:$0 sm:$0xff] }
 0x656   :  { %v3676_v8 = vadd.f32 %v3598_v9, %v1480_v43  ;;  %v1519_v55 = vmax.f32 %v3673_v45, 0.0 }
 0x657   :  { %v3679_v39 = vadd.f32 %v3598_v9, %v1478_v35  ;;  %v1517_v30 = vmax.f32 %v3669_v46, 0.0 }
 0x658   :  { %v1520_v13 = vmax.f32 %v3676_v8, 0.0 }
 0x659   :  { %v1518_v16 = vmax.f32 %v3679_v39, 0.0 }
 0x65a   :  { %v1528_v0 = vpack.c.bf16 %v1520_v13, %v1519_v55 }
 0x65b   :  { %v1527_v53 = vpack.c.bf16 %v1518_v16, %v1517_v30  ;;  %v3009_v30 = vld [vmem:[%s3894_s3 + $0x40] sm:$0xff]   ;;  %v3010_v16 = vld [vmem:[%s3894_s3 + $0x48] sm:$0xff]  }
 0x65c   :  { %2845 = vmatprep.subr.bf16.mxu0 %v3009_v30 }
 0x65d   :  { %2821 = vmatprep.mubr.msk.bf16.mxu0 %vm439_vm0, %v1527_v53  ;;  %2846 = vmatpush3.bf16.msra.mxu0 %v3009_v30 }
 0x65e   :  { %2822 = vmatmul.mubr.msk.bf16.gmra.mrb[52].mxu0 %vm439_vm0, %v1528_v0  ;;  %2847 = vmatprep.subr.bf16.mxu0 %v3010_v16 }
 0x661   :  { %2848 = vmatpush3.bf16.msra.mxu0 %v3010_v16 }
 0x6ca   :  { %v2811_v9 = vpop.f32.mrb[40].mxu0 }
 0x6cb   :  { %v1621_v44 = vadd.f32 %v2811_v9, %v2500_v49  ;;  %v1612_v23 = vpop.f32.mrb[41].mxu0 }
 0x6cc   :  { %v1613_v20 = vadd.f32 %v2500_v49, %v1612_v23  ;;  %v2812_v63 = vpop.f32.mrb[42].mxu0 }
 0x6cd   :  { %v1624_v26 = vadd.f32 %v2812_v63, %v2500_v49  ;;  %v1615_v62 = vpop.f32.mrb[43].mxu0  ;;  %v1677_v2 = vmax.f32 %v1621_v44, 0.0 }
 0x6ce   :  { %v1616_v1 = vadd.f32 %v2500_v49, %v1615_v62  ;;  %v1675_v3 = vmax.f32 %v1613_v20, 0.0 }
 0x6cf   :  { %v1678_v27 = vmax.f32 %v1624_v26, 0.0 }
 0x6d0   :  { %v1676_v36 = vmax.f32 %v1616_v1, 0.0 }
 0x6d1   :  { %v1692_v34 = vpack.c.bf16 %v1678_v27, %v1677_v2 }
 0x6d2   :  { %v1691_v41 = vpack.c.bf16 %v1676_v36, %v1675_v3 }
 0x6d4   :  { %2829 = vmatprep.mubr.msk.bf16.mxu1 %vm439_vm0, %v1691_v41  ;;  %v3708_v41 = vld [vmem:[%s3897_s6 + $0x3] ss:$0 sm:$0xff] }
 0x6d5   :  { %2830 = vmatmul.mubr.msk.bf16.vlgmr.msra.gmra.mrb[56].mxu1 %vm439_vm0, %v1692_v34 }
 0x6eb   :  { %v2815_v11 = vpop.f32.mrb[44].mxu0 }
 0x6ec   :  { %v1637_v12 = vadd.f32 %v2815_v11, %v2500_v49  ;;  %v1628_v14 = vpop.f32.mrb[45].mxu0 }
 0x6ed   :  { %v1629_v7 = vadd.f32 %v2500_v49, %v1628_v14  ;;  %v2816_v15 = vpop.f32.mrb[46].mxu0 }
 0x6ee   :  { %v1640_v47 = vadd.f32 %v2816_v15, %v2500_v49  ;;  %v1631_v51 = vpop.f32.mrb[47].mxu0  ;;  %v1681_v21 = vmax.f32 %v1637_v12, 0.0 }
 0x6ef   :  { %v1632_v52 = vadd.f32 %v2500_v49, %v1631_v51  ;;  %v1679_v40 = vmax.f32 %v1629_v7, 0.0 }
 0x6f0   :  { %v1682_v60 = vmax.f32 %v1640_v47, 0.0 }
 0x6f1   :  { %v1680_v56 = vmax.f32 %v1632_v52, 0.0 }
 0x6f2   :  { %v1694_v54 = vpack.c.bf16 %v1682_v60, %v1681_v21 }
 0x6f3   :  { %v1693_v61 = vpack.c.bf16 %v1680_v56, %v1679_v40 }
 0x6f5   :  { %2833 = vmatprep.mubr.msk.bf16.mxu1 %vm439_vm0, %v1693_v61 }
 0x6f6   :  { %2834 = vmatmul.mubr.msk.bf16.gmra.mrb[60].mxu1 %vm439_vm0, %v1694_v54 }
 0x710   :  { %v2819_v28 = vpop.f32.mrb[48].mxu0 }
 0x711   :  { %v1653_v29 = vadd.f32 %v2819_v28, %v2500_v49  ;;  %v1644_v50 = vpop.f32.mrb[49].mxu0 }
 0x712   :  { %v1645_v25 = vadd.f32 %v2500_v49, %v1644_v50  ;;  %v2820_v33 = vpop.f32.mrb[50].mxu0 }
 0x713   :  { %v1656_v32 = vadd.f32 %v2820_v33, %v2500_v49  ;;  %v1647_v10 = vpop.f32.mrb[51].mxu0  ;;  %v1685_v5 = vmax.f32 %v1653_v29, 0.0 }
 0x714   :  { %v1648_v37 = vadd.f32 %v2500_v49, %v1647_v10  ;;  %v1683_v43 = vmax.f32 %v1645_v25, 0.0 }
 0x715   :  { %v1686_v42 = vmax.f32 %v1656_v32, 0.0 }
 0x716   :  { %v1684_v19 = vmax.f32 %v1648_v37, 0.0 }
 0x717   :  { %v1696_v35 = vpack.c.bf16 %v1686_v42, %v1685_v5 }
 0x718   :  { %v1695_v13 = vpack.c.bf16 %v1684_v19, %v1683_v43 }
 0x71a   :  { %2837 = vmatprep.mubr.msk.bf16.mxu1 %vm439_vm0, %v1695_v13 }
 0x71b   :  { %2838 = vmatmul.mubr.msk.bf16.gmra.mrb[64].mxu1 %vm439_vm0, %v1696_v35 }
 0x731   :  { %v2823_v55 = vpop.f32.mrb[52].mxu0 }
 0x732   :  { %v1669_v53 = vadd.f32 %v2823_v55, %v2500_v49  ;;  %v1660_v0 = vpop.f32.mrb[53].mxu0 }
 0x733   :  { %v1661_v9 = vadd.f32 %v2500_v49, %v1660_v0  ;;  %v2824_v44 = vpop.f32.mrb[54].mxu0 }
 0x734   :  { %v1672_v23 = vadd.f32 %v2824_v44, %v2500_v49  ;;  %v1663_v20 = vpop.f32.mrb[55].mxu0  ;;  %v1689_v26 = vmax.f32 %v1669_v53, 0.0 }
 0x735   :  { %v1664_v63 = vadd.f32 %v2500_v49, %v1663_v20  ;;  %v1687_v1 = vmax.f32 %v1661_v9, 0.0 }
 0x736   :  { %v1690_v62 = vmax.f32 %v1672_v23, 0.0 }
 0x737   :  { %v1688_v2 = vmax.f32 %v1664_v63, 0.0 }
 0x738   :  { %v1698_v27 = vpack.c.bf16 %v1690_v62, %v1689_v26 }
 0x739   :  { %v1697_v3 = vpack.c.bf16 %v1688_v2, %v1687_v1  ;;  %v3012_v1 = vld [vmem:[#allocation3 + $0x48] sm:$0xff]  }
 0x73b   :  { %2841 = vmatprep.mubr.msk.bf16.mxu1 %vm439_vm0, %v1697_v3 }
 0x73c   :  { %2842 = vmatmul.mubr.msk.bf16.gmra.mrb[68].mxu1 %vm439_vm0, %v1698_v27 }
 0x7a8   :  { %v2831_v36 = vpop.f32.mrb[56].mxu1 }
 0x7a9   :  { %v1839_v34 = vadd.f32 %v2831_v36, %v3607_v58  ;;  %v1774_v11 = vpop.f32.mrb[57].mxu1 }
 0x7aa   :  { %v1837_v49 = vadd.f32 %v1774_v11, %v3603_v48  ;;  %v2832_v12 = vpop.f32.mrb[58].mxu1 }
 0x7ab   :  { %v1840_v14 = vadd.f32 %v2832_v12, %v3610_v18  ;;  %v1777_v7 = vpop.f32.mrb[59].mxu1  ;;  %v3717_v51 = vadd.f32 %v3708_v41, %v1839_v34 }
 0x7ac   :  { %v3713_v15 = vadd.f32 %v3708_v41, %v1837_v49  ;;  %v1838_v47 = vadd.f32 %v1777_v7, %v3613_v31 }
 0x7ad   :  { %v3720_v58 = vadd.f32 %v3708_v41, %v1840_v14  ;;  %v1879_v60 = vmax.f32 %v3717_v51, 0.0 }
 0x7ae   :  { %v3723_v52 = vadd.f32 %v3708_v41, %v1838_v47  ;;  %v1877_v21 = vmax.f32 %v3713_v15, 0.0 }
 0x7af   :  { %v1880_v48 = vmax.f32 %v3720_v58, 0.0 }
 0x7b0   :  { %v1878_v18 = vmax.f32 %v3723_v52, 0.0 }
 0x7b1   :  { %v1894_v56 = vpack.c.bf16 %v1880_v48, %v1879_v60 }
 0x7b2   :  { %v1893_v40 = vpack.c.bf16 %v1878_v18, %v1877_v21 }
 0x7b4   :  { %2849 = vmatprep.mubr.msk.bf16.mxu0 %vm439_vm0, %v1893_v40 }
 0x7b5   :  { %2850 = vmatmul.mubr.msk.bf16.vlgmr.msra.gmra.mrb[56].mxu0 %vm439_vm0, %v1894_v56 }
 0x7c9   :  { %v2835_v31 = vpop.f32.mrb[60].mxu1 }
 0x7ca   :  { %v1843_v54 = vadd.f32 %v2835_v31, %v3629_v4  ;;  %v1790_v61 = vpop.f32.mrb[61].mxu1 }
 0x7cb   :  { %v1841_v28 = vadd.f32 %v1790_v61, %v3625_v57  ;;  %v2836_v29 = vpop.f32.mrb[62].mxu1 }
 0x7cc   :  { %v1844_v50 = vadd.f32 %v2836_v29, %v3632_v6  ;;  %v1793_v25 = vpop.f32.mrb[63].mxu1  ;;  %v3739_v10 = vadd.f32 %v3708_v41, %v1843_v54 }
 0x7cd   :  { %v3735_v33 = vadd.f32 %v3708_v41, %v1841_v28  ;;  %v1842_v32 = vadd.f32 %v1793_v25, %v3635_v38 }
 0x7ce   :  { %v3742_v37 = vadd.f32 %v3708_v41, %v1844_v50  ;;  %v1883_v42 = vmax.f32 %v3739_v10, 0.0 }
 0x7cf   :  { %v3745_v4 = vadd.f32 %v3708_v41, %v1842_v32  ;;  %v1881_v5 = vmax.f32 %v3735_v33, 0.0 }
 0x7d0   :  { %v1884_v57 = vmax.f32 %v3742_v37, 0.0 }
 0x7d1   :  { %v1882_v6 = vmax.f32 %v3745_v4, 0.0 }
 0x7d2   :  { %v1896_v19 = vpack.c.bf16 %v1884_v57, %v1883_v42 }
 0x7d3   :  { %v1895_v43 = vpack.c.bf16 %v1882_v6, %v1881_v5 }
 0x7d5   :  { %2853 = vmatprep.mubr.msk.bf16.mxu0 %vm439_vm0, %v1895_v43 }
 0x7d6   :  { %2854 = vmatmul.mubr.msk.bf16.gmra.mrb[60].mxu0 %vm439_vm0, %v1896_v19 }
 0x7ee   :  { %v2839_v38 = vpop.f32.mrb[64].mxu1 }
 0x7ef   :  { %v1847_v35 = vadd.f32 %v2839_v38, %v3651_v24  ;;  %v1806_v13 = vpop.f32.mrb[65].mxu1 }
 0x7f0   :  { %v1845_v30 = vadd.f32 %v1806_v13, %v3647_v22  ;;  %v2840_v16 = vpop.f32.mrb[66].mxu1 }
 0x7f1   :  { %v1848_v55 = vadd.f32 %v2840_v16, %v3654_v17  ;;  %v1809_v53 = vpop.f32.mrb[67].mxu1  ;;  %v3761_v44 = vadd.f32 %v3708_v41, %v1847_v35 }
 0x7f2   :  { %v3757_v0 = vadd.f32 %v3708_v41, %v1845_v30  ;;  %v1846_v9 = vadd.f32 %v1809_v53, %v3657_v59  ;;  %v3011_v59 = vld [vmem:[#allocation3 + $0x40] sm:$0xff]  }
 0x7f3   :  { %v3764_v23 = vadd.f32 %v3708_v41, %v1848_v55  ;;  %v1887_v63 = vmax.f32 %v3761_v44, 0.0  ;;  %2865 = vmatprep.subr.bf16.mxu1 %v3011_v59 }
 0x7f4   :  { %v3767_v24 = vadd.f32 %v3708_v41, %v1846_v9  ;;  %v1885_v20 = vmax.f32 %v3757_v0, 0.0  ;;  %2866 = vmatpush3.bf16.msra.mxu1 %v3011_v59 }
 0x7f5   :  { %v1888_v22 = vmax.f32 %v3764_v23, 0.0  ;;  %2867 = vmatprep.subr.bf16.mxu1 %v3012_v1 }
 0x7f6   :  { %v1886_v17 = vmax.f32 %v3767_v24, 0.0 }
 0x7f7   :  { %v1898_v62 = vpack.c.bf16 %v1888_v22, %v1887_v63 }
 0x7f8   :  { %v1897_v26 = vpack.c.bf16 %v1886_v17, %v1885_v20  ;;  %2868 = vmatpush3.bf16.msra.mxu1 %v3012_v1 }
 0x7fa   :  { %2857 = vmatprep.mubr.msk.bf16.mxu0 %vm439_vm0, %v1897_v26 }
 0x7fb   :  { %2858 = vmatmul.mubr.msk.bf16.gmra.mrb[64].mxu0 %vm439_vm0, %v1898_v62 }
 0x80f   :  { %v2843_v2 = vpop.f32.mrb[68].mxu1 }
 0x810   :  { %v1851_v27 = vadd.f32 %v2843_v2, %v3673_v45  ;;  %v1822_v3 = vpop.f32.mrb[69].mxu1 }
 0x811   :  { %v1849_v36 = vadd.f32 %v1822_v3, %v3669_v46  ;;  %v2844_v34 = vpop.f32.mrb[70].mxu1 }
 0x812   :  { %v1852_v11 = vadd.f32 %v2844_v34, %v3676_v8  ;;  %v1825_v49 = vpop.f32.mrb[71].mxu1  ;;  %v3783_v7 = vadd.f32 %v3708_v41, %v1851_v27 }
 0x813   :  { %v3779_v12 = vadd.f32 %v3708_v41, %v1849_v36  ;;  %v1850_v14 = vadd.f32 %v1825_v49, %v3679_v39  ;;  %v2528_v39 = vld [vmem:[%s3895_s4 + $0x4] ss:$0 sm:$0xff] }
 0x814   :  { %v3786_v47 = vadd.f32 %v3708_v41, %v1852_v11  ;;  %v1891_v21 = vmax.f32 %v3783_v7, 0.0 }
 0x815   :  { %v3789_v45 = vadd.f32 %v3708_v41, %v1850_v14  ;;  %v1889_v48 = vmax.f32 %v3779_v12, 0.0 }
 0x816   :  { %v1892_v46 = vmax.f32 %v3786_v47, 0.0 }
 0x817   :  { %v1890_v8 = vmax.f32 %v3789_v45, 0.0 }
 0x818   :  { %v1900_v60 = vpack.c.bf16 %v1892_v46, %v1891_v21 }
 0x819   :  { %v1899_v18 = vpack.c.bf16 %v1890_v8, %v1889_v48 }
 0x81b   :  { %2861 = vmatprep.mubr.msk.bf16.mxu0 %vm439_vm0, %v1899_v18 }
 0x81c   :  { %2862 = vmatmul.mubr.msk.bf16.gmra.mrb[68].mxu0 %vm439_vm0, %v1900_v60 }
 0x888   :  { %v2851_v41 = vpop.f32.mrb[56].mxu0 }
 0x889   :  { %v1993_v40 = vadd.f32 %v2851_v41, %v2528_v39  ;;  %v1984_v56 = vpop.f32.mrb[57].mxu0  ;;  %v3067_v41 = vmov 0.0|0.0  }
 0x88a   :  { %v1985_v31 = vadd.f32 %v2528_v39, %v1984_v56  ;;  %v2852_v54 = vpop.f32.mrb[58].mxu0  ;;  %2920 = vmatprep.subr.bf16.mxu0 %v3067_v41 }
 0x88b   :  { %v1996_v61 = vadd.f32 %v2852_v54, %v2528_v39  ;;  %v1987_v28 = vpop.f32.mrb[59].mxu0  ;;  %v2049_v50 = vmax.f32 %v1993_v40, 0.0 }
 0x88c   :  { %v1988_v29 = vadd.f32 %v2528_v39, %v1987_v28  ;;  %v2047_v32 = vmax.f32 %v1985_v31, 0.0 }
 0x88d   :  { %v2050_v25 = vmax.f32 %v1996_v61, 0.0 }
 0x88e   :  { %v2048_v57 = vmax.f32 %v1988_v29, 0.0 }
 0x88f   :  { %v2064_v5 = vpack.c.bf16 %v2050_v25, %v2049_v50 }
 0x890   :  { %v2063_v6 = vpack.c.bf16 %v2048_v57, %v2047_v32  ;;  %v3069_v32 = vmov 0.0  }
 0x891   :  { %2917 = vmatprep.mubr.msk.f32.mxu0 %vm3068_vm1, %v3069_v32 }
 0x892   :  { %2869 = vmatprep.mubr.msk.bf16.mxu1 %vm439_vm0, %v2063_v6 }
 0x893   :  { %2870 = vmatmul.mubr.msk.bf16.vlgmr.msra.gmra.mrb[72].mxu1 %vm439_vm0, %v2064_v5  ;;  %v3812_v5 = vld [vmem:[%s3897_s6 + $0x4] ss:$0 sm:$0xff] }
 0x8a9   :  { %v2855_v42 = vpop.f32.mrb[60].mxu0 }
 0x8aa   :  { %v2009_v43 = vadd.f32 %v2855_v42, %v2528_v39  ;;  %v2000_v19 = vpop.f32.mrb[61].mxu0 }
 0x8ab   :  { %v2001_v38 = vadd.f32 %v2528_v39, %v2000_v19  ;;  %v2856_v35 = vpop.f32.mrb[62].mxu0  ;;  %v2266_v19 = vld [vmem:[#allocation2] sm:$0x1] }
 0x8ac   :  { %v2012_v13 = vadd.f32 %v2856_v35, %v2528_v39  ;;  %v2003_v30 = vpop.f32.mrb[63].mxu0  ;;  %v2053_v55 = vmax.f32 %v2009_v43, 0.0  ;;  %2269 = vperm.xlu1 %2991, %v2266_v19  }
 0x8ad   :  { %v2004_v16 = vadd.f32 %v2528_v39, %v2003_v30  ;;  %v2051_v9 = vmax.f32 %v2001_v38, 0.0 }
 0x8ae   :  { %v2054_v53 = vmax.f32 %v2012_v13, 0.0 }
 0x8af   :  { %v2052_v22 = vmax.f32 %v2004_v16, 0.0 }
 0x8b0   :  { %v2066_v20 = vpack.c.bf16 %v2054_v53, %v2053_v55 }
 0x8b1   :  { %v2065_v17 = vpack.c.bf16 %v2052_v22, %v2051_v9 }
 0x8b3   :  { %2873 = vmatprep.mubr.msk.bf16.mxu1 %vm439_vm0, %v2065_v17 }
 0x8b4   :  { %2874 = vmatmul.mubr.msk.bf16.gmra.mrb[76].mxu1 %vm439_vm0, %v2066_v20 }
 0x8ce   :  { %v2859_v63 = vpop.f32.mrb[64].mxu0 }
 0x8cf   :  { %v2025_v26 = vadd.f32 %v2859_v63, %v2528_v39  ;;  %v2016_v62 = vpop.f32.mrb[65].mxu0 }
 0x8d0   :  { %v2017_v59 = vadd.f32 %v2528_v39, %v2016_v62  ;;  %v2860_v1 = vpop.f32.mrb[66].mxu0 }
 0x8d1   :  { %v2028_v2 = vadd.f32 %v2860_v1, %v2528_v39  ;;  %v2019_v27 = vpop.f32.mrb[67].mxu0  ;;  %v2057_v36 = vmax.f32 %v2025_v26, 0.0 }
 0x8d2   :  { %v2020_v3 = vadd.f32 %v2528_v39, %v2019_v27  ;;  %v2055_v11 = vmax.f32 %v2017_v59, 0.0 }
 0x8d3   :  { %v2058_v34 = vmax.f32 %v2028_v2, 0.0 }
 0x8d4   :  { %v2056_v49 = vmax.f32 %v2020_v3, 0.0 }
 0x8d5   :  { %v2068_v14 = vpack.c.bf16 %v2058_v34, %v2057_v36 }
 0x8d6   :  { %v2067_v46 = vpack.c.bf16 %v2056_v49, %v2055_v11 }
 0x8d8   :  { %2877 = vmatprep.mubr.msk.bf16.mxu1 %vm439_vm0, %v2067_v46 }
 0x8d9   :  { %2878 = vmatmul.mubr.msk.bf16.gmra.mrb[80].mxu1 %vm439_vm0, %v2068_v14 }
 0x8ef   :  { %v2863_v48 = vpop.f32.mrb[68].mxu0 }
 0x8f0   :  { %v2041_v8 = vadd.f32 %v2863_v48, %v2528_v39  ;;  %v2032_v21 = vpop.f32.mrb[69].mxu0 }
 0x8f1   :  { %v2033_v18 = vadd.f32 %v2528_v39, %v2032_v21  ;;  %v2864_v60 = vpop.f32.mrb[70].mxu0 }
 0x8f2   :  { %v2044_v40 = vadd.f32 %v2864_v60, %v2528_v39  ;;  %v2035_v56 = vpop.f32.mrb[71].mxu0  ;;  %v2061_v54 = vmax.f32 %v2041_v8, 0.0 }
 0x8f3   :  { %v2036_v31 = vadd.f32 %v2528_v39, %v2035_v56  ;;  %v2059_v28 = vmax.f32 %v2033_v18, 0.0 }
 0x8f4   :  { %v2062_v61 = vmax.f32 %v2044_v40, 0.0 }
 0x8f5   :  { %v2060_v29 = vmax.f32 %v2036_v31, 0.0 }
 0x8f6   :  { %v2070_v50 = vpack.c.bf16 %v2062_v61, %v2061_v54 }
 0x8f7   :  { %v2069_v25 = vpack.c.bf16 %v2060_v29, %v2059_v28 }
 0x8f9   :  { %2881 = vmatprep.mubr.msk.bf16.mxu1 %vm439_vm0, %v2069_v25 }
 0x8fa   :  { %2882 = vmatmul.mubr.msk.bf16.gmra.mrb[84].mxu1 %vm439_vm0, %v2070_v50 }
 0x966   :  { %v2871_v57 = vpop.f32.mrb[72].mxu1 }
 0x967   :  { %v2211_v39 = vadd.f32 %v2871_v57, %v3717_v51  ;;  %v2146_v6 = vpop.f32.mrb[73].mxu1 }
 0x968   :  { %v2209_v42 = vadd.f32 %v2146_v6, %v3713_v15  ;;  %v2872_v43 = vpop.f32.mrb[74].mxu1 }
 0x969   :  { %v2235_v38 = vadd.f32 %v3812_v5, %v2211_v39  ;;  %v2212_v35 = vadd.f32 %v2872_v43, %v3720_v58  ;;  %v2149_v13 = vpop.f32.mrb[75].mxu1 }
 0x96a   :  { %v2233_v30 = vadd.f32 %v3812_v5, %v2209_v42  ;;  %v2210_v16 = vadd.f32 %v2149_v13, %v3723_v52 }
 0x96b   :  { %v2236_v55 = vadd.f32 %v3812_v5, %v2212_v35  ;;  %v2251_v51 = vmax.f32 %v2235_v38, 0.0 }
 0x96c   :  { %v2234_v53 = vadd.f32 %v3812_v5, %v2210_v16  ;;  %v2249_v22 = vmax.f32 %v2233_v30, 0.0 }
 0x96d   :  { %v2252_v9 = vmax.f32 %v2236_v55, 0.0 }
 0x96e   :  { %v2250_v15 = vmax.f32 %v2234_v53, 0.0 }
 0x96f   :  { %v2925_v20 = vpack.c.bf16 %v2252_v9, %v2251_v51 }
 0x970   :  { %v2921_v58 = vpack.c.bf16 %v2250_v15, %v2249_v22  ;;  %v2270_v22 = vpop.permute.xlu1 %2269 }
 0x972   :  { %2923 = vmatpush3.bf16.xpose.msk.msra.mxu0 %vm3824_vm2, %v2921_v58 }
 0x973   :  { %2924 = vmatprep.subr.bf16.mxu0 %v3067_v41 }
 0x97a   :  { %2927 = vmatpush3.bf16.xpose.msk.msra.mxu0 %vm3824_vm2, %v2925_v20 }
 0x97b   :  { %2928 = vmatprep.subr.bf16.mxu0 %v3067_v41 }
 0x987   :  { %v2875_v52 = vpop.f32.mrb[76].mxu1 }
 0x988   :  { %v2215_v63 = vadd.f32 %v2875_v52, %v3739_v10  ;;  %v2162_v26 = vpop.f32.mrb[77].mxu1 }
 0x989   :  { %v2213_v62 = vadd.f32 %v2162_v26, %v3735_v33  ;;  %v2876_v59 = vpop.f32.mrb[78].mxu1 }
 0x98a   :  { %v2239_v1 = vadd.f32 %v3812_v5, %v2215_v63  ;;  %v2216_v2 = vadd.f32 %v2876_v59, %v3742_v37  ;;  %v2165_v27 = vpop.f32.mrb[79].mxu1 }
 0x98b   :  { %v2237_v3 = vadd.f32 %v3812_v5, %v2213_v62  ;;  %v2214_v36 = vadd.f32 %v2165_v27, %v3745_v4 }
 0x98c   :  { %v2240_v34 = vadd.f32 %v3812_v5, %v2216_v2  ;;  %v2255_v49 = vmax.f32 %v2239_v1, 0.0 }
 0x98d   :  { %v2238_v11 = vadd.f32 %v3812_v5, %v2214_v36  ;;  %v2253_v10 = vmax.f32 %v2237_v3, 0.0 }
 0x98e   :  { %v2256_v14 = vmax.f32 %v2240_v34, 0.0 }
 0x98f   :  { %v2254_v46 = vmax.f32 %v2238_v11, 0.0 }
 0x990   :  { %v2933_v48 = vpack.c.bf16 %v2256_v14, %v2255_v49 }
 0x991   :  { %v2929_v33 = vpack.c.bf16 %v2254_v46, %v2253_v10 }
 0x993   :  { %2931 = vmatpush3.bf16.xpose.msk.msra.mxu0 %vm3824_vm2, %v2929_v33 }
 0x994   :  { %2932 = vmatprep.subr.bf16.mxu0 %v3067_v41 }
 0x99b   :  { %2935 = vmatpush3.bf16.xpose.msk.msra.mxu0 %vm3824_vm2, %v2933_v48 }
 0x99c   :  { %2936 = vmatprep.subr.bf16.mxu0 %v3067_v41 }
 0x9ac   :  { %v2879_v37 = vpop.f32.mrb[80].mxu1 }
 0x9ad   :  { %v2219_v4 = vadd.f32 %v2879_v37, %v3761_v44  ;;  %v2178_v8 = vpop.f32.mrb[81].mxu1 }
 0x9ae   :  { %v2217_v21 = vadd.f32 %v2178_v8, %v3757_v0  ;;  %v2880_v18 = vpop.f32.mrb[82].mxu1 }
 0x9af   :  { %v2243_v60 = vadd.f32 %v3812_v5, %v2219_v4  ;;  %v2220_v40 = vadd.f32 %v2880_v18, %v3764_v23  ;;  %v2181_v56 = vpop.f32.mrb[83].mxu1 }
 0x9b0   :  { %v2241_v31 = vadd.f32 %v3812_v5, %v2217_v21  ;;  %v2218_v54 = vadd.f32 %v2181_v56, %v3767_v24 }
 0x9b1   :  { %v2244_v61 = vadd.f32 %v3812_v5, %v2220_v40  ;;  %v2259_v29 = vmax.f32 %v2243_v60, 0.0 }
 0x9b2   :  { %v2242_v28 = vadd.f32 %v3812_v5, %v2218_v54  ;;  %v2257_v44 = vmax.f32 %v2241_v31, 0.0 }
 0x9b3   :  { %v2260_v50 = vmax.f32 %v2244_v61, 0.0 }
 0x9b4   :  { %v2258_v25 = vmax.f32 %v2242_v28, 0.0 }
 0x9b5   :  { %v2941_v32 = vpack.c.bf16 %v2260_v50, %v2259_v29 }
 0x9b6   :  { %v2937_v0 = vpack.c.bf16 %v2258_v25, %v2257_v44 }
 0x9b8   :  { %2939 = vmatpush3.bf16.xpose.msk.msra.mxu0 %vm3824_vm2, %v2937_v0 }
 0x9b9   :  { %2940 = vmatprep.subr.bf16.mxu0 %v3067_v41 }
 0x9c0   :  { %2943 = vmatpush3.bf16.xpose.msk.msra.mxu0 %vm3824_vm2, %v2941_v32 }
 0x9c1   :  { %2944 = vmatprep.subr.bf16.mxu0 %v3067_v41 }
 0x9cd   :  { %v2883_v23 = vpop.f32.mrb[84].mxu1 }
 0x9ce   :  { %v2223_v24 = vadd.f32 %v2883_v23, %v3783_v7  ;;  %v2194_v57 = vpop.f32.mrb[85].mxu1 }
 0x9cf   :  { %v2221_v39 = vadd.f32 %v2194_v57, %v3779_v12  ;;  %v2884_v6 = vpop.f32.mrb[86].mxu1 }
 0x9d0   :  { %v2247_v42 = vadd.f32 %v3812_v5, %v2223_v24  ;;  %v2224_v43 = vadd.f32 %v2884_v6, %v3786_v47  ;;  %v2197_v19 = vpop.f32.mrb[87].mxu1  ;;  %v2265_v47 = vld [vmem:[%s3898_s7] sm:$0x1] }
 0x9d1   :  { %v2245_v38 = vadd.f32 %v3812_v5, %v2221_v39  ;;  %v2222_v35 = vadd.f32 %v2197_v19, %v3789_v45  ;;  %v2272_v45 = vlaneseq }
 0x9d2   :  { %v2248_v13 = vadd.f32 %v3812_v5, %v2224_v43  ;;  %v2263_v16 = vmax.f32 %v2247_v42, 0.0 }
 0x9d3   :  { %v2246_v30 = vadd.f32 %v3812_v5, %v2222_v35  ;;  %v2261_v7 = vmax.f32 %v2245_v38, 0.0  ;;  %v2273_v5 = vshrl.u32 %v2272_v45, 7 }
 0x9d4   :  { %v2264_v55 = vmax.f32 %v2248_v13, 0.0 }
 0x9d5   :  { %v2262_v53 = vmax.f32 %v2246_v30, 0.0  ;;  %v2274_v9 = vsub.s32 0, %v2273_v5 }
 0x9d6   :  { %v2949_v51 = vpack.c.bf16 %v2264_v55, %v2263_v16 }
 0x9d7   :  { %v2945_v12 = vpack.c.bf16 %v2262_v53, %v2261_v7  ;;  %v2275_v15 = vrot.slane %v2270_v22, %v2274_v9 }
 0x9d9   :  { %2947 = vmatpush3.bf16.xpose.msk.msra.mxu0 %vm3824_vm2, %v2945_v12 }
 0x9da   :  { %2948 = vmatprep.subr.bf16.mxu0 %v3067_v41 }
 0x9e1   :  { %2951 = vmatpush3.bf16.xpose.msk.msra.mxu0 %vm3824_vm2, %v2949_v51 }
 0x9e8   :  { %2918 = vmatmul.mubr.msk.f32.vlgmr.msra.gmra.mrb[72].mxu0 %vm439_vm0, %v2265_v47 }
 0xabb   :  { %v2393_v20 = vpop.f32.mrb[72].mxu0 }
 0xabc   :  { %v2394_v58 = vadd.f32 %v2393_v20, %v2275_v15  ;;  %v2919_v52 = vpop.f32.mrb[73].mxu0 }
 0xabe   :  { %2397 = vst [vmem:[#allocation6] sm:$0x1] %v2394_v58 }
 0xabf   :  { %3046 = shalt.err (!%p3043_p12)
}
 0xac0   :  { %s3047_s11 = scalar_lea.hbm %s3900_s9, 16 }
 0xac1   :  { %p3048_p13 = scmp.ne.s32.totalorder %s3900_s9, %s3047_s11  ;;  %p3051_p0 = scmp.lt.u32.totalorder %s3047_s11, %s3900_s9 }
 0xac3   :  { %p3053_p1 = pnand %p3051_p0, %p3048_p13 }
 0xac5   :  { %3056 = shalt.err (!%p3053_p1)
}
 0xac6   :  { %2407 = dma.vmem_to_hbm [thread:$0]  %s2405_s28, 16, %s3900_s9, [#allocation5]  }
 0xac7   :  { %3059 = dma.done.wait [#allocation5], 16  }
 0xac8   :  { %3060 = vsyncadd [#allocation5], 4294967280 }
 0xac9   :  { %2411 = vsyncpa [#allocation4], 1 }
 0xaca   :  { %2412 = vsyncpa [#allocation5], 1 }

</bundles_post_ra>
